<compile_context>
chip_gen: v7x
topology: tpu7x:2x2x1
jax: 0.10.0
libtpu: 0.0.40
codegen_flags: <defaults>
</compile_context>

<pallas_src>
import numpy as np

import jax
import jax.numpy as jnp
from jax.experimental import pallas as pl
from jax.experimental.pallas import tpu as pltpu


# ----------------------------- Pallas kernel ------------------------------- #

def _conv_bn_relu_pool_stage(xg, w_ref, b_ref, hsel_ref, gsel_ref):
    """Fused conv3x3(pad=1) + BN + ReLU + maxpool2x2 (+ next-stage zero borders)
    on a batch tile laid out as a single 2-D slab.

    xg       : (B*Hp, Wp*Ci) bf16     global-row frame, zero borders per image.
    w_ref    : (3, Wp*Ci, Wi*Co) bf16 block-Toeplitz conv slabs (BN scale folded in).
    b_ref    : (1, Wi*Co) f32         folded conv-bias + BN bias, tiled over w.
    hsel_ref : (2, B*Hpn, B*Hp-2) bf16  0/1 even/odd height-pool selectors: pick
               per-image row pairs, drop inter-image junk rows, add zero row borders.
    gsel_ref : (2, Wi*Co, Wpn*Co) bf16  0/1 even/odd width-pool selectors (+zero cols).
    returns  : (B*Hpn, Wpn*Co) bf16
    """
    m = xg.shape[0] - 2
    # conv3x3 as 3 full-height matmuls (M = B*Hp) + row-shifted f32 accumulation.
    # The couple of extra rows per matmul are junk between images; hsel drops them.
    y0 = jnp.dot(xg, w_ref[0], preferred_element_type=jnp.float32)
    y1 = jnp.dot(xg, w_ref[1], preferred_element_type=jnp.float32)
    y2 = jnp.dot(xg, w_ref[2], preferred_element_type=jnp.float32)
    acc = y0[0:m, :] + y1[1:1 + m, :] + y2[2:2 + m, :]
    # folded BatchNorm bias (scale already in the slabs) + ReLU, then one bf16 cast.
    a = jnp.maximum(acc + b_ref[...], 0.0).astype(jnp.bfloat16)
    # height pool first (halves M of the width-pool matmuls); exact 0/1 selection.
    hp = jnp.maximum(
        jnp.dot(hsel_ref[0], a, preferred_element_type=jnp.float32),
        jnp.dot(hsel_ref[1], a, preferred_element_type=jnp.float32),
    ).astype(jnp.bfloat16)
    # width pool (+ zero column border for the next conv)
    pw = jnp.maximum(
        jnp.dot(hp, gsel_ref[0], preferred_element_type=jnp.float32),
        jnp.dot(hp, gsel_ref[1], preferred_element_type=jnp.float32),
    ).astype(jnp.bfloat16)
    return pw


def direction_classifier_kernel(x_ref,
                                w1_ref, b1_ref, hs1_ref, gs1_ref,
                                w2_ref, b2_ref, hs2_ref, gs2_ref,
                                w3_ref, b3_ref, hs3_ref, gs3_ref,
                                hf_ref, fc1w_ref, fc1b_ref, fc2w_ref, fc2b_ref,
                                o_ref):
    """Whole DirectionClassifier forward for one batch tile (grid over tiles)."""
    xg = x_ref[...]                                              # (B*(S+2), (S+2)*3)
    xg = _conv_bn_relu_pool_stage(xg, w1_ref, b1_ref, hs1_ref, gs1_ref)
    xg = _conv_bn_relu_pool_stage(xg, w2_ref, b2_ref, hs2_ref, gs2_ref)
    x3 = _conv_bn_relu_pool_stage(xg, w3_ref, b3_ref, hs3_ref, gs3_ref)  # (B*Hf, Wf*64)

    # fc1 + ReLU.  torch's NCHW flatten order is folded into fc1w's row layout; the
    # hf_ref 0/1 selectors re-frame (b, h) rows into batch rows so fc1's M = B.
    n_h = fc1w_ref.shape[0]
    z = None
    for h in range(n_h):
        rows_h = jnp.dot(hf_ref[h], x3, preferred_element_type=jnp.float32)
        zh = jnp.dot(rows_h.astype(jnp.bfloat16), fc1w_ref[h],
                     preferred_element_type=jnp.float32)
        z = zh if z is None else z + zh
    z = jnp.maximum(z + fc1b_ref[...], 0.0)                      # (B, 128) f32
    # Dropout(0.5): identity in inference mode.
    # TODO(synk): train-mode dropout masking (pltpu.prng_*) intentionally omitted.
    logits = jnp.dot(z.astype(jnp.bfloat16), fc2w_ref[...],
                     preferred_element_type=jnp.float32) + fc2b_ref[...]
    o_ref[...] = 1.0 / (1.0 + jnp.exp(-logits))                  # (B, 8) sigmoid, f32


# ------------------------------ pallas_call wrapper ------------------------ #

_PARAM_ORDER = ("w1", "b1", "hs1", "gs1", "w2", "b2", "hs2", "gs2",
                "w3", "b3", "hs3", "gs3", "hf", "fc1w", "fc1b", "fc2w", "fc2b")


def _const_index_map(ndim):
    zeros = (0,) * ndim
    return lambda i: zeros


def direction_classifier_forward(x_nchw, kp):
    """x_nchw: (N, 3, S, S) float32 (PyTorch layout). Returns (N, 8) probabilities."""
    n, c, s, s2 = x_nchw.shape
    assert c == 3 and s == s2 == kp["input_size"]
    bt = kp["batch_tile"]
    hp = s + 2
    n_pad = ((n + bt - 1) // bt) * bt
    # Only XLA glue in the whole forward: NCHW -> bf16 zero-padded global-row slab
    # (rows = (image, h), lanes = (w, c)); batch zero-padded to a tile multiple.
    x = jnp.transpose(x_nchw, (0, 2, 3, 1)).astype(jnp.float32)
    x = jnp.pad(x, ((0, n_pad - n), (1, 1), (1, 1), (0, 0)))
    x = x.reshape(n_pad * hp, hp * 3).astype(jnp.bfloat16)

    weights = [kp[k] for k in _PARAM_ORDER]
    in_specs = [pl.BlockSpec((bt * hp, hp * 3), lambda i: (i, 0))]
    in_specs += [pl.BlockSpec(w.shape, _const_index_map(w.ndim)) for w in weights]

    out = pl.pallas_call(
        direction_classifier_kernel,
        out_shape=jax.ShapeDtypeStruct((n_pad, 8), jnp.float32),
        grid=(n_pad // bt,),
        in_specs=in_specs,
        out_specs=pl.BlockSpec((bt, 8), lambda i: (i, 0)),
        compiler_params=pltpu.CompilerParams(dimension_semantics=("parallel",)),
    )(x, *weights)
    return out[:n]


# ----------------------- host-side operand construction -------------------- #

def _row_toeplitz_conv(w_oihw, wi, scale):
    """torch (Co,Ci,3,3) conv weight -> (3, (wi+2)*Ci, wi*Co) block-Toeplitz slabs so
    that conv(pad=1) == sum_ky Xpad[ky:ky+rows] @ slab[ky] in the rows-by-(w,c)-lanes
    layout.  The folded BN scale is baked into the output-channel columns."""
    co, ci, _, _ = w_oihw.shape
    w = np.asarray(w_oihw, np.float32)
    mats = np.zeros((3, (wi + 2) * ci, wi * co), np.float32)
    for ky in range(3):
        for kx in range(3):
            sel = np.zeros((wi + 2, wi), np.float32)
            sel[np.arange(wi) + kx, np.arange(wi)] = 1.0
            mats[ky] += np.kron(sel, w[:, :, ky, kx].T)          # (Ci, Co) blocks
    mats *= np.tile(np.asarray(scale, np.float32), wi)[None, None, :]
    return mats


def _wpool_selectors(wi, co, pad_out):
    """0/1 matrices selecting even/odd width pairs of (w,c) lane blocks; if pad_out,
    shifted by one block to create the next conv's zero w-border."""
    wo, off = wi // 2, (1 if pad_out else 0)
    se = np.zeros((wi, wo + 2 * off), np.float32)
    so = np.zeros((wi, wo + 2 * off), np.float32)
    se[2 * np.arange(wo), np.arange(wo) + off] = 1.0
    so[2 * np.arange(wo) + 1, np.arange(wo) + off] = 1.0
    eye = np.eye(co, dtype=np.float32)
    return np.stack([np.kron(se, eye), np.kron(so, eye)])


def _hpool_selectors(hi, b, pad_out):
    """0/1 (2, b*Hpn, b*(hi+2)-2) global-row selectors: pick even/odd conv output rows
    of each image, drop inter-image junk rows and, if pad_out, insert the next
    stage's zero row borders."""
    hp_in = hi + 2
    ho, off = hi // 2, (1 if pad_out else 0)
    hpn = ho + 2 * off
    m = b * hp_in - 2
    sel = np.zeros((2, b * hpn, m), np.float32)
    for bb in range(b):
        for j in range(ho):
            sel[0, bb * hpn + off + j, bb * hp_in + 2 * j] = 1.0
            sel[1, bb * hpn + off + j, bb * hp_in + 2 * j + 1] = 1.0
    return sel


def _fc_row_selectors(hf, b):
    """0/1 (hf, b, b*hf) selectors: row h of image b in the global frame -> batch row b."""
    sel = np.zeros((hf, b, b * hf), np.float32)
    for bb in range(b):
        for h in range(hf):
            sel[h, bb, bb * hf + h] = 1.0
    return sel


def _fold_bn(conv_b, gamma, beta, mean, var, eps=1e-5):
    scale = gamma / np.sqrt(var + eps)
    bias = (conv_b - mean) * scale + beta
    return scale, bias


def build_kernel_params(tp, input_size=16, batch_tile=8):
    """Convert torch-layout params into the fused kernel's precomputed operands."""
    assert input_size % 8 == 0, "input_size must be divisible by 8"
    assert batch_tile % 8 == 0, "batch_tile must be divisible by 8"
    kp = {"input_size": input_size, "batch_tile": batch_tile}
    chans = [(3, 16), (16, 32), (32, 64)]
    spatial = [input_size, input_size // 2, input_size // 4]
    for i, ((_ci, co), wi) in enumerate(zip(chans, spatial), start=1):
        scale, bias = _fold_bn(np.asarray(tp[f"conv{i}_b"], np.float32),
                               np.asarray(tp[f"bn{i}_gamma"], np.float32),
                               np.asarray(tp[f"bn{i}_beta"], np.float32),
                               np.asarray(tp[f"bn{i}_mean"], np.float32),
                               np.asarray(tp[f"bn{i}_var"], np.float32))
        pad_out = i < 3                       # last stage feeds the FCs: no border
        kp[f"w{i}"] = jnp.asarray(
            _row_toeplitz_conv(tp[f"conv{i}_w"], wi, scale), jnp.bfloat16)
        kp[f"b{i}"] = jnp.asarray(np.tile(bias, wi).reshape(1, wi * co), jnp.float32)
        kp[f"hs{i}"] = jnp.asarray(_hpool_selectors(wi, batch_tile, pad_out),
                                   jnp.bfloat16)
        kp[f"gs{i}"] = jnp.asarray(_wpool_selectors(wi, co, pad_out), jnp.bfloat16)
    # fc1: reorder rows from torch's (c, h, w) flatten order to the kernel's
    # per-row (h, (w, c)) layout, split by h.
    hf = wf = input_size // 8
    cf = 64
    fc1_wt = np.asarray(tp["fc1_w"], np.float32).T               # (cf*hf*wf, 128)
    fc1_wt = fc1_wt.reshape(cf, hf, wf, 128).transpose(1, 2, 0, 3).reshape(
        hf, wf * cf, 128)
    kp["hf"] = jnp.asarray(_fc_row_selectors(hf, batch_tile), jnp.bfloat16)
    kp["fc1w"] = jnp.asarray(fc1_wt, jnp.bfloat16)
    kp["fc1b"] = jnp.asarray(np.asarray(tp["fc1_b"], np.float32).reshape(1, 128),
                             jnp.float32)
    kp["fc2w"] = jnp.asarray(np.asarray(tp["fc2_w"], np.float32).T, jnp.bfloat16)
    kp["fc2b"] = jnp.asarray(np.asarray(tp["fc2_b"], np.float32).reshape(1, 8),
                             jnp.float32)
    return kp


# ----------------------- parameter init (deterministic) -------------------- #

def init_torch_params(key, input_size=16):
    """Synthetic parameters in PyTorch layouts (incl. BN running stats, eval mode)."""
    ks = iter(jax.random.split(key, 32))
    tp = {}
    for i, (ci, co) in enumerate([(3, 16), (16, 32), (32, 64)], start=1):
        tp[f"conv{i}_w"] = 0.1 * jax.random.normal(next(ks), (co, ci, 3, 3), jnp.float32)
        tp[f"conv{i}_b"] = 0.1 * jax.random.normal(next(ks), (co,), jnp.float32)
        tp[f"bn{i}_gamma"] = 1.0 + 0.1 * jax.random.normal(next(ks), (co,), jnp.float32)
        tp[f"bn{i}_beta"] = 0.1 * jax.random.normal(next(ks), (co,), jnp.float32)
        tp[f"bn{i}_mean"] = 0.1 * jax.random.normal(next(ks), (co,), jnp.float32)
        tp[f"bn{i}_var"] = jax.random.uniform(next(ks), (co,), jnp.float32, 0.5, 1.5)
    fc_in = (input_size // 8) ** 2 * 64
    tp["fc1_w"] = 0.05 * jax.random.normal(next(ks), (128, fc_in), jnp.float32)
    tp["fc1_b"] = 0.05 * jax.random.normal(next(ks), (128,), jnp.float32)
    tp["fc2_w"] = 0.05 * jax.random.normal(next(ks), (8, 128), jnp.float32)
    tp["fc2_b"] = 0.05 * jax.random.normal(next(ks), (8,), jnp.float32)
    return tp


# ------------------------- pure-XLA f32 reference -------------------------- #

def reference_forward(x_nchw, tp, eps=1e-5):
    """Pure-JAX f32 reference matching the PyTorch module in eval mode."""
    x = x_nchw.astype(jnp.float32)
    for i in range(1, 4):
        x = jax.lax.conv_general_dilated(
            x, tp[f"conv{i}_w"], window_strides=(1, 1), padding=((1, 1), (1, 1)),
            dimension_numbers=("NCHW", "OIHW", "NCHW"),
            precision=jax.lax.Precision.HIGHEST)
        x = x + tp[f"conv{i}_b"][None, :, None, None]
        x = (x - tp[f"bn{i}_mean"][None, :, None, None]) / jnp.sqrt(
            tp[f"bn{i}_var"][None, :, None, None] + eps)
        x = x * tp[f"bn{i}_gamma"][None, :, None, None] \
            + tp[f"bn{i}_beta"][None, :, None, None]
        x = jnp.maximum(x, 0.0)
        x = jax.lax.reduce_window(x, -jnp.inf, jax.lax.max,
                                  (1, 1, 2, 2), (1, 1, 2, 2), "VALID")
    x = x.reshape(x.shape[0], -1)
    x = jnp.maximum(jnp.dot(x, tp["fc1_w"].T, precision=jax.lax.Precision.HIGHEST)
                    + tp["fc1_b"], 0.0)
    x = jnp.dot(x, tp["fc2_w"].T, precision=jax.lax.Precision.HIGHEST) + tp["fc2_b"]
    return 1.0 / (1.0 + jnp.exp(-x))


# ----------------------------------- main ----------------------------------- #

if __name__ == "__main__":
    input_size = 16            # small; module requires input_size % 8 == 0
    batch = 16
    batch_tile = 8             # 2 grid steps -> both v7x TensorCores can be used
    key = jax.random.PRNGKey(0)
    tp = init_torch_params(key, input_size=input_size)
    kp = build_kernel_params(tp, input_size=input_size, batch_tile=batch_tile)
    x = jax.random.normal(jax.random.fold_in(key, 123),
                          (batch, 3, input_size, input_size), jnp.float32)

    out = direction_classifier_forward(x, kp)
    out = jax.block_until_ready(out)
    assert out.shape == (batch, 8)
    assert bool(jnp.all((out >= 0.0) & (out <= 1.0)))

    # Correctness vs. f32 XLA reference (kernel feeds bf16 to the MXU -> loose tol).
    ref = jax.block_until_ready(reference_forward(x, tp))
    max_err = float(jnp.max(jnp.abs(out - ref)))
    assert max_err < 5e-2, f"max |out - ref| = {max_err}"

    print("KERNEL_OK")
</pallas_src>

<mosaic_0001>
module attributes {stable_mosaic.version = 11 : i64} {
  func.func @direction_classifier_kernel(%arg0: i32, %arg1: memref<144x54xbf16, #tpu.memory_space<vmem>>, %arg2: memref<3x54x256xbf16, #tpu.memory_space<vmem>>, %arg3: memref<1x256xf32, #tpu.memory_space<vmem>>, %arg4: memref<2x80x142xbf16, #tpu.memory_space<vmem>>, %arg5: memref<2x256x160xbf16, #tpu.memory_space<vmem>>, %arg6: memref<3x160x256xbf16, #tpu.memory_space<vmem>>, %arg7: memref<1x256xf32, #tpu.memory_space<vmem>>, %arg8: memref<2x48x78xbf16, #tpu.memory_space<vmem>>, %arg9: memref<2x256x192xbf16, #tpu.memory_space<vmem>>, %arg10: memref<3x192x256xbf16, #tpu.memory_space<vmem>>, %arg11: memref<1x256xf32, #tpu.memory_space<vmem>>, %arg12: memref<2x16x46xbf16, #tpu.memory_space<vmem>>, %arg13: memref<2x256x128xbf16, #tpu.memory_space<vmem>>, %arg14: memref<2x8x16xbf16, #tpu.memory_space<vmem>>, %arg15: memref<2x128x128xbf16, #tpu.memory_space<vmem>>, %arg16: memref<1x128xf32, #tpu.memory_space<vmem>>, %arg17: memref<128x8xbf16, #tpu.memory_space<vmem>>, %arg18: memref<1x8xf32, #tpu.memory_space<vmem>>, %arg19: memref<8x8xf32, #tpu.memory_space<vmem>>) attributes {dimension_semantics = [#tpu.dimension_semantics<parallel>], iteration_bounds = array<i64: 2>, scalar_prefetch = 0 : i64, scratch_operands = 0 : i64, tpu.core_type = #tpu.core_type<tc>, window_params = [{transform_indices = @transform_0, window_bounds = array<i64: 144, 54>}, {pipeline_mode = #tpu.pipeline_mode<synchronous>, transform_indices = @transform_1, window_bounds = array<i64: 3, 54, 256>}, {pipeline_mode = #tpu.pipeline_mode<synchronous>, transform_indices = @transform_2, window_bounds = array<i64: 1, 256>}, {pipeline_mode = #tpu.pipeline_mode<synchronous>, transform_indices = @transform_3, window_bounds = array<i64: 2, 80, 142>}, {pipeline_mode = #tpu.pipeline_mode<synchronous>, transform_indices = @transform_4, window_bounds = array<i64: 2, 256, 160>}, {pipeline_mode = #tpu.pipeline_mode<synchronous>, transform_indices = @transform_5, window_bounds = array<i64: 3, 160, 256>}, {pipeline_mode = #tpu.pipeline_mode<synchronous>, transform_indices = @transform_6, window_bounds = array<i64: 1, 256>}, {pipeline_mode = #tpu.pipeline_mode<synchronous>, transform_indices = @transform_7, window_bounds = array<i64: 2, 48, 78>}, {pipeline_mode = #tpu.pipeline_mode<synchronous>, transform_indices = @transform_8, window_bounds = array<i64: 2, 256, 192>}, {pipeline_mode = #tpu.pipeline_mode<synchronous>, transform_indices = @transform_9, window_bounds = array<i64: 3, 192, 256>}, {pipeline_mode = #tpu.pipeline_mode<synchronous>, transform_indices = @transform_10, window_bounds = array<i64: 1, 256>}, {pipeline_mode = #tpu.pipeline_mode<synchronous>, transform_indices = @transform_11, window_bounds = array<i64: 2, 16, 46>}, {pipeline_mode = #tpu.pipeline_mode<synchronous>, transform_indices = @transform_12, window_bounds = array<i64: 2, 256, 128>}, {pipeline_mode = #tpu.pipeline_mode<synchronous>, transform_indices = @transform_13, window_bounds = array<i64: 2, 8, 16>}, {pipeline_mode = #tpu.pipeline_mode<synchronous>, transform_indices = @transform_14, window_bounds = array<i64: 2, 128, 128>}, {pipeline_mode = #tpu.pipeline_mode<synchronous>, transform_indices = @transform_15, window_bounds = array<i64: 1, 128>}, {pipeline_mode = #tpu.pipeline_mode<synchronous>, transform_indices = @transform_16, window_bounds = array<i64: 128, 8>}, {pipeline_mode = #tpu.pipeline_mode<synchronous>, transform_indices = @transform_17, window_bounds = array<i64: 1, 8>}, {transform_indices = @transform_18, window_bounds = array<i64: 8, 8>}]} {
    %c0 = arith.constant 0 : index
    %c0_0 = arith.constant 0 : index
    %0 = vector.load %arg1[%c0, %c0_0] : memref<144x54xbf16, #tpu.memory_space<vmem>>, vector<144x54xbf16>
    %c0_1 = arith.constant 0 : index
    %c0_2 = arith.constant 0 : index
    %c0_3 = arith.constant 0 : index
    %1 = vector.load %arg2[%c0_1, %c0_2, %c0_3] : memref<3x54x256xbf16, #tpu.memory_space<vmem>>, vector<1x54x256xbf16>
    %2 = vector.shape_cast %1 : vector<1x54x256xbf16> to vector<54x256xbf16>
    %cst = arith.constant dense<0.000000e+00> : vector<144x256xf32>
    %3 = tpu.matmul %0, %2, %cst {dimension_numbers = #tpu.dot_dimension_numbers<[1], [0], [0], [1], [0, 0, 1, 1], [], []>} : vector<144x54xbf16>, vector<54x256xbf16>, vector<144x256xf32> -> vector<144x256xf32>
    %c1 = arith.constant 1 : index
    %c0_4 = arith.constant 0 : index
    %c0_5 = arith.constant 0 : index
    %4 = vector.load %arg2[%c1, %c0_4, %c0_5] : memref<3x54x256xbf16, #tpu.memory_space<vmem>>, vector<1x54x256xbf16>
    %5 = vector.shape_cast %4 : vector<1x54x256xbf16> to vector<54x256xbf16>
    %cst_6 = arith.constant dense<0.000000e+00> : vector<144x256xf32>
    %6 = tpu.matmul %0, %5, %cst_6 {dimension_numbers = #tpu.dot_dimension_numbers<[1], [0], [0], [1], [0, 0, 1, 1], [], []>} : vector<144x54xbf16>, vector<54x256xbf16>, vector<144x256xf32> -> vector<144x256xf32>
    %c2 = arith.constant 2 : index
    %c0_7 = arith.constant 0 : index
    %c0_8 = arith.constant 0 : index
    %7 = vector.load %arg2[%c2, %c0_7, %c0_8] : memref<3x54x256xbf16, #tpu.memory_space<vmem>>, vector<1x54x256xbf16>
    %8 = vector.shape_cast %7 : vector<1x54x256xbf16> to vector<54x256xbf16>
    %cst_9 = arith.constant dense<0.000000e+00> : vector<144x256xf32>
    %9 = tpu.matmul %0, %8, %cst_9 {dimension_numbers = #tpu.dot_dimension_numbers<[1], [0], [0], [1], [0, 0, 1, 1], [], []>} : vector<144x54xbf16>, vector<54x256xbf16>, vector<144x256xf32> -> vector<144x256xf32>
    %10 = vector.extract_strided_slice %3 {offsets = [0, 0], sizes = [142, 256], strides = [1, 1]} : vector<144x256xf32> to vector<142x256xf32>
    %11 = vector.extract_strided_slice %6 {offsets = [1, 0], sizes = [142, 256], strides = [1, 1]} : vector<144x256xf32> to vector<142x256xf32>
    %12 = arith.addf %10, %11 : vector<142x256xf32>
    %13 = vector.extract_strided_slice %9 {offsets = [2, 0], sizes = [142, 256], strides = [1, 1]} : vector<144x256xf32> to vector<142x256xf32>
    %14 = arith.addf %12, %13 : vector<142x256xf32>
    %c0_10 = arith.constant 0 : index
    %c0_11 = arith.constant 0 : index
    %15 = vector.load %arg3[%c0_10, %c0_11] : memref<1x256xf32, #tpu.memory_space<vmem>>, vector<1x256xf32>
    %16 = vector.broadcast %15 : vector<1x256xf32> to vector<142x256xf32>
    %17 = arith.addf %14, %16 : vector<142x256xf32>
    %cst_12 = arith.constant 0.000000e+00 : f32
    %18 = vector.broadcast %cst_12 : f32 to vector<142x256xf32>
    %19 = arith.maximumf %17, %18 : vector<142x256xf32>
    %20 = arith.truncf %19 : vector<142x256xf32> to vector<142x256xbf16>
    %c0_13 = arith.constant 0 : index
    %c0_14 = arith.constant 0 : index
    %c0_15 = arith.constant 0 : index
    %21 = vector.load %arg4[%c0_13, %c0_14, %c0_15] : memref<2x80x142xbf16, #tpu.memory_space<vmem>>, vector<1x80x142xbf16>
    %22 = vector.shape_cast %21 : vector<1x80x142xbf16> to vector<80x142xbf16>
    %cst_16 = arith.constant dense<0.000000e+00> : vector<80x256xf32>
    %23 = tpu.matmul %22, %20, %cst_16 {dimension_numbers = #tpu.dot_dimension_numbers<[1], [0], [0], [1], [0, 0, 1, 1], [], []>} : vector<80x142xbf16>, vector<142x256xbf16>, vector<80x256xf32> -> vector<80x256xf32>
    %c1_17 = arith.constant 1 : index
    %c0_18 = arith.constant 0 : index
    %c0_19 = arith.constant 0 : index
    %24 = vector.load %arg4[%c1_17, %c0_18, %c0_19] : memref<2x80x142xbf16, #tpu.memory_space<vmem>>, vector<1x80x142xbf16>
    %25 = vector.shape_cast %24 : vector<1x80x142xbf16> to vector<80x142xbf16>
    %cst_20 = arith.constant dense<0.000000e+00> : vector<80x256xf32>
    %26 = tpu.matmul %25, %20, %cst_20 {dimension_numbers = #tpu.dot_dimension_numbers<[1], [0], [0], [1], [0, 0, 1, 1], [], []>} : vector<80x142xbf16>, vector<142x256xbf16>, vector<80x256xf32> -> vector<80x256xf32>
    %27 = arith.maximumf %23, %26 : vector<80x256xf32>
    %28 = arith.truncf %27 : vector<80x256xf32> to vector<80x256xbf16>
    %c0_21 = arith.constant 0 : index
    %c0_22 = arith.constant 0 : index
    %c0_23 = arith.constant 0 : index
    %29 = vector.load %arg5[%c0_21, %c0_22, %c0_23] : memref<2x256x160xbf16, #tpu.memory_space<vmem>>, vector<1x256x160xbf16>
    %30 = vector.shape_cast %29 : vector<1x256x160xbf16> to vector<256x160xbf16>
    %cst_24 = arith.constant dense<0.000000e+00> : vector<80x160xf32>
    %31 = tpu.matmul %28, %30, %cst_24 {dimension_numbers = #tpu.dot_dimension_numbers<[1], [0], [0], [1], [0, 0, 1, 1], [], []>} : vector<80x256xbf16>, vector<256x160xbf16>, vector<80x160xf32> -> vector<80x160xf32>
    %c1_25 = arith.constant 1 : index
    %c0_26 = arith.constant 0 : index
    %c0_27 = arith.constant 0 : index
    %32 = vector.load %arg5[%c1_25, %c0_26, %c0_27] : memref<2x256x160xbf16, #tpu.memory_space<vmem>>, vector<1x256x160xbf16>
    %33 = vector.shape_cast %32 : vector<1x256x160xbf16> to vector<256x160xbf16>
    %cst_28 = arith.constant dense<0.000000e+00> : vector<80x160xf32>
    %34 = tpu.matmul %28, %33, %cst_28 {dimension_numbers = #tpu.dot_dimension_numbers<[1], [0], [0], [1], [0, 0, 1, 1], [], []>} : vector<80x256xbf16>, vector<256x160xbf16>, vector<80x160xf32> -> vector<80x160xf32>
    %35 = arith.maximumf %31, %34 : vector<80x160xf32>
    %36 = arith.truncf %35 : vector<80x160xf32> to vector<80x160xbf16>
    %c0_29 = arith.constant 0 : index
    %c0_30 = arith.constant 0 : index
    %c0_31 = arith.constant 0 : index
    %37 = vector.load %arg6[%c0_29, %c0_30, %c0_31] : memref<3x160x256xbf16, #tpu.memory_space<vmem>>, vector<1x160x256xbf16>
    %38 = vector.shape_cast %37 : vector<1x160x256xbf16> to vector<160x256xbf16>
    %cst_32 = arith.constant dense<0.000000e+00> : vector<80x256xf32>
    %39 = tpu.matmul %36, %38, %cst_32 {dimension_numbers = #tpu.dot_dimension_numbers<[1], [0], [0], [1], [0, 0, 1, 1], [], []>} : vector<80x160xbf16>, vector<160x256xbf16>, vector<80x256xf32> -> vector<80x256xf32>
    %c1_33 = arith.constant 1 : index
    %c0_34 = arith.constant 0 : index
    %c0_35 = arith.constant 0 : index
    %40 = vector.load %arg6[%c1_33, %c0_34, %c0_35] : memref<3x160x256xbf16, #tpu.memory_space<vmem>>, vector<1x160x256xbf16>
    %41 = vector.shape_cast %40 : vector<1x160x256xbf16> to vector<160x256xbf16>
    %cst_36 = arith.constant dense<0.000000e+00> : vector<80x256xf32>
    %42 = tpu.matmul %36, %41, %cst_36 {dimension_numbers = #tpu.dot_dimension_numbers<[1], [0], [0], [1], [0, 0, 1, 1], [], []>} : vector<80x160xbf16>, vector<160x256xbf16>, vector<80x256xf32> -> vector<80x256xf32>
    %c2_37 = arith.constant 2 : index
    %c0_38 = arith.constant 0 : index
    %c0_39 = arith.constant 0 : index
    %43 = vector.load %arg6[%c2_37, %c0_38, %c0_39] : memref<3x160x256xbf16, #tpu.memory_space<vmem>>, vector<1x160x256xbf16>
    %44 = vector.shape_cast %43 : vector<1x160x256xbf16> to vector<160x256xbf16>
    %cst_40 = arith.constant dense<0.000000e+00> : vector<80x256xf32>
    %45 = tpu.matmul %36, %44, %cst_40 {dimension_numbers = #tpu.dot_dimension_numbers<[1], [0], [0], [1], [0, 0, 1, 1], [], []>} : vector<80x160xbf16>, vector<160x256xbf16>, vector<80x256xf32> -> vector<80x256xf32>
    %46 = vector.extract_strided_slice %39 {offsets = [0, 0], sizes = [78, 256], strides = [1, 1]} : vector<80x256xf32> to vector<78x256xf32>
    %47 = vector.extract_strided_slice %42 {offsets = [1, 0], sizes = [78, 256], strides = [1, 1]} : vector<80x256xf32> to vector<78x256xf32>
    %48 = arith.addf %46, %47 : vector<78x256xf32>
    %49 = vector.extract_strided_slice %45 {offsets = [2, 0], sizes = [78, 256], strides = [1, 1]} : vector<80x256xf32> to vector<78x256xf32>
    %50 = arith.addf %48, %49 : vector<78x256xf32>
    %c0_41 = arith.constant 0 : index
    %c0_42 = arith.constant 0 : index
    %51 = vector.load %arg7[%c0_41, %c0_42] : memref<1x256xf32, #tpu.memory_space<vmem>>, vector<1x256xf32>
    %52 = vector.broadcast %51 : vector<1x256xf32> to vector<78x256xf32>
    %53 = arith.addf %50, %52 : vector<78x256xf32>
    %cst_43 = arith.constant 0.000000e+00 : f32
    %54 = vector.broadcast %cst_43 : f32 to vector<78x256xf32>
    %55 = arith.maximumf %53, %54 : vector<78x256xf32>
    %56 = arith.truncf %55 : vector<78x256xf32> to vector<78x256xbf16>
    %c0_44 = arith.constant 0 : index
    %c0_45 = arith.constant 0 : index
    %c0_46 = arith.constant 0 : index
    %57 = vector.load %arg8[%c0_44, %c0_45, %c0_46] : memref<2x48x78xbf16, #tpu.memory_space<vmem>>, vector<1x48x78xbf16>
    %58 = vector.shape_cast %57 : vector<1x48x78xbf16> to vector<48x78xbf16>
    %cst_47 = arith.constant dense<0.000000e+00> : vector<48x256xf32>
    %59 = tpu.matmul %58, %56, %cst_47 {dimension_numbers = #tpu.dot_dimension_numbers<[1], [0], [0], [1], [0, 0, 1, 1], [], []>} : vector<48x78xbf16>, vector<78x256xbf16>, vector<48x256xf32> -> vector<48x256xf32>
    %c1_48 = arith.constant 1 : index
    %c0_49 = arith.constant 0 : index
    %c0_50 = arith.constant 0 : index
    %60 = vector.load %arg8[%c1_48, %c0_49, %c0_50] : memref<2x48x78xbf16, #tpu.memory_space<vmem>>, vector<1x48x78xbf16>
    %61 = vector.shape_cast %60 : vector<1x48x78xbf16> to vector<48x78xbf16>
    %cst_51 = arith.constant dense<0.000000e+00> : vector<48x256xf32>
    %62 = tpu.matmul %61, %56, %cst_51 {dimension_numbers = #tpu.dot_dimension_numbers<[1], [0], [0], [1], [0, 0, 1, 1], [], []>} : vector<48x78xbf16>, vector<78x256xbf16>, vector<48x256xf32> -> vector<48x256xf32>
    %63 = arith.maximumf %59, %62 : vector<48x256xf32>
    %64 = arith.truncf %63 : vector<48x256xf32> to vector<48x256xbf16>
    %c0_52 = arith.constant 0 : index
    %c0_53 = arith.constant 0 : index
    %c0_54 = arith.constant 0 : index
    %65 = vector.load %arg9[%c0_52, %c0_53, %c0_54] : memref<2x256x192xbf16, #tpu.memory_space<vmem>>, vector<1x256x192xbf16>
    %66 = vector.shape_cast %65 : vector<1x256x192xbf16> to vector<256x192xbf16>
    %cst_55 = arith.constant dense<0.000000e+00> : vector<48x192xf32>
    %67 = tpu.matmul %64, %66, %cst_55 {dimension_numbers = #tpu.dot_dimension_numbers<[1], [0], [0], [1], [0, 0, 1, 1], [], []>} : vector<48x256xbf16>, vector<256x192xbf16>, vector<48x192xf32> -> vector<48x192xf32>
    %c1_56 = arith.constant 1 : index
    %c0_57 = arith.constant 0 : index
    %c0_58 = arith.constant 0 : index
    %68 = vector.load %arg9[%c1_56, %c0_57, %c0_58] : memref<2x256x192xbf16, #tpu.memory_space<vmem>>, vector<1x256x192xbf16>
    %69 = vector.shape_cast %68 : vector<1x256x192xbf16> to vector<256x192xbf16>
    %cst_59 = arith.constant dense<0.000000e+00> : vector<48x192xf32>
    %70 = tpu.matmul %64, %69, %cst_59 {dimension_numbers = #tpu.dot_dimension_numbers<[1], [0], [0], [1], [0, 0, 1, 1], [], []>} : vector<48x256xbf16>, vector<256x192xbf16>, vector<48x192xf32> -> vector<48x192xf32>
    %71 = arith.maximumf %67, %70 : vector<48x192xf32>
    %72 = arith.truncf %71 : vector<48x192xf32> to vector<48x192xbf16>
    %c0_60 = arith.constant 0 : index
    %c0_61 = arith.constant 0 : index
    %c0_62 = arith.constant 0 : index
    %73 = vector.load %arg10[%c0_60, %c0_61, %c0_62] : memref<3x192x256xbf16, #tpu.memory_space<vmem>>, vector<1x192x256xbf16>
    %74 = vector.shape_cast %73 : vector<1x192x256xbf16> to vector<192x256xbf16>
    %cst_63 = arith.constant dense<0.000000e+00> : vector<48x256xf32>
    %75 = tpu.matmul %72, %74, %cst_63 {dimension_numbers = #tpu.dot_dimension_numbers<[1], [0], [0], [1], [0, 0, 1, 1], [], []>} : vector<48x192xbf16>, vector<192x256xbf16>, vector<48x256xf32> -> vector<48x256xf32>
    %c1_64 = arith.constant 1 : index
    %c0_65 = arith.constant 0 : index
    %c0_66 = arith.constant 0 : index
    %76 = vector.load %arg10[%c1_64, %c0_65, %c0_66] : memref<3x192x256xbf16, #tpu.memory_space<vmem>>, vector<1x192x256xbf16>
    %77 = vector.shape_cast %76 : vector<1x192x256xbf16> to vector<192x256xbf16>
    %cst_67 = arith.constant dense<0.000000e+00> : vector<48x256xf32>
    %78 = tpu.matmul %72, %77, %cst_67 {dimension_numbers = #tpu.dot_dimension_numbers<[1], [0], [0], [1], [0, 0, 1, 1], [], []>} : vector<48x192xbf16>, vector<192x256xbf16>, vector<48x256xf32> -> vector<48x256xf32>
    %c2_68 = arith.constant 2 : index
    %c0_69 = arith.constant 0 : index
    %c0_70 = arith.constant 0 : index
    %79 = vector.load %arg10[%c2_68, %c0_69, %c0_70] : memref<3x192x256xbf16, #tpu.memory_space<vmem>>, vector<1x192x256xbf16>
    %80 = vector.shape_cast %79 : vector<1x192x256xbf16> to vector<192x256xbf16>
    %cst_71 = arith.constant dense<0.000000e+00> : vector<48x256xf32>
    %81 = tpu.matmul %72, %80, %cst_71 {dimension_numbers = #tpu.dot_dimension_numbers<[1], [0], [0], [1], [0, 0, 1, 1], [], []>} : vector<48x192xbf16>, vector<192x256xbf16>, vector<48x256xf32> -> vector<48x256xf32>
    %82 = vector.extract_strided_slice %75 {offsets = [0, 0], sizes = [46, 256], strides = [1, 1]} : vector<48x256xf32> to vector<46x256xf32>
    %83 = vector.extract_strided_slice %78 {offsets = [1, 0], sizes = [46, 256], strides = [1, 1]} : vector<48x256xf32> to vector<46x256xf32>
    %84 = arith.addf %82, %83 : vector<46x256xf32>
    %85 = vector.extract_strided_slice %81 {offsets = [2, 0], sizes = [46, 256], strides = [1, 1]} : vector<48x256xf32> to vector<46x256xf32>
    %86 = arith.addf %84, %85 : vector<46x256xf32>
    %c0_72 = arith.constant 0 : index
    %c0_73 = arith.constant 0 : index
    %87 = vector.load %arg11[%c0_72, %c0_73] : memref<1x256xf32, #tpu.memory_space<vmem>>, vector<1x256xf32>
    %88 = vector.broadcast %87 : vector<1x256xf32> to vector<46x256xf32>
    %89 = arith.addf %86, %88 : vector<46x256xf32>
    %cst_74 = arith.constant 0.000000e+00 : f32
    %90 = vector.broadcast %cst_74 : f32 to vector<46x256xf32>
    %91 = arith.maximumf %89, %90 : vector<46x256xf32>
    %92 = arith.truncf %91 : vector<46x256xf32> to vector<46x256xbf16>
    %c0_75 = arith.constant 0 : index
    %c0_76 = arith.constant 0 : index
    %c0_77 = arith.constant 0 : index
    %93 = vector.load %arg12[%c0_75, %c0_76, %c0_77] : memref<2x16x46xbf16, #tpu.memory_space<vmem>>, vector<1x16x46xbf16>
    %94 = vector.shape_cast %93 : vector<1x16x46xbf16> to vector<16x46xbf16>
    %cst_78 = arith.constant dense<0.000000e+00> : vector<16x256xf32>
    %95 = tpu.matmul %94, %92, %cst_78 {dimension_numbers = #tpu.dot_dimension_numbers<[1], [0], [0], [1], [0, 0, 1, 1], [], []>} : vector<16x46xbf16>, vector<46x256xbf16>, vector<16x256xf32> -> vector<16x256xf32>
    %c1_79 = arith.constant 1 : index
    %c0_80 = arith.constant 0 : index
    %c0_81 = arith.constant 0 : index
    %96 = vector.load %arg12[%c1_79, %c0_80, %c0_81] : memref<2x16x46xbf16, #tpu.memory_space<vmem>>, vector<1x16x46xbf16>
    %97 = vector.shape_cast %96 : vector<1x16x46xbf16> to vector<16x46xbf16>
    %cst_82 = arith.constant dense<0.000000e+00> : vector<16x256xf32>
    %98 = tpu.matmul %97, %92, %cst_82 {dimension_numbers = #tpu.dot_dimension_numbers<[1], [0], [0], [1], [0, 0, 1, 1], [], []>} : vector<16x46xbf16>, vector<46x256xbf16>, vector<16x256xf32> -> vector<16x256xf32>
    %99 = arith.maximumf %95, %98 : vector<16x256xf32>
    %100 = arith.truncf %99 : vector<16x256xf32> to vector<16x256xbf16>
    %c0_83 = arith.constant 0 : index
    %c0_84 = arith.constant 0 : index
    %c0_85 = arith.constant 0 : index
    %101 = vector.load %arg13[%c0_83, %c0_84, %c0_85] : memref<2x256x128xbf16, #tpu.memory_space<vmem>>, vector<1x256x128xbf16>
    %102 = vector.shape_cast %101 : vector<1x256x128xbf16> to vector<256x128xbf16>
    %cst_86 = arith.constant dense<0.000000e+00> : vector<16x128xf32>
    %103 = tpu.matmul %100, %102, %cst_86 {dimension_numbers = #tpu.dot_dimension_numbers<[1], [0], [0], [1], [0, 0, 1, 1], [], []>} : vector<16x256xbf16>, vector<256x128xbf16>, vector<16x128xf32> -> vector<16x128xf32>
    %c1_87 = arith.constant 1 : index
    %c0_88 = arith.constant 0 : index
    %c0_89 = arith.constant 0 : index
    %104 = vector.load %arg13[%c1_87, %c0_88, %c0_89] : memref<2x256x128xbf16, #tpu.memory_space<vmem>>, vector<1x256x128xbf16>
    %105 = vector.shape_cast %104 : vector<1x256x128xbf16> to vector<256x128xbf16>
    %cst_90 = arith.constant dense<0.000000e+00> : vector<16x128xf32>
    %106 = tpu.matmul %100, %105, %cst_90 {dimension_numbers = #tpu.dot_dimension_numbers<[1], [0], [0], [1], [0, 0, 1, 1], [], []>} : vector<16x256xbf16>, vector<256x128xbf16>, vector<16x128xf32> -> vector<16x128xf32>
    %107 = arith.maximumf %103, %106 : vector<16x128xf32>
    %108 = arith.truncf %107 : vector<16x128xf32> to vector<16x128xbf16>
    %c0_91 = arith.constant 0 : index
    %c0_92 = arith.constant 0 : index
    %c0_93 = arith.constant 0 : index
    %109 = vector.load %arg14[%c0_91, %c0_92, %c0_93] : memref<2x8x16xbf16, #tpu.memory_space<vmem>>, vector<1x8x16xbf16>
    %110 = vector.shape_cast %109 : vector<1x8x16xbf16> to vector<8x16xbf16>
    %cst_94 = arith.constant dense<0.000000e+00> : vector<8x128xf32>
    %111 = tpu.matmul %110, %108, %cst_94 {dimension_numbers = #tpu.dot_dimension_numbers<[1], [0], [0], [1], [0, 0, 1, 1], [], []>} : vector<8x16xbf16>, vector<16x128xbf16>, vector<8x128xf32> -> vector<8x128xf32>
    %112 = arith.truncf %111 : vector<8x128xf32> to vector<8x128xbf16>
    %c0_95 = arith.constant 0 : index
    %c0_96 = arith.constant 0 : index
    %c0_97 = arith.constant 0 : index
    %113 = vector.load %arg15[%c0_95, %c0_96, %c0_97] : memref<2x128x128xbf16, #tpu.memory_space<vmem>>, vector<1x128x128xbf16>
    %114 = vector.shape_cast %113 : vector<1x128x128xbf16> to vector<128x128xbf16>
    %cst_98 = arith.constant dense<0.000000e+00> : vector<8x128xf32>
    %115 = tpu.matmul %112, %114, %cst_98 {dimension_numbers = #tpu.dot_dimension_numbers<[1], [0], [0], [1], [0, 0, 1, 1], [], []>} : vector<8x128xbf16>, vector<128x128xbf16>, vector<8x128xf32> -> vector<8x128xf32>
    %c1_99 = arith.constant 1 : index
    %c0_100 = arith.constant 0 : index
    %c0_101 = arith.constant 0 : index
    %116 = vector.load %arg14[%c1_99, %c0_100, %c0_101] : memref<2x8x16xbf16, #tpu.memory_space<vmem>>, vector<1x8x16xbf16>
    %117 = vector.shape_cast %116 : vector<1x8x16xbf16> to vector<8x16xbf16>
    %cst_102 = arith.constant dense<0.000000e+00> : vector<8x128xf32>
    %118 = tpu.matmul %117, %108, %cst_102 {dimension_numbers = #tpu.dot_dimension_numbers<[1], [0], [0], [1], [0, 0, 1, 1], [], []>} : vector<8x16xbf16>, vector<16x128xbf16>, vector<8x128xf32> -> vector<8x128xf32>
    %119 = arith.truncf %118 : vector<8x128xf32> to vector<8x128xbf16>
    %c1_103 = arith.constant 1 : index
    %c0_104 = arith.constant 0 : index
    %c0_105 = arith.constant 0 : index
    %120 = vector.load %arg15[%c1_103, %c0_104, %c0_105] : memref<2x128x128xbf16, #tpu.memory_space<vmem>>, vector<1x128x128xbf16>
    %121 = vector.shape_cast %120 : vector<1x128x128xbf16> to vector<128x128xbf16>
    %cst_106 = arith.constant dense<0.000000e+00> : vector<8x128xf32>
    %122 = tpu.matmul %119, %121, %cst_106 {dimension_numbers = #tpu.dot_dimension_numbers<[1], [0], [0], [1], [0, 0, 1, 1], [], []>} : vector<8x128xbf16>, vector<128x128xbf16>, vector<8x128xf32> -> vector<8x128xf32>
    %123 = arith.addf %115, %122 : vector<8x128xf32>
    %c0_107 = arith.constant 0 : index
    %c0_108 = arith.constant 0 : index
    %124 = vector.load %arg16[%c0_107, %c0_108] : memref<1x128xf32, #tpu.memory_space<vmem>>, vector<1x128xf32>
    %125 = vector.broadcast %124 : vector<1x128xf32> to vector<8x128xf32>
    %126 = arith.addf %123, %125 : vector<8x128xf32>
    %cst_109 = arith.constant 0.000000e+00 : f32
    %127 = vector.broadcast %cst_109 : f32 to vector<8x128xf32>
    %128 = arith.maximumf %126, %127 : vector<8x128xf32>
    %129 = arith.truncf %128 : vector<8x128xf32> to vector<8x128xbf16>
    %c0_110 = arith.constant 0 : index
    %c0_111 = arith.constant 0 : index
    %130 = vector.load %arg17[%c0_110, %c0_111] : memref<128x8xbf16, #tpu.memory_space<vmem>>, vector<128x8xbf16>
    %cst_112 = arith.constant dense<0.000000e+00> : vector<8x8xf32>
    %131 = tpu.matmul %129, %130, %cst_112 {dimension_numbers = #tpu.dot_dimension_numbers<[1], [0], [0], [1], [0, 0, 1, 1], [], []>} : vector<8x128xbf16>, vector<128x8xbf16>, vector<8x8xf32> -> vector<8x8xf32>
    %c0_113 = arith.constant 0 : index
    %c0_114 = arith.constant 0 : index
    %132 = vector.load %arg18[%c0_113, %c0_114] : memref<1x8xf32, #tpu.memory_space<vmem>>, vector<1x8xf32>
    %133 = vector.broadcast %132 : vector<1x8xf32> to vector<8x8xf32>
    %134 = arith.addf %131, %133 : vector<8x8xf32>
    %cst_115 = arith.constant 0.000000e+00 : f32
    %135 = vector.broadcast %cst_115 : f32 to vector<8x8xf32>
    %136 = arith.subf %135, %134 : vector<8x8xf32>
    %137 = math.exp %136 : vector<8x8xf32>
    %cst_116 = arith.constant 1.000000e+00 : f32
    %138 = vector.broadcast %cst_116 : f32 to vector<8x8xf32>
    %139 = arith.addf %138, %137 : vector<8x8xf32>
    %cst_117 = arith.constant 1.000000e+00 : f32
    %140 = vector.broadcast %cst_117 : f32 to vector<8x8xf32>
    %141 = arith.divf %140, %139 : vector<8x8xf32>
    %c0_118 = arith.constant 0 : index
    %c0_119 = arith.constant 0 : index
    %142 = vector.load %arg19[%c0_118, %c0_119] : memref<8x8xf32, #tpu.memory_space<vmem>>, vector<8x8xf32>
    tpu.vector_store %arg19[%c0_118, %c0_119], %141 {strides = array<i32>} : memref<8x8xf32, #tpu.memory_space<vmem>>, vector<8x8xf32>,
    return
  }
  func.func @transform_0(%arg0: i32) -> (i32, i32) {
    %c0_i32 = arith.constant 0 : i32
    %c0_i32_0 = arith.constant 0 : i32
    return %arg0, %c0_i32 : i32, i32
  }
  func.func @transform_1(%arg0: i32) -> (i32, i32, i32) {
    %c0_i32 = arith.constant 0 : i32
    %c0_i32_0 = arith.constant 0 : i32
    %c0_i32_1 = arith.constant 0 : i32
    %c0_i32_2 = arith.constant 0 : i32
    return %c0_i32, %c0_i32_0, %c0_i32_1 : i32, i32, i32
  }
  func.func @transform_2(%arg0: i32) -> (i32, i32) {
    %c0_i32 = arith.constant 0 : i32
    %c0_i32_0 = arith.constant 0 : i32
    %c0_i32_1 = arith.constant 0 : i32
    return %c0_i32, %c0_i32_0 : i32, i32
  }
  func.func @transform_3(%arg0: i32) -> (i32, i32, i32) {
    %c0_i32 = arith.constant 0 : i32
    %c0_i32_0 = arith.constant 0 : i32
    %c0_i32_1 = arith.constant 0 : i32
    %c0_i32_2 = arith.constant 0 : i32
    return %c0_i32, %c0_i32_0, %c0_i32_1 : i32, i32, i32
  }
  func.func @transform_4(%arg0: i32) -> (i32, i32, i32) {
    %c0_i32 = arith.constant 0 : i32
    %c0_i32_0 = arith.constant 0 : i32
    %c0_i32_1 = arith.constant 0 : i32
    %c0_i32_2 = arith.constant 0 : i32
    return %c0_i32, %c0_i32_0, %c0_i32_1 : i32, i32, i32
  }
  func.func @transform_5(%arg0: i32) -> (i32, i32, i32) {
    %c0_i32 = arith.constant 0 : i32
    %c0_i32_0 = arith.constant 0 : i32
    %c0_i32_1 = arith.constant 0 : i32
    %c0_i32_2 = arith.constant 0 : i32
    return %c0_i32, %c0_i32_0, %c0_i32_1 : i32, i32, i32
  }
  func.func @transform_6(%arg0: i32) -> (i32, i32) {
    %c0_i32 = arith.constant 0 : i32
    %c0_i32_0 = arith.constant 0 : i32
    %c0_i32_1 = arith.constant 0 : i32
    return %c0_i32, %c0_i32_0 : i32, i32
  }
  func.func @transform_7(%arg0: i32) -> (i32, i32, i32) {
    %c0_i32 = arith.constant 0 : i32
    %c0_i32_0 = arith.constant 0 : i32
    %c0_i32_1 = arith.constant 0 : i32
    %c0_i32_2 = arith.constant 0 : i32
    return %c0_i32, %c0_i32_0, %c0_i32_1 : i32, i32, i32
  }
  func.func @transform_8(%arg0: i32) -> (i32, i32, i32) {
    %c0_i32 = arith.constant 0 : i32
    %c0_i32_0 = arith.constant 0 : i32
    %c0_i32_1 = arith.constant 0 : i32
    %c0_i32_2 = arith.constant 0 : i32
    return %c0_i32, %c0_i32_0, %c0_i32_1 : i32, i32, i32
  }
  func.func @transform_9(%arg0: i32) -> (i32, i32, i32) {
    %c0_i32 = arith.constant 0 : i32
    %c0_i32_0 = arith.constant 0 : i32
    %c0_i32_1 = arith.constant 0 : i32
    %c0_i32_2 = arith.constant 0 : i32
    return %c0_i32, %c0_i32_0, %c0_i32_1 : i32, i32, i32
  }
  func.func @transform_10(%arg0: i32) -> (i32, i32) {
    %c0_i32 = arith.constant 0 : i32
    %c0_i32_0 = arith.constant 0 : i32
    %c0_i32_1 = arith.constant 0 : i32
    return %c0_i32, %c0_i32_0 : i32, i32
  }
  func.func @transform_11(%arg0: i32) -> (i32, i32, i32) {
    %c0_i32 = arith.constant 0 : i32
    %c0_i32_0 = arith.constant 0 : i32
    %c0_i32_1 = arith.constant 0 : i32
    %c0_i32_2 = arith.constant 0 : i32
    return %c0_i32, %c0_i32_0, %c0_i32_1 : i32, i32, i32
  }
  func.func @transform_12(%arg0: i32) -> (i32, i32, i32) {
    %c0_i32 = arith.constant 0 : i32
    %c0_i32_0 = arith.constant 0 : i32
    %c0_i32_1 = arith.constant 0 : i32
    %c0_i32_2 = arith.constant 0 : i32
    return %c0_i32, %c0_i32_0, %c0_i32_1 : i32, i32, i32
  }
  func.func @transform_13(%arg0: i32) -> (i32, i32, i32) {
    %c0_i32 = arith.constant 0 : i32
    %c0_i32_0 = arith.constant 0 : i32
    %c0_i32_1 = arith.constant 0 : i32
    %c0_i32_2 = arith.constant 0 : i32
    return %c0_i32, %c0_i32_0, %c0_i32_1 : i32, i32, i32
  }
  func.func @transform_14(%arg0: i32) -> (i32, i32, i32) {
    %c0_i32 = arith.constant 0 : i32
    %c0_i32_0 = arith.constant 0 : i32
    %c0_i32_1 = arith.constant 0 : i32
    %c0_i32_2 = arith.constant 0 : i32
    return %c0_i32, %c0_i32_0, %c0_i32_1 : i32, i32, i32
  }
  func.func @transform_15(%arg0: i32) -> (i32, i32) {
    %c0_i32 = arith.constant 0 : i32
    %c0_i32_0 = arith.constant 0 : i32
    %c0_i32_1 = arith.constant 0 : i32
    return %c0_i32, %c0_i32_0 : i32, i32
  }
  func.func @transform_16(%arg0: i32) -> (i32, i32) {
    %c0_i32 = arith.constant 0 : i32
    %c0_i32_0 = arith.constant 0 : i32
    %c0_i32_1 = arith.constant 0 : i32
    return %c0_i32, %c0_i32_0 : i32, i32
  }
  func.func @transform_17(%arg0: i32) -> (i32, i32) {
    %c0_i32 = arith.constant 0 : i32
    %c0_i32_0 = arith.constant 0 : i32
    %c0_i32_1 = arith.constant 0 : i32
    return %c0_i32, %c0_i32_0 : i32, i32
  }
  func.func @transform_18(%arg0: i32) -> (i32, i32) {
    %c0_i32 = arith.constant 0 : i32
    %c0_i32_0 = arith.constant 0 : i32
    return %arg0, %c0_i32 : i32, i32
  }
}

</mosaic_0001>

<bundles_post_ra>
// kernel: tpu_custom_call.1
= control target key start
LH: loop header
LB: loop body
LE: loop exit
PB: predicated region body
PF: predicated region fallthrough
CT: control target
= control target key end

     0   :  { %s9383_s0 = inlined_call_operand.vmem [shape: bf16[288,54], index: 0, kind: input, shape index: {}]   ;;  %s9384_s1 = inlined_call_operand.vmem [shape: bf16[3,54,256], index: 1, kind: input, shape index: {}]   ;;  %s9385_s2 = inlined_call_operand.vmem [shape: f32[1,256], index: 2, kind: input, shape index: {}]   ;;  %s9386_s3 = inlined_call_operand.vmem [shape: bf16[2,80,142], index: 3, kind: input, shape index: {}]   ;;  %s9387_s4 = inlined_call_operand.vmem [shape: bf16[2,256,160], index: 4, kind: input, shape index: {}]   ;;  %s9388_s5 = inlined_call_operand.vmem [shape: bf16[3,160,256], index: 5, kind: input, shape index: {}]   ;;  %s9389_s6 = inlined_call_operand.vmem [shape: f32[1,256], index: 6, kind: input, shape index: {}]   ;;  %s9390_s7 = inlined_call_operand.hbm [shape: bf16[2,48,78], index: 7, kind: input, shape index: {}]   ;;  %s9391_s8 = inlined_call_operand.vmem [shape: bf16[2,256,192], index: 8, kind: input, shape index: {}]   ;;  %s9392_s9 = inlined_call_operand.vmem [shape: bf16[3,192,256], index: 9, kind: input, shape index: {}]   ;;  %s9393_s10 = inlined_call_operand.vmem [shape: f32[1,256], index: 10, kind: input, shape index: {}]   ;;  %s9394_s11 = inlined_call_operand.vmem [shape: bf16[2,16,46], index: 11, kind: input, shape index: {}]   ;;  %s9395_s12 = inlined_call_operand.vmem [shape: bf16[2,256,128], index: 12, kind: input, shape index: {}]   ;;  %s9396_s13 = inlined_call_operand.vmem [shape: bf16[2,8,16], index: 13, kind: input, shape index: {}]   ;;  %s9397_s14 = inlined_call_operand.vmem [shape: bf16[2,128,128], index: 14, kind: input, shape index: {}]   ;;  %s9398_s15 = inlined_call_operand.vmem [shape: f32[1,128], index: 15, kind: input, shape index: {}]   ;;  %s9399_s16 = inlined_call_operand.vmem [shape: bf16[128,8], index: 16, kind: input, shape index: {}]   ;;  %s9400_s17 = inlined_call_operand.vmem [shape: f32[1,8], index: 17, kind: input, shape index: {}]   ;;  %s9401_s18 = inlined_call_operand.vmem [shape: f32[16,8], index: 18, kind: output, shape index: {}]  }
   0x1   :  { %9405 = sst [smem:[#allocation5_spill]] %s9383_s0 }
   0x2   :  { %9406 = sst [smem:[#allocation6_spill]] %s9384_s1 }
   0x3   :  { %9407 = sst [smem:[#allocation7_spill]] %s9385_s2 }
   0x4   :  { %9408 = sst [smem:[#allocation8_spill]] %s9390_s7 }
   0x5   :  { %23 = vsyncpa [#allocation3], 0  ;;  %s7517_s27 = smov 0  }
   0x6 LB: > { %s7523_s28 = sadd.s32 4294967295, %s7414_s27   ;;  %p5960_p0 = scmp.ge.s32.totalorder %s7414_s27, 1  ;;  %s7414_s27 = sphi %s7517_s27, %s29_s27  }
   0x7   : > { %p443_p1 = scmp.lt.s32.totalorder %s7414_s27, 3  ;;  %s7416_s29 = smov [#allocation2]  }
   0x8   : > { %s473_s30 = sshll.u32 %s7416_s29, 4  ;;  %p9403_p3 = scmp.eq.s32.totalorder %s7523_s28, 0  ;;  %s474_s30 = int_to_ptr.vmem [resolvable:$true] %s473_s30 }
   0x9   : > { %p7527_p2 = pnand %p5960_p0, %p443_p1  ;;  %s9411_s7 = sld [smem:[#allocation8_spill]] }
   0xb   : > { %s9409_s0 = scalar_select %p7527_p2, 1, 0 }
   0xc   : > { %p6826_p4 = pneg %p7527_p2 }
   0xe   : > { %p7536_p5 = pnand %p9403_p3, %p6826_p4 }
   0xf   : > { %s7376_s21 = scalar_lea.hbm %s9411_s7, 768 }
  0x10   : > { %p7377_p6 = scmp.ne.s32.totalorder %s9411_s7, %s7376_s21  ;;  %p7378_p7 = pneg %p7536_p5 }
  0x11   : > { %p7383_p10 = scmp.lt.u32.totalorder %s7376_s21, %s9411_s7 }
  0x12   : > { %p7379_p8 = pnand %p7378_p7, %p7377_p6 }
  0x14   : > { %p7380_p9 = pneg %p7379_p8 }
  0x16   : > { %p7385_p11 = pnand %p7383_p10, %p7380_p9 }
  0x18   : > { %7388 = shalt.err (!%p7385_p11)
}
  0x19   : > { %s7389_s25 = scalar_lea.vmem %s474_s30, 768  ;;  %p7397_p1 = scmp.lt.s32.totalorder %s474_s30, %s474_s30 }
  0x1a   : > { %p7390_p12 = scmp.ne.s32.totalorder %s474_s30, %s7389_s25  ;;  %p7398_p4 = scmp.lt.s32.totalorder %s7389_s25, %s7389_s25 }
  0x1c   : > { %p7392_p13 = pnand %p7390_p12, %p7378_p7  ;;  %p7399_p3 = por %p7398_p4, %p7397_p1 }
  0x1e   : > { %p7393_p0 = pneg %p7392_p13 }
  0x20   : > { %p7400_p2 = pnand %p7399_p3, %p7393_p0 }
  0x22   : > { %7403 = shalt.err (!%p7400_p2)
}
  0x23   : > { %s7417_s26 = smov 64   ;;  %s7418_s29 = smov 4  }
  0x24   : > { %6829 = dma.hbm_to_vmem [thread:$0]  (!%p7536_p5), %s9411_s7, 768, %s474_s30, [#allocation3], %s7417_s26, %s7417_s26, %s7418_s29  }
  0x25   : > { %p9412_p6 = scmp.ne.s32.totalorder %s9409_s0, 0 }
  0x26   : > { %p9413_p8 = scmp.eq.s32.totalorder (!%p9412_p6), %s7523_s28, 0 }
  0x27   : > { %528 = sbr.rel (%p9412_p6) target bundleno = 3086 (0xc0e), region = 92 }
  0x2e   : > { %7409 = dma.done.wait (%p9413_p8), [#allocation3], 768   ;;  %p9414_p7 = pmov %p9413_p8 }
  0x2f   : > { %s581_s21 = smul.u32 18, %s7523_s28  ;;  %v7419_v0 = vmov 0   ;;  %s9415_s30 = sld [smem:[#allocation6_spill]]  ;;  %vm725_vm0 = vcmask 1042432   ;;  %vm697_vm1 = vcmask 441344   ;;  %vm1235_vm2 = vcmask 1046528  }
  0x30   : > { %7411 = vsyncadd (%p9414_p7), [#allocation3], 4294966528  ;;  %764 = vmatprep.mubr.bf16.mxu0 %v7419_v0  ;;  %936 = vmatprep.mubr.bf16.mxu1 %v7419_v0  ;;  %s9416_s24 = sld [smem:[#allocation5_spill]]  ;;  %vm1714_vm3 = vcmask 113664   ;;  %vm1414_vm4 = vcmask 1045504   ;;  %s9417_s0 = sld [smem:[#allocation7_spill]] }
  0x31   : > { %p582_p2 = scmp.lt.s32.totalorder %s581_s21, 35  ;;  %vm2704_vm5 = vcmask 261120   ;;  %vm3490_vm6 = vcmask 637952   ;;  %vm4354_vm7 = vcmask 523264   ;;  %vm5008_vm8 = vcmask 375808   ;;  %p587_p3 = scmp.lt.s32.totalorder %s7523_s28, 1 }
  0x32   : > { %vm7421_vm9 = vmmov 0   ;;  %vm5464_vm10 = vcmask 130048   ;;  %vm5891_vm11 = vcmask 64512  }
  0x33   : > { %s9419_s21 = smov (!%p582_p2, %s581_s21), 35  ;;  %s9421_s28 = smov (!%p587_p3, %s7523_s28), 1 }
  0x34   : > { %s5965_s2 = sshll.u32 %s9419_s21, 2  ;;  %s5966_s22 = sshll.u32 %s9421_s28, 3 }
  0x35   : > { %v6846_v1 = vld [vmem:[%s9415_s30 + $0x4] ss:$8 sps:$4 sm:$0xff]   ;;  %v6850_v3 = vld [vmem:[%s9415_s30] ss:$8 sps:$4 sm:$0xff]   ;;  %v6852_v5 = vld [vmem:[%s9415_s30 + $0x14] ss:$8 sps:$4 sm:$0xff]   ;;  %s590_s23 = scalar_lea.vmem %s9401_s18, %s5966_s22 }
  0x36   : > { %v6848_v2 = vld [vmem:[%s9415_s30 + $0x3c] ss:$8 sps:$4 sm:$0xff]   ;;  %732 = vmatprep.subr.bf16.mxu0 %v6846_v1  ;;  %v6851_v4 = vld [vmem:[%s9415_s30 + $0x38] ss:$8 sps:$4 sm:$0xff]   ;;  %v6854_v6 = vld [vmem:[%s9415_s30 + $0x4c] ss:$8 sps:$4 sm:$0xff]   ;;  %s7604_s7 = scalar_lea.vmem %s9416_s24, %s5965_s2 }
  0x37   : > { %904 = vmatprep.subr.bf16.mxu1 %v6848_v2  ;;  %733 = vmatpush1.bf16.msra.mxu0 %v6850_v3  ;;  %v6856_v7 = vld [vmem:[%s9415_s30 + $0x10] ss:$8 sps:$4 sm:$0xff]   ;;  %v6858_v9 = vld [vmem:[%s9415_s30 + $0x24] ss:$8 sps:$4 sm:$0xff]   ;;  %v6862_v11 = vld [vmem:[%s9415_s30 + $0x20] ss:$8 sps:$4 sm:$0xff]  }
  0x38   : > { %905 = vmatpush1.bf16.msra.mxu1 %v6851_v4  ;;  %734 = vmatprep.subr.bf16.mxu0 %v6852_v5  ;;  %v6857_v8 = vld [vmem:[%s9415_s30 + $0x48] ss:$8 sps:$4 sm:$0xff]   ;;  %v6860_v10 = vld [vmem:[%s9415_s30 + $0x5c] ss:$8 sps:$4 sm:$0xff]   ;;  %v6863_v12 = vld [vmem:[%s9415_s30 + $0x58] ss:$8 sps:$4 sm:$0xff]  }
  0x39   : > { %906 = vmatprep.subr.bf16.mxu1 %v6854_v6  ;;  %v616_v13 = vld [vmem:[%s9415_s30 + $0x30] sm:$0x77]  ;;  %v6000_v14 = vld [vmem:[%s9415_s30 + $0x68] sm:$0x77]  ;;  %v7620_v22 = vld [vmem:[%s7604_s7] sm:$0xff]  }
  0x3a   : > { %v5983_v15 = vcombine.high %v616_v13, %v616_v13  ;;  %v6008_v16 = vcombine.high %v6000_v14, %v6000_v14  ;;  %v5982_v17 = vcombine.low %v616_v13, %v616_v13  ;;  %v6007_v18 = vcombine.low %v6000_v14, %v6000_v14  ;;  %v6872_v19 = vld [vmem:[%s9415_s30 + $0x74] ss:$8 sps:$4 sm:$0xff]   ;;  %v6870_v23 = vld [vmem:[%s9415_s30 + $0x70] ss:$8 sps:$4 sm:$0xff]   ;;  %v6877_v24 = vld [vmem:[%s9415_s30 + $0x84] ss:$8 sps:$4 sm:$0xff]  }
  0x3b   : > { %735 = vmatpush1.bf16.msra.mxu0 %v6856_v7  ;;  %v6875_v25 = vld [vmem:[%s9415_s30 + $0x80] ss:$8 sps:$4 sm:$0xff]   ;;  %v6882_v26 = vld [vmem:[%s9415_s30 + $0x94] ss:$8 sps:$4 sm:$0xff]   ;;  %v6880_v29 = vld [vmem:[%s9415_s30 + $0x90] ss:$8 sps:$4 sm:$0xff]  }
  0x3c   : > { %907 = vmatpush1.bf16.msra.mxu1 %v6857_v8  ;;  %736 = vmatprep.subr.bf16.mxu0 %v6858_v9  ;;  %v727_v20 = vsel %vm725_vm0, %v5982_v17, 0  ;;  %v899_v21 = vsel %vm725_vm0, %v6007_v18, 0  ;;  %v6869_v27 = vld [vmem:[%s7604_s7 + $0x8] sm:$0xff]   ;;  %v6025_v28 = vld [vmem:[%s9415_s30 + $0xa0] sm:$0x77]  ;;  %v6873_v32 = vld [vmem:[%s7604_s7 + $0x10] sm:$0xff]  }
  0x3d   : > { %908 = vmatprep.subr.bf16.mxu1 %v6860_v10  ;;  %v6033_v30 = vcombine.high %v6025_v28, %v6025_v28  ;;  %v6032_v31 = vcombine.low %v6025_v28, %v6025_v28  ;;  %v6874_v34 = vld [vmem:[%s7604_s7 + $0x18] sm:$0xff]   ;;  %v6878_v35 = vld [vmem:[%s7604_s7 + $0x20] sm:$0xff]   ;;  %v6879_v36 = vld [vmem:[%s7604_s7 + $0x28] sm:$0xff]  }
  0x3e   : > { %v6883_v37 = vld [vmem:[%s7604_s7 + $0x30] sm:$0xff]   ;;  %v6884_v38 = vld [vmem:[%s7604_s7 + $0x38] sm:$0xff]   ;;  %v6887_v39 = vld [vmem:[%s7604_s7 + $0x40] sm:$0xff]  }
  0x3f   : > { %737 = vmatpush1.bf16.msra.mxu0 %v6862_v11  ;;  %v1071_v33 = vsel %vm725_vm0, %v6032_v31, 0 }
  0x40   : > { %909 = vmatpush1.bf16.msra.mxu1 %v6863_v12  ;;  %5984 = vmatprep.subr.msk.bf16.mxu0 %vm725_vm0, %v5983_v15 }
  0x41   : > { %6009 = vmatprep.subr.msk.bf16.mxu1 %vm725_vm0, %v6008_v16 }
  0x43   : > { %739 = vmatpush1.bf16.msra.mxu0 %v727_v20 }
  0x44   : > { %911 = vmatpush1.bf16.msra.mxu1 %v899_v21  ;;  %1076 = vmatprep.subr.bf16.mxu0 %v6872_v19 }
  0x46   : > { %5985 = vmatmul.mubr.msk.bf16.vlgmr.msra.gmra.mrb[0].mxu0 %vm697_vm1, %v7620_v22 }
  0x47   : > { %6010 = vmatmul.mubr.msk.bf16.vlgmr.msra.gmra.mrb[0].mxu1 %vm697_vm1, %v7620_v22  ;;  %774 = vmatprep.mubr.bf16.mxu0 %v7419_v0 }
  0x48   : > { %946 = vmatprep.mubr.bf16.mxu1 %v7419_v0  ;;  %1077 = vmatpush1.bf16.msra.mxu0 %v6870_v23 }
  0x49   : > { %1078 = vmatprep.subr.bf16.mxu0 %v6877_v24 }
  0x4c   : > { %1079 = vmatpush1.bf16.msra.mxu0 %v6875_v25 }
  0x4d   : > { %1080 = vmatprep.subr.bf16.mxu0 %v6882_v26 }
  0x4e   : > { %5986 = vmatmul.mubr.msk.bf16.gmra.mrb[4].mxu0 %vm697_vm1, %v6869_v27 }
  0x4f   : > { %6011 = vmatmul.mubr.msk.bf16.gmra.mrb[4].mxu1 %vm697_vm1, %v6869_v27  ;;  %784 = vmatprep.mubr.bf16.mxu0 %v7419_v0 }
  0x50   : > { %956 = vmatprep.mubr.bf16.mxu1 %v7419_v0  ;;  %1081 = vmatpush1.bf16.msra.mxu0 %v6880_v29 }
  0x51   : > { %6034 = vmatprep.subr.msk.bf16.mxu0 %vm725_vm0, %v6033_v30 }
  0x54   : > { %1083 = vmatpush1.bf16.msra.mxu0 %v1071_v33 }
  0x56   : > { %5987 = vmatmul.mubr.msk.bf16.gmra.mrb[8].mxu0 %vm697_vm1, %v6873_v32 }
  0x57   : > { %6012 = vmatmul.mubr.msk.bf16.gmra.mrb[8].mxu1 %vm697_vm1, %v6873_v32  ;;  %794 = vmatprep.mubr.bf16.mxu0 %v7419_v0 }
  0x58   : > { %966 = vmatprep.mubr.bf16.mxu1 %v7419_v0 }
  0x5e   : > { %5988 = vmatmul.mubr.msk.bf16.gmra.mrb[12].mxu0 %vm697_vm1, %v6874_v34 }
  0x5f   : > { %6013 = vmatmul.mubr.msk.bf16.gmra.mrb[12].mxu1 %vm697_vm1, %v6874_v34  ;;  %804 = vmatprep.mubr.bf16.mxu0 %v7419_v0 }
  0x60   : > { %976 = vmatprep.mubr.bf16.mxu1 %v7419_v0 }
  0x66   : > { %5989 = vmatmul.mubr.msk.bf16.gmra.mrb[16].mxu0 %vm697_vm1, %v6878_v35 }
  0x67   : > { %6014 = vmatmul.mubr.msk.bf16.gmra.mrb[16].mxu1 %vm697_vm1, %v6878_v35  ;;  %814 = vmatprep.mubr.bf16.mxu0 %v7419_v0 }
  0x68   : > { %986 = vmatprep.mubr.bf16.mxu1 %v7419_v0 }
  0x6e   : > { %5990 = vmatmul.mubr.msk.bf16.gmra.mrb[20].mxu0 %vm697_vm1, %v6879_v36 }
  0x6f   : > { %6015 = vmatmul.mubr.msk.bf16.gmra.mrb[20].mxu1 %vm697_vm1, %v6879_v36  ;;  %824 = vmatprep.mubr.bf16.mxu0 %v7419_v0 }
  0x70   : > { %996 = vmatprep.mubr.bf16.mxu1 %v7419_v0 }
  0x76   : > { %5991 = vmatmul.mubr.msk.bf16.gmra.mrb[24].mxu0 %vm697_vm1, %v6883_v37 }
  0x77   : > { %6016 = vmatmul.mubr.msk.bf16.gmra.mrb[24].mxu1 %vm697_vm1, %v6883_v37  ;;  %834 = vmatprep.mubr.bf16.mxu0 %v7419_v0 }
  0x78   : > { %1006 = vmatprep.mubr.bf16.mxu1 %v7419_v0 }
  0x7e   : > { %5992 = vmatmul.mubr.msk.bf16.gmra.mrb[28].mxu0 %vm697_vm1, %v6884_v38 }
  0x7f   : > { %6017 = vmatmul.mubr.msk.bf16.gmra.mrb[28].mxu1 %vm697_vm1, %v6884_v38  ;;  %844 = vmatprep.mubr.bf16.mxu0 %v7419_v0 }
  0x80   : > { %1016 = vmatprep.mubr.bf16.mxu1 %v7419_v0 }
  0x86   : > { %5993 = vmatmul.mubr.msk.bf16.gmra.mrb[32].mxu0 %vm697_vm1, %v6887_v39 }
  0x87   : > { %6018 = vmatmul.mubr.msk.bf16.gmra.mrb[32].mxu1 %vm697_vm1, %v6887_v39  ;;  %1108 = vmatprep.mubr.bf16.mxu0 %v7419_v0 }
  0x8e   : > { %6035 = vmatmul.mubr.msk.bf16.vlgmr.msra.gmra.mrb[36].mxu0 %vm697_vm1, %v7620_v22 }
  0x8f   : > { %1118 = vmatprep.mubr.bf16.mxu0 %v7419_v0 }
  0x96   : > { %6036 = vmatmul.mubr.msk.bf16.gmra.mrb[40].mxu0 %vm697_vm1, %v6869_v27 }
  0x97   : > { %1128 = vmatprep.mubr.bf16.mxu0 %v7419_v0 }
  0x9e   : > { %6037 = vmatmul.mubr.msk.bf16.gmra.mrb[44].mxu0 %vm697_vm1, %v6873_v32 }
  0x9f   : > { %1138 = vmatprep.mubr.bf16.mxu0 %v7419_v0 }
  0xa6   : > { %6038 = vmatmul.mubr.msk.bf16.gmra.mrb[48].mxu0 %vm697_vm1, %v6874_v34 }
  0xa7   : > { %1148 = vmatprep.mubr.bf16.mxu0 %v7419_v0 }
  0xae   : > { %6039 = vmatmul.mubr.msk.bf16.gmra.mrb[52].mxu0 %vm697_vm1, %v6878_v35 }
  0xaf   : > { %1158 = vmatprep.mubr.bf16.mxu0 %v7419_v0 }
  0xb6   : > { %6040 = vmatmul.mubr.msk.bf16.gmra.mrb[56].mxu0 %vm697_vm1, %v6879_v36 }
  0xb7   : > { %1168 = vmatprep.mubr.bf16.mxu0 %v7419_v0 }
  0xbe   : > { %6041 = vmatmul.mubr.msk.bf16.gmra.mrb[60].mxu0 %vm697_vm1, %v6883_v37 }
  0xbf   : > { %1178 = vmatprep.mubr.bf16.mxu0 %v7419_v0 }
  0xc6   : > { %6042 = vmatmul.mubr.msk.bf16.gmra.mrb[64].mxu0 %vm697_vm1, %v6884_v38 }
  0xc7   : > { %1188 = vmatprep.mubr.bf16.mxu0 %v7419_v0 }
  0xce   : > { %6043 = vmatmul.mubr.msk.bf16.gmra.mrb[68].mxu0 %vm697_vm1, %v6887_v39 }
 0x119   : > { %v766_v40 = vpop.f32.mrb[0].mxu0 }
 0x11a   : > { %v938_v41 = vpop.f32.mrb[0].mxu1  ;;  %v768_v43 = vpop.f32.mrb[1].mxu0 }
 0x11b   : > { %v1236_v42 = vrot.slane %v938_v41, 1  ;;  %v940_v44 = vpop.f32.mrb[1].mxu1  ;;  %v770_v46 = vpop.f32.mrb[2].mxu0  ;;  %v6890_v41 = vld [vmem:[%s9386_s3 + $0x4] ss:$8 sps:$4 sm:$0xff]  }
 0x11c   : > { %v1239_v45 = vrot.slane %v940_v44, 1  ;;  %v942_v47 = vpop.f32.mrb[2].mxu1  ;;  %v772_v49 = vpop.f32.mrb[3].mxu0  ;;  %6055 = vmatprep.mubr.msk.bf16.mxu1 %vm1714_vm3, %v6890_v41 }
 0x11d   : > { %v1237_v48 = vrot.slane %v942_v47, 1  ;;  %v944_v50 = vpop.f32.mrb[3].mxu1 }
 0x11e   : > { %v1240_v51 = vrot.slane %v944_v50, 1 }
 0x11f   : > { %v1238_v52 = vsel %vm1235_vm2, %v1236_v42, %v1237_v48 }
 0x120   : > { %v7706_v53 = vadd.f32 %v1238_v52, %v766_v40  ;;  %v1241_v54 = vsel %vm1235_vm2, %v1239_v45, %v1240_v51 }
 0x121   : > { %v7709_v55 = vadd.f32 %v1241_v54, %v768_v43  ;;  %v776_v56 = vpop.f32.mrb[4].mxu0 }
 0x122   : > { %v948_v57 = vpop.f32.mrb[4].mxu1  ;;  %v778_v59 = vpop.f32.mrb[5].mxu0 }
 0x123   : > { %v1242_v58 = vrot.slane %v948_v57, 1  ;;  %v950_v60 = vpop.f32.mrb[5].mxu1  ;;  %v780_v62 = vpop.f32.mrb[6].mxu0 }
 0x124   : > { %v1244_v61 = vrot.slane %v950_v60, 1  ;;  %v952_v63 = vpop.f32.mrb[6].mxu1  ;;  %v782_v3 = vpop.f32.mrb[7].mxu0 }
 0x125   : > { %v1243_v1 = vsel %vm1235_vm2, %v1237_v48, %v1242_v58  ;;  %v1246_v2 = vrot.slane %v952_v63, 1  ;;  %v954_v4 = vpop.f32.mrb[7].mxu1 }
 0x126   : > { %v7712_v5 = vadd.f32 %v1243_v1, %v770_v46  ;;  %v1245_v6 = vsel %vm1235_vm2, %v1240_v51, %v1244_v61  ;;  %v1248_v7 = vrot.slane %v954_v4, 1 }
 0x127   : > { %v7715_v8 = vadd.f32 %v1245_v6, %v772_v49  ;;  %v1247_v9 = vsel %vm1235_vm2, %v1242_v58, %v1246_v2 }
 0x128   : > { %v7718_v10 = vadd.f32 %v1247_v9, %v776_v56  ;;  %v1249_v11 = vsel %vm1235_vm2, %v1244_v61, %v1248_v7 }
 0x129   : > { %v7721_v12 = vadd.f32 %v1249_v11, %v778_v59  ;;  %v786_v13 = vpop.f32.mrb[8].mxu0 }
 0x12a   : > { %v958_v14 = vpop.f32.mrb[8].mxu1  ;;  %v788_v16 = vpop.f32.mrb[9].mxu0 }
 0x12b   : > { %v1250_v15 = vrot.slane %v958_v14, 1  ;;  %v960_v17 = vpop.f32.mrb[9].mxu1  ;;  %v790_v19 = vpop.f32.mrb[10].mxu0 }
 0x12c   : > { %v1252_v18 = vrot.slane %v960_v17, 1  ;;  %v962_v20 = vpop.f32.mrb[10].mxu1  ;;  %v792_v23 = vpop.f32.mrb[11].mxu0 }
 0x12d   : > { %v1251_v21 = vsel %vm1235_vm2, %v1246_v2, %v1250_v15  ;;  %v1254_v22 = vrot.slane %v962_v20, 1  ;;  %v964_v24 = vpop.f32.mrb[11].mxu1 }
 0x12e   : > { %v7724_v25 = vadd.f32 %v1251_v21, %v780_v62  ;;  %v1253_v26 = vsel %vm1235_vm2, %v1248_v7, %v1252_v18  ;;  %v1256_v27 = vrot.slane %v964_v24, 1 }
 0x12f   : > { %v7727_v28 = vadd.f32 %v1253_v26, %v782_v3  ;;  %v1255_v29 = vsel %vm1235_vm2, %v1250_v15, %v1254_v22 }
 0x130   : > { %v7730_v30 = vadd.f32 %v1255_v29, %v786_v13  ;;  %v1257_v31 = vsel %vm1235_vm2, %v1252_v18, %v1256_v27 }
 0x131   : > { %v7733_v32 = vadd.f32 %v1257_v31, %v788_v16  ;;  %v796_v33 = vpop.f32.mrb[12].mxu0 }
 0x132   : > { %v968_v34 = vpop.f32.mrb[12].mxu1  ;;  %v798_v36 = vpop.f32.mrb[13].mxu0 }
 0x133   : > { %v1258_v35 = vrot.slane %v968_v34, 1  ;;  %v970_v37 = vpop.f32.mrb[13].mxu1  ;;  %v800_v39 = vpop.f32.mrb[14].mxu0 }
 0x134   : > { %v1260_v38 = vrot.slane %v970_v37, 1  ;;  %v972_v40 = vpop.f32.mrb[14].mxu1  ;;  %v802_v44 = vpop.f32.mrb[15].mxu0 }
 0x135   : > { %v1259_v42 = vsel %vm1235_vm2, %v1254_v22, %v1258_v35  ;;  %v1262_v43 = vrot.slane %v972_v40, 1  ;;  %v974_v45 = vpop.f32.mrb[15].mxu1 }
 0x136   : > { %v7739_v46 = vadd.f32 %v1259_v42, %v790_v19  ;;  %v1261_v47 = vsel %vm1235_vm2, %v1256_v27, %v1260_v38  ;;  %v1264_v48 = vrot.slane %v974_v45, 1 }
 0x137   : > { %v7743_v49 = vadd.f32 %v1261_v47, %v792_v23  ;;  %v1263_v50 = vsel %vm1235_vm2, %v1258_v35, %v1262_v43 }
 0x138   : > { %v7746_v51 = vadd.f32 %v1263_v50, %v796_v33  ;;  %v1265_v52 = vsel %vm1235_vm2, %v1260_v38, %v1264_v48 }
 0x139   : > { %v7749_v54 = vadd.f32 %v1265_v52, %v798_v36  ;;  %v806_v56 = vpop.f32.mrb[16].mxu0 }
 0x13a   : > { %v978_v57 = vpop.f32.mrb[16].mxu1  ;;  %v808_v59 = vpop.f32.mrb[17].mxu0 }
 0x13b   : > { %v1266_v58 = vrot.slane %v978_v57, 1  ;;  %v980_v60 = vpop.f32.mrb[17].mxu1  ;;  %v810_v62 = vpop.f32.mrb[18].mxu0 }
 0x13c   : > { %v1268_v61 = vrot.slane %v980_v60, 1  ;;  %v982_v63 = vpop.f32.mrb[18].mxu1  ;;  %v812_v3 = vpop.f32.mrb[19].mxu0 }
 0x13d   : > { %v1267_v1 = vsel %vm1235_vm2, %v1262_v43, %v1266_v58  ;;  %v1270_v2 = vrot.slane %v982_v63, 1  ;;  %v984_v4 = vpop.f32.mrb[19].mxu1 }
 0x13e   : > { %v7752_v6 = vadd.f32 %v1267_v1, %v800_v39  ;;  %v1269_v7 = vsel %vm1235_vm2, %v1264_v48, %v1268_v61  ;;  %v1272_v9 = vrot.slane %v984_v4, 1 }
 0x13f   : > { %v7755_v11 = vadd.f32 %v1269_v7, %v802_v44  ;;  %v1271_v13 = vsel %vm1235_vm2, %v1266_v58, %v1270_v2 }
 0x140   : > { %v7758_v14 = vadd.f32 %v1271_v13, %v806_v56  ;;  %v1273_v15 = vsel %vm1235_vm2, %v1268_v61, %v1272_v9 }
 0x141   : > { %v7761_v16 = vadd.f32 %v1273_v15, %v808_v59  ;;  %v816_v17 = vpop.f32.mrb[20].mxu0 }
 0x142   : > { %v988_v18 = vpop.f32.mrb[20].mxu1  ;;  %v818_v20 = vpop.f32.mrb[21].mxu0 }
 0x143   : > { %v1274_v19 = vrot.slane %v988_v18, 1  ;;  %v990_v21 = vpop.f32.mrb[21].mxu1  ;;  %v820_v23 = vpop.f32.mrb[22].mxu0 }
 0x144   : > { %v1276_v22 = vrot.slane %v990_v21, 1  ;;  %v992_v24 = vpop.f32.mrb[22].mxu1  ;;  %v822_v29 = vpop.f32.mrb[23].mxu0 }
 0x145   : > { %v1275_v26 = vsel %vm1235_vm2, %v1270_v2, %v1274_v19  ;;  %v1278_v27 = vrot.slane %v992_v24, 1  ;;  %v994_v31 = vpop.f32.mrb[23].mxu1 }
 0x146   : > { %v7764_v33 = vadd.f32 %v1275_v26, %v810_v62  ;;  %v1277_v34 = vsel %vm1235_vm2, %v1272_v9, %v1276_v22  ;;  %v1280_v35 = vrot.slane %v994_v31, 1 }
 0x147   : > { %v7767_v36 = vadd.f32 %v1277_v34, %v812_v3  ;;  %v1279_v37 = vsel %vm1235_vm2, %v1274_v19, %v1278_v27 }
 0x148   : > { %v7770_v38 = vadd.f32 %v1279_v37, %v816_v17  ;;  %v1281_v39 = vsel %vm1235_vm2, %v1276_v22, %v1280_v35 }
 0x149   : > { %v7773_v40 = vadd.f32 %v1281_v39, %v818_v20  ;;  %v826_v41 = vpop.f32.mrb[24].mxu0 }
 0x14a   : > { %v998_v42 = vpop.f32.mrb[24].mxu1  ;;  %v828_v44 = vpop.f32.mrb[25].mxu0 }
 0x14b   : > { %v1282_v43 = vrot.slane %v998_v42, 1  ;;  %v1000_v45 = vpop.f32.mrb[25].mxu1  ;;  %v830_v48 = vpop.f32.mrb[26].mxu0 }
 0x14c   : > { %v1284_v47 = vrot.slane %v1000_v45, 1  ;;  %v1002_v50 = vpop.f32.mrb[26].mxu1  ;;  %v832_v57 = vpop.f32.mrb[27].mxu0 }
 0x14d   : > { %v1283_v52 = vsel %vm1235_vm2, %v1278_v27, %v1282_v43  ;;  %v1286_v56 = vrot.slane %v1002_v50, 1  ;;  %v1004_v58 = vpop.f32.mrb[27].mxu1 }
 0x14e   : > { %v7776_v59 = vadd.f32 %v1283_v52, %v820_v23  ;;  %v1285_v60 = vsel %vm1235_vm2, %v1280_v35, %v1284_v47  ;;  %v1288_v61 = vrot.slane %v1004_v58, 1 }
 0x14f   : > { %v7779_v62 = vadd.f32 %v1285_v60, %v822_v29  ;;  %v1287_v63 = vsel %vm1235_vm2, %v1282_v43, %v1286_v56 }
 0x150   : > { %v7782_v1 = vadd.f32 %v1287_v63, %v826_v41  ;;  %v1289_v2 = vsel %vm1235_vm2, %v1284_v47, %v1288_v61  ;;  %v1559_v63 = vlaneseq }
 0x151   : > { %v7785_v3 = vadd.f32 %v1289_v2, %v828_v44  ;;  %v836_v4 = vpop.f32.mrb[28].mxu0 }
 0x152   : > { %v1008_v7 = vpop.f32.mrb[28].mxu1  ;;  %v838_v13 = vpop.f32.mrb[29].mxu0 }
 0x153   : > { %v1290_v9 = vrot.slane %v1008_v7, 1  ;;  %v1010_v15 = vpop.f32.mrb[29].mxu1  ;;  %v840_v18 = vpop.f32.mrb[30].mxu0 }
 0x154   : > { %v1292_v17 = vrot.slane %v1010_v15, 1  ;;  %v1012_v19 = vpop.f32.mrb[30].mxu1  ;;  %v842_v22 = vpop.f32.mrb[31].mxu0 }
 0x155   : > { %v1291_v20 = vsel %vm1235_vm2, %v1286_v56, %v1290_v9  ;;  %v1294_v21 = vrot.slane %v1012_v19, 1  ;;  %v1014_v23 = vpop.f32.mrb[31].mxu1  ;;  %v1560_v19 = vshrl.u32 %v1559_v63, 7 }
 0x156   : > { %v7788_v24 = vadd.f32 %v1291_v20, %v830_v48  ;;  %v1293_v26 = vsel %vm1235_vm2, %v1288_v61, %v1292_v17  ;;  %v1296_v27 = vrot.slane %v1014_v23, 1 }
 0x157   : > { %v7791_v29 = vadd.f32 %v1293_v26, %v832_v57  ;;  %v1295_v31 = vsel %vm1235_vm2, %v1290_v9, %v1294_v21 }
 0x158   : > { %v7794_v34 = vadd.f32 %v1295_v31, %v836_v4  ;;  %v1297_v35 = vsel %vm1235_vm2, %v1292_v17, %v1296_v27  ;;  %v7815_v31 = vsub.s32 0, %v1560_v19 }
 0x159   : > { %v7797_v37 = vadd.f32 %v1297_v35, %v838_v13  ;;  %v846_v39 = vpop.f32.mrb[32].mxu0 }
 0x15a   : > { %v1018_v41 = vpop.f32.mrb[32].mxu1  ;;  %v848_v43 = vpop.f32.mrb[33].mxu0 }
 0x15b   : > { %v1298_v42 = vrot.slane %v1018_v41, 1  ;;  %v1020_v44 = vpop.f32.mrb[33].mxu1  ;;  %v850_v47 = vpop.f32.mrb[34].mxu0  ;;  %v1557_v41 = vld [vmem:[%s9417_s0] sm:$0x3] }
 0x15c   : > { %v1300_v45 = vrot.slane %v1020_v44, 1  ;;  %v1022_v48 = vpop.f32.mrb[34].mxu1  ;;  %v852_v56 = vpop.f32.mrb[35].mxu0 }
 0x15d   : > { %v1299_v50 = vsel %vm1235_vm2, %v1294_v21, %v1298_v42  ;;  %v1302_v52 = vrot.slane %v1022_v48, 1  ;;  %v1024_v57 = vpop.f32.mrb[35].mxu1 }
 0x15e   : > { %v7800_v58 = vadd.f32 %v1299_v50, %v840_v18  ;;  %v1301_v60 = vsel %vm1235_vm2, %v1296_v27, %v1300_v45  ;;  %v1304_v61 = vrot.slane %v1024_v57, 1 }
 0x15f   : > { %v7803_v2 = vadd.f32 %v1301_v60, %v842_v22  ;;  %v1303_v4 = vsel %vm1235_vm2, %v1298_v42, %v1302_v52  ;;  %v7806_v7 = vadd.f32 %v1302_v52, %v850_v47  ;;  %v7821_v42 = vsub.s32 1, %v1560_v19 }
 0x160   : > { %v7808_v9 = vadd.f32 %v1303_v4, %v846_v39  ;;  %v1305_v13 = vsel %vm1235_vm2, %v1300_v45, %v1304_v61  ;;  %v7811_v15 = vadd.f32 %v1304_v61, %v852_v56  ;;  %v7827_v47 = vrot.slane %v1557_v41, %v7815_v31 }
 0x161   : > { %v7813_v17 = vadd.f32 %v1305_v13, %v848_v43  ;;  %v1110_v18 = vpop.f32.mrb[36].mxu0  ;;  %v7830_v56 = vrot.slane %v1557_v41, %v7821_v42 }
 0x162   : > { %v1112_v20 = vpop.f32.mrb[37].mxu0  ;;  %v1415_v23 = vrot.slane %v1110_v18, 2 }
 0x163   : > { %v1114_v21 = vpop.f32.mrb[38].mxu0  ;;  %v1418_v27 = vrot.slane %v1112_v20, 2 }
 0x164   : > { %v1416_v22 = vrot.slane %v1114_v21, 2  ;;  %v1116_v26 = vpop.f32.mrb[39].mxu0 }
 0x165   : > { %v1419_v35 = vrot.slane %v1116_v26, 2 }
 0x166   : > { %v1417_v39 = vsel %vm1414_vm4, %v1415_v23, %v1416_v22 }
 0x167   : > { %v1521_v43 = vadd.f32 %v1417_v39, %v7706_v53  ;;  %v1420_v44 = vsel %vm1414_vm4, %v1418_v27, %v1419_v35 }
 0x168   : > { %v1522_v45 = vadd.f32 %v1420_v44, %v7709_v55 }
 0x169   : > { %v1120_v48 = vpop.f32.mrb[40].mxu0  ;;  %v1569_v53 = vadd.f32 %v7827_v47, %v1521_v43 }
 0x16a   : > { %v1421_v50 = vrot.slane %v1120_v48, 2  ;;  %v1122_v52 = vpop.f32.mrb[41].mxu0  ;;  %v1570_v21 = vadd.f32 %v7830_v56, %v1522_v45 }
 0x16b   : > { %v1423_v57 = vrot.slane %v1122_v52, 2  ;;  %v1124_v60 = vpop.f32.mrb[42].mxu0 }
 0x16c   : > { %v1422_v61 = vsel %vm1414_vm4, %v1416_v22, %v1421_v50  ;;  %v1425_v63 = vrot.slane %v1124_v60, 2  ;;  %v1126_v4 = vpop.f32.mrb[43].mxu0 }
 0x16d   : > { %v1523_v13 = vadd.f32 %v1422_v61, %v7712_v5  ;;  %v1424_v55 = vsel %vm1414_vm4, %v1419_v35, %v1423_v57  ;;  %v1427_v18 = vrot.slane %v1126_v4, 2  ;;  %v1605_v5 = vmax.f32 %v1569_v53, 0.0 }
 0x16e   : > { %v1524_v19 = vadd.f32 %v1424_v55, %v7715_v8  ;;  %v1426_v20 = vsel %vm1414_vm4, %v1421_v50, %v1425_v63  ;;  %v1606_v8 = vmax.f32 %v1570_v21, 0.0 }
 0x16f   : > { %v1571_v23 = vadd.f32 %v7827_v47, %v1523_v13  ;;  %v1525_v26 = vadd.f32 %v1426_v20, %v7718_v10  ;;  %v1428_v22 = vsel %vm1414_vm4, %v1423_v57, %v1427_v18 }
 0x170   : > { %v1526_v27 = vadd.f32 %v1428_v22, %v7721_v12  ;;  %v1572_v39 = vadd.f32 %v7830_v56, %v1524_v19 }
 0x171   : > { %v1607_v41 = vmax.f32 %v1571_v23, 0.0  ;;  %v1130_v35 = vpop.f32.mrb[44].mxu0  ;;  %v1573_v12 = vadd.f32 %v7827_v47, %v1525_v26 }
 0x172   : > { %v1429_v43 = vrot.slane %v1130_v35, 2  ;;  %v1132_v44 = vpop.f32.mrb[45].mxu0  ;;  %v1608_v48 = vmax.f32 %v1572_v39, 0.0  ;;  %v1574_v20 = vadd.f32 %v7830_v56, %v1526_v27 }
 0x173   : > { %v1431_v50 = vrot.slane %v1132_v44, 2  ;;  %v1134_v52 = vpop.f32.mrb[46].mxu0  ;;  %v7844_v45 = vpack.c.bf16 %v1607_v41, %v1605_v5  ;;  %v1609_v26 = vmax.f32 %v1573_v12, 0.0 }
 0x174   : > { %v1430_v60 = vsel %vm1414_vm4, %v1425_v63, %v1429_v43  ;;  %v1433_v10 = vrot.slane %v1134_v52, 2  ;;  %v1136_v61 = vpop.f32.mrb[47].mxu0  ;;  %v7847_v57 = vpack.c.bf16 %v1608_v48, %v1606_v8  ;;  %v1610_v41 = vmax.f32 %v1574_v20, 0.0 }
 0x175   : > { %v1527_v4 = vadd.f32 %v1430_v60, %v7724_v25  ;;  %v1432_v53 = vsel %vm1414_vm4, %v1427_v18, %v1431_v50  ;;  %v1435_v13 = vrot.slane %v1136_v61, 2 }
 0x176   : > { %v1528_v55 = vadd.f32 %v1432_v53, %v7727_v28  ;;  %v1434_v19 = vsel %vm1414_vm4, %v1429_v43, %v1433_v10  ;;  %1736 = vmatprep.subr.bf16.mxu1 %v7847_v57 }
 0x177   : > { %v1575_v63 = vadd.f32 %v7827_v47, %v1527_v4  ;;  %v1529_v21 = vadd.f32 %v1434_v19, %v7730_v30  ;;  %v1436_v23 = vsel %vm1414_vm4, %v1431_v50, %v1435_v13  ;;  %1737 = vmatpush1.bf16.msra.mxu1 %v7844_v45  ;;  %v6926_v19 = vld [vmem:[%s9387_s4 + $0x14] ss:$8 sps:$4 sm:$0xff]  }
 0x178   : > { %v1530_v25 = vadd.f32 %v1436_v23, %v7733_v32  ;;  %v1576_v18 = vadd.f32 %v7830_v56, %v1528_v55  ;;  %v6920_v55 = vld [vmem:[%s9387_s4 + $0x4] ss:$8 sps:$4 sm:$0xff]  }
 0x179   : > { %v1611_v28 = vmax.f32 %v1575_v63, 0.0  ;;  %v1140_v22 = vpop.f32.mrb[48].mxu0  ;;  %v1577_v32 = vadd.f32 %v7827_v47, %v1529_v21  ;;  %2195 = vmatprep.subr.bf16.mxu0 %v6920_v55 }
 0x17a   : > { %v1437_v39 = vrot.slane %v1140_v22, 2  ;;  %v1142_v5 = vpop.f32.mrb[49].mxu0  ;;  %v1612_v35 = vmax.f32 %v1576_v18, 0.0  ;;  %v1578_v53 = vadd.f32 %v7830_v56, %v1530_v25 }
 0x17b   : > { %v1439_v27 = vrot.slane %v1142_v5, 2  ;;  %v1144_v43 = vpop.f32.mrb[50].mxu0  ;;  %v7862_v44 = vpack.c.bf16 %v1611_v28, %v1609_v26  ;;  %v1613_v21 = vmax.f32 %v1577_v32, 0.0 }
 0x17c   : > { %v1438_v30 = vsel %vm1414_vm4, %v1433_v10, %v1437_v39  ;;  %v1441_v8 = vrot.slane %v1144_v43, 2  ;;  %v1146_v48 = vpop.f32.mrb[51].mxu0  ;;  %v7865_v50 = vpack.c.bf16 %v1612_v35, %v1610_v41  ;;  %v6918_v10 = vld [vmem:[%s9387_s4] ss:$8 sps:$4 sm:$0xff]   ;;  %v1614_v28 = vmax.f32 %v1578_v53, 0.0 }
 0x17d   : > { %v1531_v52 = vadd.f32 %v1438_v30, %v7739_v46  ;;  %v1440_v60 = vsel %vm1414_vm4, %v1435_v13, %v1439_v27  ;;  %v1443_v61 = vrot.slane %v1146_v48, 2  ;;  %2196 = vmatpush1.bf16.msra.mxu0 %v6918_v10 }
 0x17e   : > { %v1532_v12 = vadd.f32 %v1440_v60, %v7743_v49  ;;  %v1442_v4 = vsel %vm1414_vm4, %v1437_v39, %v1441_v8  ;;  %1738 = vmatprep.subr.bf16.mxu1 %v7865_v50  ;;  %2197 = vmatprep.subr.bf16.mxu0 %v6926_v19 }
 0x17f   : > { %v1579_v46 = vadd.f32 %v7827_v47, %v1531_v52  ;;  %v1533_v13 = vadd.f32 %v1442_v4, %v7746_v51  ;;  %v1444_v49 = vsel %vm1414_vm4, %v1439_v27, %v1443_v61  ;;  %1739 = vmatpush1.bf16.msra.mxu1 %v7862_v44  ;;  %v6924_v51 = vld [vmem:[%s9387_s4 + $0x10] ss:$8 sps:$4 sm:$0xff]  }
 0x180   : > { %v1534_v20 = vadd.f32 %v1444_v49, %v7749_v54  ;;  %v1580_v63 = vadd.f32 %v7830_v56, %v1532_v12  ;;  %v6932_v54 = vld [vmem:[%s9387_s4 + $0x24] ss:$8 sps:$4 sm:$0xff]   ;;  %v6930_v12 = vld [vmem:[%s9387_s4 + $0x20] ss:$8 sps:$4 sm:$0xff]  }
 0x181   : > { %v1615_v23 = vmax.f32 %v1579_v46, 0.0  ;;  %v1150_v25 = vpop.f32.mrb[52].mxu0  ;;  %v1581_v48 = vadd.f32 %v7827_v47, %v1533_v13  ;;  %2198 = vmatpush1.bf16.msra.mxu0 %v6924_v51 }
 0x182   : > { %v1445_v18 = vrot.slane %v1150_v25, 2  ;;  %v1152_v26 = vpop.f32.mrb[53].mxu0  ;;  %v1616_v22 = vmax.f32 %v1580_v63, 0.0  ;;  %v1582_v53 = vadd.f32 %v7830_v56, %v1534_v20  ;;  %2199 = vmatprep.subr.bf16.mxu0 %v6932_v54  ;;  %v6936_v20 = vld [vmem:[%s9387_s4 + $0x30] ss:$8 sps:$4 sm:$0xff]  }
 0x183   : > { %v1447_v39 = vrot.slane %v1152_v26, 2  ;;  %v1154_v5 = vpop.f32.mrb[54].mxu0  ;;  %v7895_v41 = vpack.c.bf16 %v1615_v23, %v1613_v21  ;;  %v1617_v13 = vmax.f32 %v1581_v48, 0.0 }
 0x184   : > { %v1446_v35 = vsel %vm1414_vm4, %v1441_v8, %v1445_v18  ;;  %v1449_v27 = vrot.slane %v1154_v5, 2  ;;  %v1156_v43 = vpop.f32.mrb[55].mxu0  ;;  %v7898_v30 = vpack.c.bf16 %v1616_v22, %v1614_v28  ;;  %v1618_v23 = vmax.f32 %v1582_v53, 0.0 }
 0x185   : > { %v1535_v32 = vadd.f32 %v1446_v35, %v7752_v6  ;;  %v1448_v52 = vsel %vm1414_vm4, %v1443_v61, %v1447_v39  ;;  %v1451_v60 = vrot.slane %v1156_v43, 2  ;;  %v6938_v6 = vld [vmem:[%s9387_s4 + $0x34] ss:$8 sps:$4 sm:$0xff]   ;;  %2200 = vmatpush1.bf16.msra.mxu0 %v6930_v12 }
 0x186   : > { %v1536_v4 = vadd.f32 %v1448_v52, %v7755_v11  ;;  %v1450_v8 = vsel %vm1414_vm4, %v1445_v18, %v1449_v27  ;;  %1740 = vmatprep.subr.bf16.mxu1 %v7898_v30  ;;  %2201 = vmatprep.subr.bf16.mxu0 %v6938_v6 }
 0x187   : > { %v1583_v61 = vadd.f32 %v7827_v47, %v1535_v32  ;;  %v1537_v10 = vadd.f32 %v1450_v8, %v7758_v14  ;;  %v1452_v55 = vsel %vm1414_vm4, %v1447_v39, %v1451_v60  ;;  %1741 = vmatpush1.bf16.msra.mxu1 %v7895_v41 }
 0x188   : > { %v1538_v11 = vadd.f32 %v1452_v55, %v7761_v16  ;;  %v1584_v46 = vadd.f32 %v7830_v56, %v1536_v4 }
 0x189   : > { %v1619_v49 = vmax.f32 %v1583_v61, 0.0  ;;  %v1160_v19 = vpop.f32.mrb[56].mxu0  ;;  %v1585_v54 = vadd.f32 %v7827_v47, %v1537_v10  ;;  %2202 = vmatpush1.bf16.msra.mxu0 %v6936_v20 }
 0x18a   : > { %v1453_v63 = vrot.slane %v1160_v19, 2  ;;  %v1162_v21 = vpop.f32.mrb[57].mxu0  ;;  %v1620_v14 = vmax.f32 %v1584_v46, 0.0 }
 0x18b   : > { %v1455_v25 = vrot.slane %v1162_v21, 2  ;;  %v1164_v51 = vpop.f32.mrb[58].mxu0  ;;  %v7922_v18 = vpack.c.bf16 %v1619_v49, %v1617_v13  ;;  %v1621_v4 = vmax.f32 %v1585_v54, 0.0 }
 0x18c   : > { %v1454_v16 = vsel %vm1414_vm4, %v1449_v27, %v1453_v63  ;;  %v1457_v26 = vrot.slane %v1164_v51, 2  ;;  %v1166_v28 = vpop.f32.mrb[59].mxu0  ;;  %v7925_v22 = vpack.c.bf16 %v1620_v14, %v1618_v23  ;;  %v1586_v27 = vadd.f32 %v7830_v56, %v1538_v11 }
 0x18d   : > { %v1539_v39 = vadd.f32 %v1454_v16, %v7764_v33  ;;  %v1456_v5 = vsel %vm1414_vm4, %v1451_v60, %v1455_v25  ;;  %v1459_v35 = vrot.slane %v1166_v28, 2 }
 0x18e   : > { %v1540_v43 = vadd.f32 %v1456_v5, %v7767_v36  ;;  %v1458_v48 = vsel %vm1414_vm4, %v1453_v63, %v1457_v26  ;;  %1742 = vmatprep.subr.bf16.mxu1 %v7925_v22  ;;  %v1622_v61 = vmax.f32 %v1586_v27, 0.0 }
 0x18f   : > { %v1587_v32 = vadd.f32 %v7827_v47, %v1539_v39  ;;  %v1541_v52 = vadd.f32 %v1458_v48, %v7770_v38  ;;  %v1460_v12 = vsel %vm1414_vm4, %v1455_v25, %v1459_v35  ;;  %1743 = vmatpush1.bf16.msra.mxu1 %v7922_v18 }
 0x190   : > { %v1542_v33 = vadd.f32 %v1460_v12, %v7773_v40  ;;  %v1588_v60 = vadd.f32 %v7830_v56, %v1540_v43 }
 0x191   : > { %v1623_v36 = vmax.f32 %v1587_v32, 0.0  ;;  %v1170_v8 = vpop.f32.mrb[60].mxu0  ;;  %v1589_v40 = vadd.f32 %v7827_v47, %v1541_v52 }
 0x192   : > { %v1461_v53 = vrot.slane %v1170_v8, 2  ;;  %v1172_v6 = vpop.f32.mrb[61].mxu0  ;;  %v1624_v10 = vmax.f32 %v1588_v60, 0.0  ;;  %v1590_v25 = vadd.f32 %v7830_v56, %v1542_v33 }
 0x193   : > { %v1463_v55 = vrot.slane %v1172_v6, 2  ;;  %v1174_v11 = vpop.f32.mrb[62].mxu0  ;;  %v7940_v46 = vpack.c.bf16 %v1623_v36, %v1621_v4  ;;  %v1625_v54 = vmax.f32 %v1589_v40, 0.0 }
 0x194   : > { %v1462_v38 = vsel %vm1414_vm4, %v1457_v26, %v1461_v53  ;;  %v1465_v13 = vrot.slane %v1174_v11, 2  ;;  %v1176_v49 = vpop.f32.mrb[63].mxu0  ;;  %v7943_v19 = vpack.c.bf16 %v1624_v10, %v1622_v61  ;;  %v1626_v43 = vmax.f32 %v1590_v25, 0.0 }
 0x195   : > { %v1543_v20 = vadd.f32 %v1462_v38, %v7776_v59  ;;  %v1464_v63 = vsel %vm1414_vm4, %v1459_v35, %v1463_v55  ;;  %v1467_v21 = vrot.slane %v1176_v49, 2 }
 0x196   : > { %v1544_v23 = vadd.f32 %v1464_v63, %v7779_v62  ;;  %v1466_v14 = vsel %vm1414_vm4, %v1461_v53, %v1465_v13  ;;  %1744 = vmatprep.subr.bf16.mxu1 %v7943_v19 }
 0x197   : > { %v1591_v51 = vadd.f32 %v7827_v47, %v1543_v20  ;;  %v1545_v16 = vadd.f32 %v1466_v14, %v7782_v1  ;;  %v1468_v26 = vsel %vm1414_vm4, %v1463_v55, %v1467_v21  ;;  %1745 = vmatpush1.bf16.msra.mxu1 %v7940_v46 }
 0x198   : > { %v1546_v59 = vadd.f32 %v1468_v26, %v7785_v3  ;;  %v1592_v28 = vadd.f32 %v7830_v56, %v1544_v23 }
 0x199   : > { %v1627_v62 = vmax.f32 %v1591_v51, 0.0  ;;  %v1180_v39 = vpop.f32.mrb[64].mxu0  ;;  %v1593_v3 = vadd.f32 %v7827_v47, %v1545_v16 }
 0x19a   : > { %v1469_v5 = vrot.slane %v1180_v39, 2  ;;  %v1182_v35 = vpop.f32.mrb[65].mxu0  ;;  %v1628_v48 = vmax.f32 %v1592_v28, 0.0  ;;  %v1594_v61 = vadd.f32 %v7830_v56, %v1546_v59 }
 0x19b   : > { %v1471_v27 = vrot.slane %v1182_v35, 2  ;;  %v1184_v32 = vpop.f32.mrb[66].mxu0  ;;  %v7958_v52 = vpack.c.bf16 %v1627_v62, %v1625_v54 }
 0x19c   : > { %v1470_v1 = vsel %vm1414_vm4, %v1465_v13, %v1469_v5  ;;  %v1473_v12 = vrot.slane %v1184_v32, 2  ;;  %v1186_v33 = vpop.f32.mrb[67].mxu0  ;;  %v7961_v60 = vpack.c.bf16 %v1628_v48, %v1626_v43  ;;  %v1629_v13 = vmax.f32 %v1593_v3, 0.0 }
 0x19d   : > { %v1547_v4 = vadd.f32 %v1470_v1, %v7788_v24  ;;  %v1472_v36 = vsel %vm1414_vm4, %v1467_v21, %v1471_v27  ;;  %v1475_v8 = vrot.slane %v1186_v33, 2  ;;  %v1630_v63 = vmax.f32 %v1594_v61, 0.0 }
 0x19e   : > { %v1548_v53 = vadd.f32 %v1472_v36, %v7791_v29  ;;  %v1474_v6 = vsel %vm1414_vm4, %v1469_v5, %v1473_v12  ;;  %1746 = vmatprep.subr.bf16.mxu1 %v7961_v60 }
 0x19f   : > { %v1595_v10 = vadd.f32 %v7827_v47, %v1547_v4  ;;  %v1549_v55 = vadd.f32 %v1474_v6, %v7794_v34  ;;  %v1476_v11 = vsel %vm1414_vm4, %v1471_v27, %v1475_v8  ;;  %1747 = vmatpush1.bf16.msra.mxu1 %v7958_v52 }
 0x1a0   : > { %v1550_v24 = vadd.f32 %v1476_v11, %v7797_v37  ;;  %v1596_v38 = vadd.f32 %v7830_v56, %v1548_v53 }
 0x1a1   : > { %v1631_v29 = vmax.f32 %v1595_v10, 0.0  ;;  %v1190_v49 = vpop.f32.mrb[68].mxu0  ;;  %v1597_v37 = vadd.f32 %v7827_v47, %v1549_v55 }
 0x1a2   : > { %v1477_v40 = vrot.slane %v1190_v49, 2  ;;  %v1192_v20 = vpop.f32.mrb[69].mxu0  ;;  %v1632_v21 = vmax.f32 %v1596_v38, 0.0  ;;  %v1598_v35 = vadd.f32 %v7830_v56, %v1550_v24  ;;  %v6893_v24 = vld [vmem:[%s9386_s3 + $0x10] ss:$8 sps:$4 sm:$0xff]  }
 0x1a3   : > { %v1479_v23 = vrot.slane %v1192_v20, 2  ;;  %v1194_v14 = vpop.f32.mrb[70].mxu0  ;;  %v7976_v25 = vpack.c.bf16 %v1631_v29, %v1629_v13  ;;  %v1633_v1 = vmax.f32 %v1597_v37, 0.0  ;;  %v6894_v38 = vld [vmem:[%s9386_s3 + $0x24] ss:$8 sps:$4 sm:$0xff]  }
 0x1a4   : > { %v1478_v34 = vsel %vm1414_vm4, %v1473_v12, %v1477_v40  ;;  %v1481_v51 = vrot.slane %v1194_v14, 2  ;;  %v1196_v16 = vpop.f32.mrb[71].mxu0  ;;  %v7979_v26 = vpack.c.bf16 %v1632_v21, %v1630_v63  ;;  %v1634_v36 = vmax.f32 %v1598_v35, 0.0  ;;  %v6935_v13 = vld [vmem:[%s9387_s4 + $0x124] ss:$8 sps:$4 sm:$0xff]  }
 0x1a5   : > { %v1551_v59 = vadd.f32 %v1478_v34, %v7800_v58  ;;  %v1480_v28 = vsel %vm1414_vm4, %v1475_v8, %v1479_v23  ;;  %v1483_v54 = vrot.slane %v1196_v16, 2  ;;  %v6908_v29 = vld [vmem:[%s9386_s3 + $0x60] ss:$8 sps:$4 sm:$0xff]   ;;  %v6909_v49 = vld [vmem:[%s9386_s3 + $0x74] ss:$8 sps:$4 sm:$0xff]  }
 0x1a6   : > { %v1552_v62 = vadd.f32 %v1480_v28, %v7803_v2  ;;  %v1482_v39 = vsel %vm1414_vm4, %v1477_v40, %v1481_v51  ;;  %v1555_v5 = vadd.f32 %v1481_v51, %v7806_v7  ;;  %1748 = vmatprep.subr.bf16.mxu1 %v7979_v26  ;;  %v6933_v40 = vld [vmem:[%s9387_s4 + $0x120] ss:$8 sps:$4 sm:$0xff]   ;;  %v6941_v20 = vld [vmem:[%s9387_s4 + $0x134] ss:$8 sps:$4 sm:$0xff]   ;;  %v6939_v63 = vld [vmem:[%s9387_s4 + $0x130] ss:$8 sps:$4 sm:$0xff]  }
 0x1a7   : > { %v1599_v43 = vadd.f32 %v7827_v47, %v1551_v59  ;;  %v1553_v48 = vadd.f32 %v1482_v39, %v7808_v9  ;;  %v1484_v27 = vsel %vm1414_vm4, %v1479_v23, %v1483_v54  ;;  %v1556_v58 = vadd.f32 %v1483_v54, %v7811_v15  ;;  %1749 = vmatpush1.bf16.msra.mxu1 %v7976_v25  ;;  %v6911_v21 = vld [vmem:[%s9386_s3 + $0x70] ss:$8 sps:$4 sm:$0xff]   ;;  %v6912_v23 = vld [vmem:[%s9386_s3 + $0x84] ss:$8 sps:$4 sm:$0xff]   ;;  %v6914_v14 = vld [vmem:[%s9386_s3 + $0x80] ss:$8 sps:$4 sm:$0xff]  }
 0x1a8   : > { %v1603_v2 = vadd.f32 %v7827_v47, %v1555_v5  ;;  %v1554_v32 = vadd.f32 %v1484_v27, %v7813_v17  ;;  %v1600_v7 = vadd.f32 %v7830_v56, %v1552_v62  ;;  %v6917_v34 = vld [vmem:[%s9386_s3 + $0x90] ss:$8 sps:$4 sm:$0xff]   ;;  %v6944_v51 = vld [vmem:[%s9387_s4 + $0x44] ss:$8 sps:$4 sm:$0xff]   ;;  %v6945_v37 = vld [vmem:[%s9387_s4 + $0x140] ss:$8 sps:$4 sm:$0xff]  }
 0x1a9   : > { %v1635_v12 = vmax.f32 %v1599_v43, 0.0  ;;  %v1604_v33 = vadd.f32 %v7830_v56, %v1556_v58  ;;  %v1601_v3 = vadd.f32 %v7827_v47, %v1553_v48  ;;  %v6888_v47 = vld [vmem:[%s9386_s3] ss:$8 sps:$4 sm:$0xff]   ;;  %v6947_v16 = vld [vmem:[%s9387_s4 + $0x144] ss:$8 sps:$4 sm:$0xff]   ;;  %2203 = vmatprep.subr.bf16.mxu0 %v6944_v51 }
 0x1aa   : > { %v1639_v4 = vmax.f32 %v1603_v2, 0.0  ;;  %v1602_v9 = vadd.f32 %v7830_v56, %v1554_v32  ;;  %v1636_v8 = vmax.f32 %v1600_v7, 0.0  ;;  %v6891_v56 = vld [vmem:[%s9386_s3 + $0x14] ss:$8 sps:$4 sm:$0xff]   ;;  %v6948_v59 = vld [vmem:[%s9387_s4 + $0x50] ss:$8 sps:$4 sm:$0xff]  }
 0x1ab   : > { %v1640_v15 = vmax.f32 %v1604_v33, 0.0  ;;  %v1655_v53 = vpack.c.bf16 %v1635_v12, %v1633_v1  ;;  %v1637_v6 = vmax.f32 %v1601_v3, 0.0  ;;  %v6950_v28 = vld [vmem:[%s9387_s4 + $0x54] ss:$8 sps:$4 sm:$0xff]   ;;  %v6951_v54 = vld [vmem:[%s9387_s4 + $0x150] ss:$8 sps:$4 sm:$0xff]  }
 0x1ac   : > { %v1638_v61 = vmax.f32 %v1602_v9, 0.0  ;;  %v1656_v10 = vpack.c.bf16 %v1636_v8, %v1634_v36  ;;  %v6953_v62 = vld [vmem:[%s9387_s4 + $0x154] ss:$8 sps:$4 sm:$0xff]   ;;  %v6956_v39 = vld [vmem:[%s9387_s4 + $0x64] ss:$8 sps:$4 sm:$0xff]  }
 0x1ad   : > { %v1657_v55 = vpack.c.bf16 %v1639_v4, %v1637_v6  ;;  %v6959_v5 = vld [vmem:[%s9387_s4 + $0x164] ss:$8 sps:$4 sm:$0xff]   ;;  %v6954_v35 = vld [vmem:[%s9387_s4 + $0x60] ss:$8 sps:$4 sm:$0xff]   ;;  %v6960_v48 = vld [vmem:[%s9387_s4 + $0x70] ss:$8 sps:$4 sm:$0xff]  }
 0x1ae   : > { %v1658_v17 = vpack.c.bf16 %v1640_v15, %v1638_v61  ;;  %1750 = vmatprep.subr.bf16.mxu1 %v1656_v10  ;;  %v6957_v43 = vld [vmem:[%s9387_s4 + $0x160] ss:$8 sps:$4 sm:$0xff]   ;;  %v6962_v27 = vld [vmem:[%s9387_s4 + $0x74] ss:$8 sps:$4 sm:$0xff]   ;;  %v6963_v58 = vld [vmem:[%s9387_s4 + $0x170] ss:$8 sps:$4 sm:$0xff]  }
 0x1af   : > { %1751 = vmatpush1.bf16.msra.mxu1 %v1655_v53  ;;  %v1731_v11 = vsel %vm1235_vm2, %v1657_v55, 0  ;;  %v6965_v2 = vld [vmem:[%s9387_s4 + $0x174] ss:$8 sps:$4 sm:$0xff]   ;;  %v6968_v32 = vld [vmem:[%s9387_s4 + $0x84] ss:$8 sps:$4 sm:$0xff]  }
 0x1b0   : > { %6054 = vmatprep.subr.msk.bf16.mxu1 %vm1235_vm2, %v1658_v17  ;;  %v6971_v7 = vld [vmem:[%s9387_s4 + $0x184] ss:$8 sps:$4 sm:$0xff]   ;;  %v6966_v1 = vld [vmem:[%s9387_s4 + $0x80] ss:$8 sps:$4 sm:$0xff]   ;;  %v6972_v33 = vld [vmem:[%s9387_s4 + $0x90] ss:$8 sps:$4 sm:$0xff]  }
 0x1b1   : > { %v6969_v12 = vld [vmem:[%s9387_s4 + $0x180] ss:$8 sps:$4 sm:$0xff]   ;;  %v6974_v3 = vld [vmem:[%s9387_s4 + $0x94] ss:$8 sps:$4 sm:$0xff]   ;;  %v6975_v4 = vld [vmem:[%s9387_s4 + $0x190] ss:$8 sps:$4 sm:$0xff]  }
 0x1b2   : > { %v6977_v9 = vld [vmem:[%s9387_s4 + $0x194] ss:$8 sps:$4 sm:$0xff]   ;;  %v6980_v36 = vld [vmem:[%s9387_s4 + $0xa4] ss:$8 sps:$4 sm:$0xff]   ;;  %v6978_v15 = vld [vmem:[%s9387_s4 + $0xa0] ss:$8 sps:$4 sm:$0xff]  }
 0x1b3   : > { %1753 = vmatpush1.bf16.msra.mxu1 %v1731_v11  ;;  %v6983_v8 = vld [vmem:[%s9387_s4 + $0x1a4] ss:$8 sps:$4 sm:$0xff]   ;;  %v6984_v6 = vld [vmem:[%s9387_s4 + $0xb0] ss:$8 sps:$4 sm:$0xff]   ;;  %v6986_v61 = vld [vmem:[%s9387_s4 + $0xb4] ss:$8 sps:$4 sm:$0xff]  }
 0x1b4   : > { %1890 = vmatprep.subr.bf16.mxu1 %v7847_v57  ;;  %v6897_v57 = vld [vmem:[%s9386_s3 + $0x34] ss:$8 sps:$4 sm:$0xff]  }
 0x1b5   : > { %v6989_v55 = vld [vmem:[%s9387_s4 + $0x1b4] ss:$8 sps:$4 sm:$0xff]  }
 0x1b6   : > { %1769 = vmatmul.mubr.bf16.vlgmr.msra.gmra.mrb[36].mxu1 %v6888_v47  ;;  %v6990_v47 = vld [vmem:[%s9387_s4 + $0xc0] ss:$8 sps:$4 sm:$0xff]  }
 0x1b7   : > { %1891 = vmatpush1.bf16.msra.mxu1 %v7844_v45  ;;  %6056 = vmatprep.mubr.msk.bf16.mxu1 %vm1714_vm3, %v6891_v56  ;;  %v6896_v45 = vld [vmem:[%s9386_s3 + $0x20] ss:$8 sps:$4 sm:$0xff]  }
 0x1b8   : > { %1892 = vmatprep.subr.bf16.mxu1 %v7865_v50  ;;  %v6900_v50 = vld [vmem:[%s9386_s3 + $0x44] ss:$8 sps:$4 sm:$0xff]   ;;  %v6993_v56 = vld [vmem:[%s9387_s4 + $0x1c0] ss:$8 sps:$4 sm:$0xff]  }
 0x1bb   : > { %1893 = vmatpush1.bf16.msra.mxu1 %v7862_v44  ;;  %v6899_v44 = vld [vmem:[%s9386_s3 + $0x30] ss:$8 sps:$4 sm:$0xff]  }
 0x1bc   : > { %1894 = vmatprep.subr.bf16.mxu1 %v7898_v30  ;;  %v6905_v30 = vld [vmem:[%s9386_s3 + $0x54] ss:$8 sps:$4 sm:$0xff]  }
 0x1be   : > { %1779 = vmatmul.mubr.bf16.gmra.mrb[40].mxu1 %v6893_v24  ;;  %v6996_v24 = vld [vmem:[%s9387_s4 + $0xd0] ss:$8 sps:$4 sm:$0xff]  }
 0x1bf   : > { %1895 = vmatpush1.bf16.msra.mxu1 %v7895_v41  ;;  %6057 = vmatprep.mubr.msk.bf16.mxu1 %vm1714_vm3, %v6894_v38  ;;  %v6902_v41 = vld [vmem:[%s9386_s3 + $0x40] ss:$8 sps:$4 sm:$0xff]   ;;  %v6998_v38 = vld [vmem:[%s9387_s4 + $0xd4] ss:$8 sps:$4 sm:$0xff]  }
 0x1c0   : > { %1896 = vmatprep.subr.bf16.mxu1 %v7925_v22  ;;  %v6903_v22 = vld [vmem:[%s9386_s3 + $0x50] ss:$8 sps:$4 sm:$0xff]  }
 0x1c3   : > { %1897 = vmatpush1.bf16.msra.mxu1 %v7922_v18  ;;  %v6923_v18 = vld [vmem:[%s9387_s4 + $0x104] ss:$8 sps:$4 sm:$0xff]  }
 0x1c4   : > { %1898 = vmatprep.subr.bf16.mxu1 %v7943_v19  ;;  %v6921_v19 = vld [vmem:[%s9387_s4 + $0x100] ss:$8 sps:$4 sm:$0xff]  }
 0x1c6   : > { %1789 = vmatmul.mubr.bf16.gmra.mrb[44].mxu1 %v6896_v45  ;;  %v6999_v45 = vld [vmem:[%s9387_s4 + $0x1d0] ss:$8 sps:$4 sm:$0xff]  }
 0x1c7   : > { %1899 = vmatpush1.bf16.msra.mxu1 %v7940_v46  ;;  %6058 = vmatprep.mubr.msk.bf16.mxu1 %vm1714_vm3, %v6897_v57  ;;  %v6906_v46 = vld [vmem:[%s9386_s3 + $0x64] ss:$8 sps:$4 sm:$0xff]   ;;  %v7001_v57 = vld [vmem:[%s9387_s4 + $0x1d4] ss:$8 sps:$4 sm:$0xff]  }
 0x1c8   : > { %1900 = vmatprep.subr.bf16.mxu1 %v7961_v60  ;;  %v6927_v60 = vld [vmem:[%s9387_s4 + $0x110] ss:$8 sps:$4 sm:$0xff]  }
 0x1cb   : > { %1901 = vmatpush1.bf16.msra.mxu1 %v7958_v52  ;;  %v6929_v52 = vld [vmem:[%s9387_s4 + $0x114] ss:$8 sps:$4 sm:$0xff]  }
 0x1cc   : > { %1902 = vmatprep.subr.bf16.mxu1 %v7979_v26  ;;  %v6942_v26 = vld [vmem:[%s9387_s4 + $0x40] ss:$8 sps:$4 sm:$0xff]  }
 0x1cd   : > { %2204 = vmatpush1.bf16.msra.mxu0 %v6942_v26 }
 0x1ce   : > { %1799 = vmatmul.mubr.bf16.gmra.mrb[48].mxu1 %v6899_v44  ;;  %2205 = vmatprep.subr.bf16.mxu0 %v6950_v28  ;;  %v7004_v44 = vld [vmem:[%s9387_s4 + $0xe4] ss:$8 sps:$4 sm:$0xff]  }
 0x1cf   : > { %1903 = vmatpush1.bf16.msra.mxu1 %v7976_v25  ;;  %6059 = vmatprep.mubr.msk.bf16.mxu1 %vm1714_vm3, %v6900_v50  ;;  %v6915_v25 = vld [vmem:[%s9386_s3 + $0x94] ss:$8 sps:$4 sm:$0xff]   ;;  %v7007_v50 = vld [vmem:[%s9387_s4 + $0x1e4] ss:$8 sps:$4 sm:$0xff]  }
 0x1d0   : > { %1904 = vmatprep.subr.bf16.mxu1 %v1656_v10  ;;  %v6987_v10 = vld [vmem:[%s9387_s4 + $0x1b0] ss:$8 sps:$4 sm:$0xff]  }
 0x1d1   : > { %2206 = vmatpush1.bf16.msra.mxu0 %v6948_v59 }
 0x1d2   : > { %2207 = vmatprep.subr.bf16.mxu0 %v6956_v39 }
 0x1d3   : > { %1905 = vmatpush1.bf16.msra.mxu1 %v1655_v53  ;;  %v6981_v53 = vld [vmem:[%s9387_s4 + $0x1a0] ss:$8 sps:$4 sm:$0xff]  }
 0x1d4   : > { %6080 = vmatprep.subr.msk.bf16.mxu1 %vm1235_vm2, %v1658_v17  ;;  %v6992_v17 = vld [vmem:[%s9387_s4 + $0xc4] ss:$8 sps:$4 sm:$0xff]  }
 0x1d5   : > { %2208 = vmatpush1.bf16.msra.mxu0 %v6954_v35 }
 0x1d6   : > { %1809 = vmatmul.mubr.bf16.gmra.mrb[52].mxu1 %v6902_v41  ;;  %2209 = vmatprep.subr.bf16.mxu0 %v6962_v27  ;;  %v7002_v41 = vld [vmem:[%s9387_s4 + $0xe0] ss:$8 sps:$4 sm:$0xff]  }
 0x1d7   : > { %1907 = vmatpush1.bf16.msra.mxu1 %v1731_v11  ;;  %6081 = vmatprep.mubr.msk.bf16.mxu1 %vm1714_vm3, %v6905_v30  ;;  %v6995_v11 = vld [vmem:[%s9387_s4 + $0x1c4] ss:$8 sps:$4 sm:$0xff]   ;;  %v7005_v30 = vld [vmem:[%s9387_s4 + $0x1e0] ss:$8 sps:$4 sm:$0xff]  }
 0x1d8   : > { %2471 = vmatprep.subr.bf16.mxu1 %v6923_v18  ;;  %v7010_v18 = vld [vmem:[%s9387_s4 + $0xf4] ss:$8 sps:$4 sm:$0xff]  }
 0x1d9   : > { %2210 = vmatpush1.bf16.msra.mxu0 %v6960_v48 }
 0x1da   : > { %2211 = vmatprep.subr.bf16.mxu0 %v6968_v32 }
 0x1dd   : > { %2212 = vmatpush1.bf16.msra.mxu0 %v6966_v1 }
 0x1de   : > { %1923 = vmatmul.mubr.bf16.vlgmr.msra.gmra.mrb[56].mxu1 %v6903_v22  ;;  %2213 = vmatprep.subr.bf16.mxu0 %v6974_v3  ;;  %v7013_v22 = vld [vmem:[%s9387_s4 + $0x1f4] ss:$8 sps:$4 sm:$0xff]  }
 0x1df   : > { %6082 = vmatprep.mubr.msk.bf16.mxu1 %vm1714_vm3, %v6906_v46  ;;  %2472 = vmatpush1.bf16.msra.mxu1 %v6921_v19  ;;  %v7008_v46 = vld [vmem:[%s9387_s4 + $0xf0] ss:$8 sps:$4 sm:$0xff]   ;;  %v7022_v3 = vld [vmem:[%s9388_s5 + $0x14] ss:$8 sps:$4 sm:$0xff]  }
 0x1e0   : > { %2473 = vmatprep.subr.bf16.mxu1 %v6929_v52  ;;  %v7011_v19 = vld [vmem:[%s9387_s4 + $0x1f0] ss:$8 sps:$4 sm:$0xff]   ;;  %v7016_v52 = vld [vmem:[%s9388_s5 + $0x4] ss:$8 sps:$4 sm:$0xff]  }
 0x1e1   : > { %2214 = vmatpush1.bf16.msra.mxu0 %v6972_v33  ;;  %v7017_v33 = vld [vmem:[%s9388_s5 + $0xa0] ss:$8 sps:$4 sm:$0xff]  }
 0x1e2   : > { %2215 = vmatprep.subr.bf16.mxu0 %v6980_v36 }
 0x1e3   : > { %2474 = vmatpush1.bf16.msra.mxu1 %v6927_v60  ;;  %v7019_v60 = vld [vmem:[%s9388_s5 + $0xa4] ss:$8 sps:$4 sm:$0xff]  }
 0x1e4   : > { %2475 = vmatprep.subr.bf16.mxu1 %v6935_v13 }
 0x1e5   : > { %2216 = vmatpush1.bf16.msra.mxu0 %v6978_v15 }
 0x1e6   : > { %1933 = vmatmul.mubr.bf16.gmra.mrb[60].mxu1 %v6908_v29  ;;  %2217 = vmatprep.subr.bf16.mxu0 %v6986_v61  ;;  %v7023_v61 = vld [vmem:[%s9388_s5 + $0xb0] ss:$8 sps:$4 sm:$0xff]  }
 0x1e7   : > { %6083 = vmatprep.mubr.msk.bf16.mxu1 %vm1714_vm3, %v6909_v49  ;;  %2476 = vmatpush1.bf16.msra.mxu1 %v6933_v40 }
 0x1e8   : > { %2477 = vmatprep.subr.bf16.mxu1 %v6941_v20 }
 0x1e9   : > { %2218 = vmatpush1.bf16.msra.mxu0 %v6984_v6  ;;  %v7020_v6 = vld [vmem:[%s9388_s5 + $0x10] ss:$8 sps:$4 sm:$0xff]  }
 0x1ea   : > { %2219 = vmatprep.subr.bf16.mxu0 %v6992_v17  ;;  %v7028_v17 = vld [vmem:[%s9388_s5 + $0x24] ss:$8 sps:$4 sm:$0xff]  }
 0x1eb   : > { %2478 = vmatpush1.bf16.msra.mxu1 %v6939_v63 }
 0x1ec   : > { %2479 = vmatprep.subr.bf16.mxu1 %v6947_v16 }
 0x1ed   : > { %2220 = vmatpush1.bf16.msra.mxu0 %v6990_v47 }
 0x1ee   : > { %1943 = vmatmul.mubr.bf16.gmra.mrb[64].mxu1 %v6911_v21  ;;  %2221 = vmatprep.subr.bf16.mxu0 %v6998_v38  ;;  %v7026_v38 = vld [vmem:[%s9388_s5 + $0x20] ss:$8 sps:$4 sm:$0xff]  }
 0x1ef   : > { %6084 = vmatprep.mubr.msk.bf16.mxu1 %vm1714_vm3, %v6912_v23  ;;  %2480 = vmatpush1.bf16.msra.mxu1 %v6945_v37 }
 0x1f0   : > { %2481 = vmatprep.subr.bf16.mxu1 %v6953_v62 }
 0x1f1   : > { %2222 = vmatpush1.bf16.msra.mxu0 %v6996_v24 }
 0x1f2   : > { %2223 = vmatprep.subr.bf16.mxu0 %v7004_v44  ;;  %v7037_v44 = vld [vmem:[%s9388_s5 + $0xd4] ss:$8 sps:$4 sm:$0xff]  }
 0x1f3   : > { %2482 = vmatpush1.bf16.msra.mxu1 %v6951_v54 }
 0x1f4   : > { %2483 = vmatprep.subr.bf16.mxu1 %v6959_v5 }
 0x1f5   : > { %2224 = vmatpush1.bf16.msra.mxu0 %v7002_v41 }
 0x1f6   : > { %1953 = vmatmul.mubr.bf16.gmra.mrb[68].mxu1 %v6914_v14  ;;  %2225 = vmatprep.subr.bf16.mxu0 %v7010_v18 }
 0x1f7   : > { %6085 = vmatprep.mubr.msk.bf16.mxu1 %vm1714_vm3, %v6915_v25  ;;  %2484 = vmatpush1.bf16.msra.mxu1 %v6957_v43 }
 0x1f8   : > { %2485 = vmatprep.subr.bf16.mxu1 %v6965_v2 }
 0x1f9   : > { %2226 = vmatpush1.bf16.msra.mxu0 %v7008_v46  ;;  %v7032_v46 = vld [vmem:[%s9388_s5 + $0x30] ss:$8 sps:$4 sm:$0xff]  }
 0x1fa   : > { %2720 = vmatprep.subr.bf16.mxu0 %v7016_v52 }
 0x1fb   : > { %2486 = vmatpush1.bf16.msra.mxu1 %v6963_v58 }
 0x1fc   : > { %2487 = vmatprep.subr.bf16.mxu1 %v6971_v7 }
 0x1fe   : > { %1963 = vmatmul.mubr.bf16.gmra.mrb[72].mxu1 %v6917_v34 }
 0x1ff   : > { %2488 = vmatpush1.bf16.msra.mxu1 %v6969_v12  ;;  %v7014_v12 = vld [vmem:[%s9388_s5] ss:$8 sps:$4 sm:$0xff]  }
 0x200   : > { %2489 = vmatprep.subr.bf16.mxu1 %v6977_v9 }
 0x203   : > { %2490 = vmatpush1.bf16.msra.mxu1 %v6975_v4  ;;  %v7025_v4 = vld [vmem:[%s9388_s5 + $0xb4] ss:$8 sps:$4 sm:$0xff]  }
 0x204   : > { %2491 = vmatprep.subr.bf16.mxu1 %v6983_v8 }
 0x207   : > { %2492 = vmatpush1.bf16.msra.mxu1 %v6981_v53 }
 0x208   : > { %2493 = vmatprep.subr.bf16.mxu1 %v6989_v55 }
 0x20b   : > { %2494 = vmatpush1.bf16.msra.mxu1 %v6987_v10 }
 0x20c   : > { %2495 = vmatprep.subr.bf16.mxu1 %v6995_v11  ;;  %v7031_v11 = vld [vmem:[%s9388_s5 + $0xc4] ss:$8 sps:$4 sm:$0xff]  }
 0x20f   : > { %2496 = vmatpush1.bf16.msra.mxu1 %v6993_v56 }
 0x210   : > { %2497 = vmatprep.subr.bf16.mxu1 %v7001_v57  ;;  %v7034_v57 = vld [vmem:[%s9388_s5 + $0x34] ss:$8 sps:$4 sm:$0xff]  }
 0x213   : > { %2498 = vmatpush1.bf16.msra.mxu1 %v6999_v45  ;;  %v7029_v45 = vld [vmem:[%s9388_s5 + $0xc0] ss:$8 sps:$4 sm:$0xff]  }
 0x214   : > { %2499 = vmatprep.subr.bf16.mxu1 %v7007_v50 }
 0x217   : > { %2500 = vmatpush1.bf16.msra.mxu1 %v7005_v30 }
 0x218   : > { %2501 = vmatprep.subr.bf16.mxu1 %v7013_v22 }
 0x21b   : > { %2502 = vmatpush1.bf16.msra.mxu1 %v7011_v19  ;;  %v7035_v19 = vld [vmem:[%s9388_s5 + $0xd0] ss:$8 sps:$4 sm:$0xff]  }
 0x21c   : > { %2924 = vmatprep.subr.bf16.mxu1 %v7019_v60 }
 0x289   : > { %v1770_v13 = vpop.f32.mrb[36].mxu1 }
 0x28a   : > { %v1772_v29 = vpop.f32.mrb[37].mxu1 }
 0x28b   : > { %v1774_v49 = vpop.f32.mrb[38].mxu1 }
 0x28c   : > { %v1776_v40 = vpop.f32.mrb[39].mxu1 }
 0x291   : > { %v1780_v20 = vpop.f32.mrb[40].mxu1 }
 0x292   : > { %v1782_v63 = vpop.f32.mrb[41].mxu1 }
 0x293   : > { %v1784_v21 = vpop.f32.mrb[42].mxu1 }
 0x294   : > { %v1786_v23 = vpop.f32.mrb[43].mxu1 }
 0x299   : > { %v8257_v14 = vpop.f32.mrb[44].mxu1 }
 0x29a   : > { %v8259_v25 = vpop.f32.mrb[45].mxu1 }
 0x29b   : > { %v8261_v34 = vpop.f32.mrb[46].mxu1 }
 0x29c   : > { %v8263_v51 = vpop.f32.mrb[47].mxu1 }
 0x2a1   : > { %v8265_v16 = vpop.f32.mrb[48].mxu1 }
 0x2a2   : > { %v8267_v26 = vpop.f32.mrb[49].mxu1 }
 0x2a3   : > { %v8269_v37 = vpop.f32.mrb[50].mxu1 }
 0x2a4   : > { %v8271_v59 = vpop.f32.mrb[51].mxu1 }
 0x2a9   : > { %v8273_v28 = vpop.f32.mrb[52].mxu1 }
 0x2aa   : > { %v8275_v54 = vpop.f32.mrb[53].mxu1 }
 0x2ab   : > { %v8277_v62 = vpop.f32.mrb[54].mxu1 }
 0x2ac   : > { %v8279_v39 = vpop.f32.mrb[55].mxu1 }
 0x2b1   : > { %v1924_v5 = vpop.f32.mrb[56].mxu1 }
 0x2b2   : > { %v1973_v35 = vmax.f32 %v1770_v13, %v1924_v5  ;;  %v1926_v43 = vpop.f32.mrb[57].mxu1  ;;  %v7040_v13 = vld [vmem:[%s9388_s5 + $0x44] ss:$8 sps:$4 sm:$0xff]  }
 0x2b3   : > { %v1974_v48 = vmax.f32 %v1772_v29, %v1926_v43  ;;  %v1928_v27 = vpop.f32.mrb[58].mxu1  ;;  %v7043_v29 = vld [vmem:[%s9388_s5 + $0xe4] ss:$8 sps:$4 sm:$0xff]   ;;  %v7044_v43 = vld [vmem:[%s9388_s5 + $0x50] ss:$8 sps:$4 sm:$0xff]  }
 0x2b4   : > { %v1975_v58 = vmax.f32 %v1774_v49, %v1928_v27  ;;  %v1930_v2 = vpop.f32.mrb[59].mxu1 }
 0x2b5   : > { %v1976_v32 = vmax.f32 %v1776_v40, %v1930_v2 }
 0x2b6   : > { %v1993_v7 = vpack.c.bf16 %v1975_v58, %v1973_v35 }
 0x2b7   : > { %v1994_v1 = vpack.c.bf16 %v1976_v32, %v1974_v48  ;;  %v7047_v48 = vld [vmem:[%s9388_s5 + $0xf0] ss:$8 sps:$4 sm:$0xff]  }
 0x2b9   : > { %v1934_v9 = vpop.f32.mrb[60].mxu1  ;;  %2227 = vmatprep.mubr.bf16.mxu0 %v1994_v1  ;;  %2503 = vmatprep.mubr.bf16.mxu1 %v1994_v1  ;;  %v7053_v1 = vld [vmem:[%s9388_s5 + $0x100] ss:$8 sps:$4 sm:$0xff]  }
 0x2ba   : > { %v1977_v36 = vmax.f32 %v1780_v20, %v1934_v9  ;;  %v1936_v8 = vpop.f32.mrb[61].mxu1  ;;  %2228 = vmatmul.mubr.bf16.vlgmr.msra.gmra.mrb[72].mxu0 %v1993_v7  ;;  %2504 = vmatmul.mubr.bf16.vlgmr.msra.gmra.mrb[76].mxu1 %v1993_v7 }
 0x2bb   : > { %v1978_v15 = vmax.f32 %v1782_v63, %v1936_v8  ;;  %v1938_v53 = vpop.f32.mrb[62].mxu1  ;;  %2721 = vmatpush1.bf16.msra.mxu0 %v7014_v12  ;;  %2925 = vmatpush1.bf16.msra.mxu1 %v7017_v33  ;;  %v7038_v63 = vld [vmem:[%s9388_s5 + $0x40] ss:$8 sps:$4 sm:$0xff]   ;;  %v7058_v12 = vld [vmem:[%s9388_s5 + $0x74] ss:$8 sps:$4 sm:$0xff]  }
 0x2bc   : > { %v1979_v10 = vmax.f32 %v1784_v21, %v1938_v53  ;;  %v1940_v55 = vpop.f32.mrb[63].mxu1  ;;  %2722 = vmatprep.subr.bf16.mxu0 %v7022_v3  ;;  %2926 = vmatprep.subr.bf16.mxu1 %v7025_v4  ;;  %v7041_v21 = vld [vmem:[%s9388_s5 + $0xe0] ss:$8 sps:$4 sm:$0xff]   ;;  %v7056_v8 = vld [vmem:[%s9388_s5 + $0x70] ss:$8 sps:$4 sm:$0xff]  }
 0x2bd   : > { %v1980_v47 = vmax.f32 %v1786_v23, %v1940_v55  ;;  %v7046_v23 = vld [vmem:[%s9388_s5 + $0x54] ss:$8 sps:$4 sm:$0xff]   ;;  %v7065_v55 = vld [vmem:[%s9388_s5 + $0x120] ss:$8 sps:$4 sm:$0xff]  }
 0x2be   : > { %v1995_v56 = vpack.c.bf16 %v1979_v10, %v1977_v36  ;;  %v7064_v10 = vld [vmem:[%s9388_s5 + $0x84] ss:$8 sps:$4 sm:$0xff]  }
 0x2bf   : > { %v1996_v24 = vpack.c.bf16 %v1980_v47, %v1978_v15  ;;  %2723 = vmatpush1.bf16.msra.mxu0 %v7020_v6  ;;  %2927 = vmatpush1.bf16.msra.mxu1 %v7023_v61  ;;  %v7059_v15 = vld [vmem:[%s9388_s5 + $0x110] ss:$8 sps:$4 sm:$0xff]  }
 0x2c0   : > { %2724 = vmatprep.subr.bf16.mxu0 %v7028_v17  ;;  %2928 = vmatprep.subr.bf16.mxu1 %v7031_v11  ;;  %v7070_v17 = vld [vmem:[%s9388_s5 + $0x94] ss:$8 sps:$4 sm:$0xff]   ;;  %v7068_v47 = vld [vmem:[%s9388_s5 + $0x90] ss:$8 sps:$4 sm:$0xff]  }
 0x2c1   : > { %v1944_v50 = vpop.f32.mrb[64].mxu1  ;;  %2237 = vmatprep.mubr.bf16.mxu0 %v1996_v24  ;;  %2513 = vmatprep.mubr.bf16.mxu1 %v1996_v24  ;;  %v7073_v11 = vld [vmem:[%s9388_s5 + $0x134] ss:$8 sps:$4 sm:$0xff]   ;;  %v7076_v24 = vld [vmem:[%s9388_s5 + $0x144] ss:$8 sps:$4 sm:$0xff]  }
 0x2c2   : > { %v1981_v41 = vmax.f32 %v8257_v14, %v1944_v50  ;;  %v1946_v30 = vpop.f32.mrb[65].mxu1  ;;  %2238 = vmatmul.mubr.bf16.gmra.mrb[76].mxu0 %v1995_v56  ;;  %2514 = vmatmul.mubr.bf16.gmra.mrb[80].mxu1 %v1995_v56  ;;  %v7049_v14 = vld [vmem:[%s9388_s5 + $0xf4] ss:$8 sps:$4 sm:$0xff]   ;;  %v7071_v56 = vld [vmem:[%s9388_s5 + $0x130] ss:$8 sps:$4 sm:$0xff]  }
 0x2c3   : > { %v1982_v18 = vmax.f32 %v8259_v25, %v1946_v30  ;;  %v1948_v22 = vpop.f32.mrb[66].mxu1  ;;  %2725 = vmatpush1.bf16.msra.mxu0 %v7026_v38  ;;  %2929 = vmatpush1.bf16.msra.mxu1 %v7029_v45 }
 0x2c4   : > { %v1983_v52 = vmax.f32 %v8261_v34, %v1948_v22  ;;  %v1950_v60 = vpop.f32.mrb[67].mxu1  ;;  %2726 = vmatprep.subr.bf16.mxu0 %v7034_v57  ;;  %2930 = vmatprep.subr.bf16.mxu1 %v7037_v44 }
 0x2c5   : > { %v1984_v49 = vmax.f32 %v8263_v51, %v1950_v60 }
 0x2c6   : > { %v1997_v40 = vpack.c.bf16 %v1983_v52, %v1981_v41 }
 0x2c7   : > { %v1998_v20 = vpack.c.bf16 %v1984_v49, %v1982_v18  ;;  %2727 = vmatpush1.bf16.msra.mxu0 %v7032_v46  ;;  %2931 = vmatpush1.bf16.msra.mxu1 %v7035_v19  ;;  %v7079_v49 = vld [vmem:[%s9388_s5 + $0x154] ss:$8 sps:$4 sm:$0xff]  }
 0x2c8   : > { %2728 = vmatprep.subr.bf16.mxu0 %v7040_v13  ;;  %2932 = vmatprep.subr.bf16.mxu1 %v7043_v29  ;;  %v7074_v29 = vld [vmem:[%s9388_s5 + $0x140] ss:$8 sps:$4 sm:$0xff]  }
 0x2c9   : > { %v1954_v25 = vpop.f32.mrb[68].mxu1  ;;  %2247 = vmatprep.mubr.bf16.mxu0 %v1998_v20  ;;  %2523 = vmatprep.mubr.bf16.mxu1 %v1998_v20 }
 0x2ca   : > { %v1985_v34 = vmax.f32 %v8265_v16, %v1954_v25  ;;  %v1956_v51 = vpop.f32.mrb[69].mxu1  ;;  %2248 = vmatmul.mubr.bf16.gmra.mrb[80].mxu0 %v1997_v40  ;;  %2524 = vmatmul.mubr.bf16.gmra.mrb[84].mxu1 %v1997_v40  ;;  %v7052_v16 = vld [vmem:[%s9388_s5 + $0x64] ss:$8 sps:$4 sm:$0xff]  }
 0x2cb   : > { %v1986_v5 = vmax.f32 %v8267_v26, %v1956_v51  ;;  %v1958_v35 = vpop.f32.mrb[70].mxu1  ;;  %2729 = vmatpush1.bf16.msra.mxu0 %v7038_v63  ;;  %2933 = vmatpush1.bf16.msra.mxu1 %v7041_v21  ;;  %v7055_v26 = vld [vmem:[%s9388_s5 + $0x104] ss:$8 sps:$4 sm:$0xff]   ;;  %v7077_v51 = vld [vmem:[%s9388_s5 + $0x150] ss:$8 sps:$4 sm:$0xff]  }
 0x2cc   : > { %v1987_v27 = vmax.f32 %v8269_v37, %v1958_v35  ;;  %v1960_v58 = vpop.f32.mrb[71].mxu1  ;;  %2730 = vmatprep.subr.bf16.mxu0 %v7046_v23  ;;  %2934 = vmatprep.subr.bf16.mxu1 %v7049_v14  ;;  %v7050_v37 = vld [vmem:[%s9388_s5 + $0x60] ss:$8 sps:$4 sm:$0xff]  }
 0x2cd   : > { %v1988_v2 = vmax.f32 %v8271_v59, %v1960_v58  ;;  %v7061_v59 = vld [vmem:[%s9388_s5 + $0x114] ss:$8 sps:$4 sm:$0xff]  }
 0x2ce   : > { %v1999_v32 = vpack.c.bf16 %v1987_v27, %v1985_v34 }
 0x2cf   : > { %v2000_v7 = vpack.c.bf16 %v1988_v2, %v1986_v5  ;;  %2731 = vmatpush1.bf16.msra.mxu0 %v7044_v43  ;;  %2935 = vmatpush1.bf16.msra.mxu1 %v7047_v48  ;;  %v7082_v48 = vld [vmem:[%s9388_s5 + $0x164] ss:$8 sps:$4 sm:$0xff]   ;;  %v7085_v2 = vld [vmem:[%s9388_s5 + $0x174] ss:$8 sps:$4 sm:$0xff]  }
 0x2d0   : > { %2732 = vmatprep.subr.bf16.mxu0 %v7052_v16  ;;  %2936 = vmatprep.subr.bf16.mxu1 %v7055_v26  ;;  %v7080_v26 = vld [vmem:[%s9388_s5 + $0x160] ss:$8 sps:$4 sm:$0xff]  }
 0x2d1   : > { %v1964_v33 = vpop.f32.mrb[72].mxu1  ;;  %2257 = vmatprep.mubr.bf16.mxu0 %v2000_v7  ;;  %2533 = vmatprep.mubr.bf16.mxu1 %v2000_v7 }
 0x2d2   : > { %v1989_v3 = vmax.f32 %v8273_v28, %v1964_v33  ;;  %v1966_v4 = vpop.f32.mrb[73].mxu1  ;;  %2258 = vmatmul.mubr.bf16.gmra.mrb[84].mxu0 %v1999_v32  ;;  %2534 = vmatmul.mubr.bf16.gmra.mrb[88].mxu1 %v1999_v32 }
 0x2d3   : > { %v1990_v9 = vmax.f32 %v8275_v54, %v1966_v4  ;;  %v1968_v36 = vpop.f32.mrb[74].mxu1  ;;  %2733 = vmatpush1.bf16.msra.mxu0 %v7050_v37  ;;  %2937 = vmatpush1.bf16.msra.mxu1 %v7053_v1  ;;  %v7083_v4 = vld [vmem:[%s9388_s5 + $0x170] ss:$8 sps:$4 sm:$0xff]  }
 0x2d4   : > { %v1991_v53 = vmax.f32 %v8277_v62, %v1968_v36  ;;  %v1970_v6 = vpop.f32.mrb[75].mxu1  ;;  %2734 = vmatprep.subr.bf16.mxu0 %v7058_v12  ;;  %2938 = vmatprep.subr.bf16.mxu1 %v7061_v59  ;;  %v7067_v62 = vld [vmem:[%s9388_s5 + $0x124] ss:$8 sps:$4 sm:$0xff]  }
 0x2d5   : > { %v1992_v28 = vmax.f32 %v8279_v39, %v1970_v6  ;;  %v7062_v39 = vld [vmem:[%s9388_s5 + $0x80] ss:$8 sps:$4 sm:$0xff]  }
 0x2d6   : > { %v2001_v61 = vpack.c.bf16 %v1991_v53, %v1989_v3 }
 0x2d7   : > { %v2002_v54 = vpack.c.bf16 %v1992_v28, %v1990_v9  ;;  %2735 = vmatpush1.bf16.msra.mxu0 %v7056_v8  ;;  %2939 = vmatpush1.bf16.msra.mxu1 %v7059_v15  ;;  %v7088_v15 = vld [vmem:[%s9388_s5 + $0x184] ss:$8 sps:$4 sm:$0xff]  }
 0x2d8   : > { %2736 = vmatprep.subr.bf16.mxu0 %v7064_v10  ;;  %2940 = vmatprep.subr.bf16.mxu1 %v7067_v62 }
 0x2d9   : > { %2267 = vmatprep.mubr.bf16.mxu0 %v2002_v54  ;;  %2543 = vmatprep.mubr.bf16.mxu1 %v2002_v54  ;;  %v7091_v54 = vld [vmem:[%s9388_s5 + $0x194] ss:$8 sps:$4 sm:$0xff]  }
 0x2da   : > { %2268 = vmatmul.mubr.bf16.gmra.mrb[88].mxu0 %v2001_v61  ;;  %2544 = vmatmul.mubr.bf16.gmra.mrb[92].mxu1 %v2001_v61  ;;  %v7086_v61 = vld [vmem:[%s9388_s5 + $0x180] ss:$8 sps:$4 sm:$0xff]  }
 0x2db   : > { %2737 = vmatpush1.bf16.msra.mxu0 %v7062_v39  ;;  %2941 = vmatpush1.bf16.msra.mxu1 %v7065_v55 }
 0x2dc   : > { %2738 = vmatprep.subr.bf16.mxu0 %v7070_v17  ;;  %2942 = vmatprep.subr.bf16.mxu1 %v7073_v11 }
 0x2df   : > { %2739 = vmatpush1.bf16.msra.mxu0 %v7068_v47  ;;  %2943 = vmatpush1.bf16.msra.mxu1 %v7071_v56 }
 0x2e0   : > { %3128 = vmatprep.subr.bf16.mxu0 %v7076_v24  ;;  %6802 = vmatprep.subr.bf16.mxu1 %v7076_v24  ;;  %v7089_v24 = vld [vmem:[%s9388_s5 + $0x190] ss:$8 sps:$4 sm:$0xff]  }
 0x38d   : > { %v2229_v38 = vpop.f32.mrb[72].mxu0  ;;  %v2505_v45 = vpop.f32.mrb[76].mxu1 }
 0x38e   : > { %v2554_v57 = vmax.f32 %v2229_v38, %v2505_v45  ;;  %v2231_v44 = vpop.f32.mrb[73].mxu0  ;;  %v2507_v50 = vpop.f32.mrb[77].mxu1 }
 0x38f   : > { %v2555_v41 = vmax.f32 %v2231_v44, %v2507_v50  ;;  %v2233_v30 = vpop.f32.mrb[74].mxu0  ;;  %v2509_v18 = vpop.f32.mrb[78].mxu1  ;;  %v7094_v44 = vld [vmem:[%s9388_s5 + $0x1a4] ss:$8 sps:$4 sm:$0xff]  }
 0x390   : > { %v2556_v22 = vmax.f32 %v2233_v30, %v2509_v18  ;;  %v2235_v46 = vpop.f32.mrb[75].mxu0  ;;  %v2511_v19 = vpop.f32.mrb[79].mxu1  ;;  %v7092_v18 = vld [vmem:[%s9388_s5 + $0x1a0] ss:$8 sps:$4 sm:$0xff]  }
 0x391   : > { %v2557_v52 = vmax.f32 %v2235_v46, %v2511_v19 }
 0x392   : > { %v8410_v60 = vpack.c.bf16 %v2556_v22, %v2554_v57  ;;  %v7097_v22 = vld [vmem:[%s9388_s5 + $0x1b4] ss:$8 sps:$4 sm:$0xff]  }
 0x393   : > { %v8412_v13 = vpack.c.bf16 %v2557_v52, %v2555_v41 }
 0x395   : > { %v2239_v40 = vpop.f32.mrb[76].mxu0  ;;  %v2515_v20 = vpop.f32.mrb[80].mxu1  ;;  %6202 = vmatprep.mubr.msk.bf16.mxu0 %vm2704_vm5, %v8412_v13  ;;  %6247 = vmatprep.mubr.msk.bf16.mxu1 %vm2704_vm5, %v8412_v13 }
 0x396   : > { %v2558_v63 = vmax.f32 %v2239_v40, %v2515_v20  ;;  %v2241_v21 = vpop.f32.mrb[77].mxu0  ;;  %v2517_v23 = vpop.f32.mrb[81].mxu1  ;;  %2753 = vmatmul.mubr.bf16.vlgmr.msra.gmra.mrb[92].mxu0 %v8410_v60  ;;  %2957 = vmatmul.mubr.bf16.vlgmr.msra.gmra.mrb[96].mxu1 %v8410_v60 }
 0x397   : > { %v2559_v14 = vmax.f32 %v2241_v21, %v2517_v23  ;;  %v2243_v25 = vpop.f32.mrb[78].mxu0  ;;  %v2519_v34 = vpop.f32.mrb[82].mxu1  ;;  %3129 = vmatpush1.bf16.msra.mxu0 %v7074_v29  ;;  %6812 = vmatpush1.bf16.msra.mxu1 %v7074_v29  ;;  %v7095_v21 = vld [vmem:[%s9388_s5 + $0x1b0] ss:$8 sps:$4 sm:$0xff]  }
 0x398   : > { %v2560_v5 = vmax.f32 %v2243_v25, %v2519_v34  ;;  %v2245_v35 = vpop.f32.mrb[79].mxu0  ;;  %v2521_v43 = vpop.f32.mrb[83].mxu1  ;;  %3130 = vmatprep.subr.bf16.mxu0 %v7079_v49  ;;  %6803 = vmatprep.subr.bf16.mxu1 %v7079_v49  ;;  %v7100_v34 = vld [vmem:[%s9388_s5 + $0x1c4] ss:$8 sps:$4 sm:$0xff]  }
 0x399   : > { %v2561_v27 = vmax.f32 %v2245_v35, %v2521_v43  ;;  %v7098_v43 = vld [vmem:[%s9388_s5 + $0x1c0] ss:$8 sps:$4 sm:$0xff]  }
 0x39a   : > { %v8432_v58 = vpack.c.bf16 %v2560_v5, %v2558_v63 }
 0x39b   : > { %v8434_v16 = vpack.c.bf16 %v2561_v27, %v2559_v14  ;;  %3131 = vmatpush1.bf16.msra.mxu0 %v7077_v51  ;;  %6813 = vmatpush1.bf16.msra.mxu1 %v7077_v51  ;;  %v7101_v27 = vld [vmem:[%s9388_s5 + $0x1d0] ss:$8 sps:$4 sm:$0xff]  }
 0x39c   : > { %3132 = vmatprep.subr.bf16.mxu0 %v7082_v48  ;;  %6804 = vmatprep.subr.bf16.mxu1 %v7082_v48  ;;  %v7103_v48 = vld [vmem:[%s9388_s5 + $0x1d4] ss:$8 sps:$4 sm:$0xff]  }
 0x39d   : > { %v2249_v32 = vpop.f32.mrb[80].mxu0  ;;  %v2525_v7 = vpop.f32.mrb[84].mxu1  ;;  %6203 = vmatprep.mubr.msk.bf16.mxu0 %vm2704_vm5, %v8434_v16  ;;  %6248 = vmatprep.mubr.msk.bf16.mxu1 %vm2704_vm5, %v8434_v16 }
 0x39e   : > { %v2562_v37 = vmax.f32 %v2249_v32, %v2525_v7  ;;  %v2251_v1 = vpop.f32.mrb[81].mxu0  ;;  %v2527_v12 = vpop.f32.mrb[85].mxu1  ;;  %2763 = vmatmul.mubr.bf16.gmra.mrb[96].mxu0 %v8432_v58  ;;  %2967 = vmatmul.mubr.bf16.gmra.mrb[100].mxu1 %v8432_v58 }
 0x39f   : > { %v2563_v59 = vmax.f32 %v2251_v1, %v2527_v12  ;;  %v2253_v33 = vpop.f32.mrb[82].mxu0  ;;  %v2529_v3 = vpop.f32.mrb[86].mxu1  ;;  %3133 = vmatpush1.bf16.msra.mxu0 %v7080_v26  ;;  %6814 = vmatpush1.bf16.msra.mxu1 %v7080_v26 }
 0x3a0   : > { %v2564_v9 = vmax.f32 %v2253_v33, %v2529_v3  ;;  %v2255_v36 = vpop.f32.mrb[83].mxu0  ;;  %v2531_v8 = vpop.f32.mrb[87].mxu1  ;;  %3134 = vmatprep.subr.bf16.mxu0 %v7085_v2  ;;  %6805 = vmatprep.subr.bf16.mxu1 %v7085_v2 }
 0x3a1   : > { %v2565_v53 = vmax.f32 %v2255_v36, %v2531_v8 }
 0x3a2   : > { %v8454_v6 = vpack.c.bf16 %v2564_v9, %v2562_v37 }
 0x3a3   : > { %v8456_v28 = vpack.c.bf16 %v2565_v53, %v2563_v59  ;;  %3135 = vmatpush1.bf16.msra.mxu0 %v7083_v4  ;;  %6815 = vmatpush1.bf16.msra.mxu1 %v7083_v4 }
 0x3a4   : > { %3136 = vmatprep.subr.bf16.mxu0 %v7088_v15  ;;  %6806 = vmatprep.subr.bf16.mxu1 %v7088_v15 }
 0x3a5   : > { %v2259_v10 = vpop.f32.mrb[84].mxu0  ;;  %v2535_v62 = vpop.f32.mrb[88].mxu1  ;;  %6204 = vmatprep.mubr.msk.bf16.mxu0 %vm2704_vm5, %v8456_v28  ;;  %6249 = vmatprep.mubr.msk.bf16.mxu1 %vm2704_vm5, %v8456_v28 }
 0x3a6   : > { %v2566_v39 = vmax.f32 %v2259_v10, %v2535_v62  ;;  %v2261_v55 = vpop.f32.mrb[85].mxu0  ;;  %v2537_v17 = vpop.f32.mrb[89].mxu1  ;;  %2773 = vmatmul.mubr.bf16.gmra.mrb[100].mxu0 %v8454_v6  ;;  %2977 = vmatmul.mubr.bf16.gmra.mrb[104].mxu1 %v8454_v6 }
 0x3a7   : > { %v2567_v11 = vmax.f32 %v2261_v55, %v2537_v17  ;;  %v2263_v47 = vpop.f32.mrb[86].mxu0  ;;  %v2539_v56 = vpop.f32.mrb[90].mxu1  ;;  %3137 = vmatpush1.bf16.msra.mxu0 %v7086_v61  ;;  %6816 = vmatpush1.bf16.msra.mxu1 %v7086_v61 }
 0x3a8   : > { %v2568_v38 = vmax.f32 %v2263_v47, %v2539_v56  ;;  %v2265_v45 = vpop.f32.mrb[87].mxu0  ;;  %v2541_v57 = vpop.f32.mrb[91].mxu1  ;;  %3138 = vmatprep.subr.bf16.mxu0 %v7091_v54  ;;  %6807 = vmatprep.subr.bf16.mxu1 %v7091_v54 }
 0x3a9   : > { %v2569_v50 = vmax.f32 %v2265_v45, %v2541_v57 }
 0x3aa   : > { %v2580_v41 = vpack.c.bf16 %v2568_v38, %v2566_v39 }
 0x3ab   : > { %v2581_v30 = vpack.c.bf16 %v2569_v50, %v2567_v11  ;;  %3139 = vmatpush1.bf16.msra.mxu0 %v7089_v24  ;;  %6817 = vmatpush1.bf16.msra.mxu1 %v7089_v24 }
 0x3ac   : > { %3140 = vmatprep.subr.bf16.mxu0 %v7094_v44  ;;  %6808 = vmatprep.subr.bf16.mxu1 %v7094_v44 }
 0x3ad   : > { %v2269_v46 = vpop.f32.mrb[88].mxu0  ;;  %v2545_v19 = vpop.f32.mrb[92].mxu1  ;;  %6205 = vmatprep.mubr.msk.bf16.mxu0 %vm2704_vm5, %v2581_v30  ;;  %6250 = vmatprep.mubr.msk.bf16.mxu1 %vm2704_vm5, %v2581_v30 }
 0x3ae   : > { %v2570_v52 = vmax.f32 %v2269_v46, %v2545_v19  ;;  %v2271_v29 = vpop.f32.mrb[89].mxu0  ;;  %v2547_v49 = vpop.f32.mrb[93].mxu1  ;;  %2783 = vmatmul.mubr.bf16.gmra.mrb[104].mxu0 %v2580_v41  ;;  %2987 = vmatmul.mubr.bf16.gmra.mrb[108].mxu1 %v2580_v41 }
 0x3af   : > { %v2571_v40 = vmax.f32 %v2271_v29, %v2547_v49  ;;  %v2273_v20 = vpop.f32.mrb[90].mxu0  ;;  %v2549_v63 = vpop.f32.mrb[94].mxu1  ;;  %3141 = vmatpush1.bf16.msra.mxu0 %v7092_v18  ;;  %6818 = vmatpush1.bf16.msra.mxu1 %v7092_v18 }
 0x3b0   : > { %v2572_v23 = vmax.f32 %v2273_v20, %v2549_v63  ;;  %v2275_v14 = vpop.f32.mrb[91].mxu0  ;;  %v2551_v25 = vpop.f32.mrb[95].mxu1  ;;  %3142 = vmatprep.subr.bf16.mxu0 %v7097_v22  ;;  %6809 = vmatprep.subr.bf16.mxu1 %v7097_v22 }
 0x3b1   : > { %v2573_v51 = vmax.f32 %v2275_v14, %v2551_v25 }
 0x3b2   : > { %v2582_v5 = vpack.c.bf16 %v2572_v23, %v2570_v52 }
 0x3b3   : > { %v2583_v35 = vpack.c.bf16 %v2573_v51, %v2571_v40  ;;  %3143 = vmatpush1.bf16.msra.mxu0 %v7095_v21  ;;  %6819 = vmatpush1.bf16.msra.mxu1 %v7095_v21 }
 0x3b4   : > { %3144 = vmatprep.subr.bf16.mxu0 %v7100_v34  ;;  %6810 = vmatprep.subr.bf16.mxu1 %v7100_v34 }
 0x3b5   : > { %6206 = vmatprep.mubr.msk.bf16.mxu0 %vm2704_vm5, %v2583_v35  ;;  %6251 = vmatprep.mubr.msk.bf16.mxu1 %vm2704_vm5, %v2583_v35 }
 0x3b6   : > { %2793 = vmatmul.mubr.bf16.gmra.mrb[108].mxu0 %v2582_v5  ;;  %2997 = vmatmul.mubr.bf16.gmra.mrb[112].mxu1 %v2582_v5 }
 0x3b7   : > { %3145 = vmatpush1.bf16.msra.mxu0 %v7098_v43  ;;  %6820 = vmatpush1.bf16.msra.mxu1 %v7098_v43 }
 0x3b8   : > { %6292 = vmatprep.mubr.msk.bf16.mxu0 %vm2704_vm5, %v8412_v13  ;;  %6295 = vmatprep.mubr.msk.bf16.mxu1 %vm2704_vm5, %v2581_v30 }
 0x3b9   : > { %3146 = vmatprep.subr.bf16.mxu0 %v7103_v48  ;;  %6811 = vmatprep.subr.bf16.mxu1 %v7103_v48 }
 0x3bb   : > { %3147 = vmatpush1.bf16.msra.mxu0 %v7101_v27  ;;  %6821 = vmatpush1.bf16.msra.mxu1 %v7101_v27 }
 0x3be   : > { %3161 = vmatmul.mubr.bf16.vlgmr.msra.gmra.mrb[112].mxu0 %v8410_v60  ;;  %3191 = vmatmul.mubr.bf16.vlgmr.msra.gmra.mrb[116].mxu1 %v2580_v41 }
 0x3bf   : > { %6293 = vmatprep.mubr.msk.bf16.mxu0 %vm2704_vm5, %v8434_v16  ;;  %6296 = vmatprep.mubr.msk.bf16.mxu1 %vm2704_vm5, %v2583_v35 }
 0x3c6   : > { %3171 = vmatmul.mubr.bf16.gmra.mrb[116].mxu0 %v8432_v58  ;;  %3201 = vmatmul.mubr.bf16.gmra.mrb[120].mxu1 %v2582_v5 }
 0x3c7   : > { %6294 = vmatprep.mubr.msk.bf16.mxu0 %vm2704_vm5, %v8456_v28  ;;  %3538 = vmatprep.mubr.bf16.mxu1 %v7419_v0 }
 0x3ce   : > { %3181 = vmatmul.mubr.bf16.gmra.mrb[120].mxu0 %v8454_v6 }
 0x3cf   : > { %3632 = vmatprep.mubr.bf16.mxu0 %v7419_v0 }
 0x469   : > { %v2754_v13 = vpop.f32.mrb[92].mxu0  ;;  %v2958_v60 = vpop.f32.mrb[96].mxu1 }
 0x46a   : > { %v2756_v26 = vpop.f32.mrb[93].mxu0  ;;  %v2960_v2 = vpop.f32.mrb[97].mxu1  ;;  %v3231_v7 = vrot.slane %v2958_v60, 1 }
 0x46b   : > { %v2758_v32 = vpop.f32.mrb[94].mxu0  ;;  %v2962_v16 = vpop.f32.mrb[98].mxu1  ;;  %v3234_v12 = vrot.slane %v2960_v2, 1 }
 0x46c   : > { %v3232_v37 = vrot.slane %v2962_v16, 1  ;;  %v2760_v1 = vpop.f32.mrb[95].mxu0  ;;  %v2964_v58 = vpop.f32.mrb[99].mxu1 }
 0x46d   : > { %v3235_v59 = vrot.slane %v2964_v58, 1 }
 0x46e   : > { %v3233_v33 = vsel %vm1235_vm2, %v3231_v7, %v3232_v37 }
 0x46f   : > { %v8515_v3 = vadd.f32 %v3233_v33, %v2754_v13  ;;  %v3236_v4 = vsel %vm1235_vm2, %v3234_v12, %v3235_v59 }
 0x470   : > { %v8518_v9 = vadd.f32 %v3236_v4, %v2756_v26 }
 0x471   : > { %v2764_v36 = vpop.f32.mrb[96].mxu0  ;;  %v2968_v8 = vpop.f32.mrb[100].mxu1 }
 0x472   : > { %v3237_v15 = vrot.slane %v2968_v8, 1  ;;  %v2766_v53 = vpop.f32.mrb[97].mxu0  ;;  %v2970_v6 = vpop.f32.mrb[101].mxu1 }
 0x473   : > { %v3239_v28 = vrot.slane %v2970_v6, 1  ;;  %v2768_v61 = vpop.f32.mrb[98].mxu0  ;;  %v2972_v54 = vpop.f32.mrb[102].mxu1 }
 0x474   : > { %v3238_v10 = vsel %vm1235_vm2, %v3232_v37, %v3237_v15  ;;  %v3241_v62 = vrot.slane %v2972_v54, 1  ;;  %v2770_v39 = vpop.f32.mrb[99].mxu0  ;;  %v2974_v55 = vpop.f32.mrb[103].mxu1 }
 0x475   : > { %v8521_v17 = vadd.f32 %v3238_v10, %v2758_v32  ;;  %v3240_v11 = vsel %vm1235_vm2, %v3235_v59, %v3239_v28  ;;  %v3243_v47 = vrot.slane %v2974_v55, 1 }
 0x476   : > { %v8524_v56 = vadd.f32 %v3240_v11, %v2760_v1  ;;  %v3242_v24 = vsel %vm1235_vm2, %v3237_v15, %v3241_v62 }
 0x477   : > { %v8527_v38 = vadd.f32 %v3242_v24, %v2764_v36  ;;  %v3244_v45 = vsel %vm1235_vm2, %v3239_v28, %v3243_v47 }
 0x478   : > { %v8530_v57 = vadd.f32 %v3244_v45, %v2766_v53 }
 0x479   : > { %v2774_v44 = vpop.f32.mrb[100].mxu0  ;;  %v2978_v50 = vpop.f32.mrb[104].mxu1 }
 0x47a   : > { %v3245_v41 = vrot.slane %v2978_v50, 1  ;;  %v2776_v30 = vpop.f32.mrb[101].mxu0  ;;  %v2980_v18 = vpop.f32.mrb[105].mxu1 }
 0x47b   : > { %v3247_v22 = vrot.slane %v2980_v18, 1  ;;  %v2778_v46 = vpop.f32.mrb[102].mxu0  ;;  %v2982_v19 = vpop.f32.mrb[106].mxu1 }
 0x47c   : > { %v3246_v52 = vsel %vm1235_vm2, %v3241_v62, %v3245_v41  ;;  %v3249_v29 = vrot.slane %v2982_v19, 1  ;;  %v2780_v49 = vpop.f32.mrb[103].mxu0  ;;  %v2984_v40 = vpop.f32.mrb[107].mxu1  ;;  %v3407_v19 = vld [vmem:[%s9389_s6] sm:$0x3] }
 0x47d   : > { %v8533_v20 = vadd.f32 %v3246_v52, %v2768_v61  ;;  %v3248_v63 = vsel %vm1235_vm2, %v3243_v47, %v3247_v22  ;;  %v3251_v21 = vrot.slane %v2984_v40, 1 }
 0x47e   : > { %v8536_v23 = vadd.f32 %v3248_v63, %v2770_v39  ;;  %v3250_v14 = vsel %vm1235_vm2, %v3245_v41, %v3249_v29 }
 0x47f   : > { %v8539_v25 = vadd.f32 %v3250_v14, %v2774_v44  ;;  %v3252_v34 = vsel %vm1235_vm2, %v3247_v22, %v3251_v21 }
 0x480   : > { %v8542_v51 = vadd.f32 %v3252_v34, %v2776_v30 }
 0x481   : > { %v2784_v5 = vpop.f32.mrb[104].mxu0  ;;  %v2988_v35 = vpop.f32.mrb[108].mxu1 }
 0x482   : > { %v3253_v43 = vrot.slane %v2988_v35, 1  ;;  %v2786_v48 = vpop.f32.mrb[105].mxu0  ;;  %v2990_v27 = vpop.f32.mrb[109].mxu1 }
 0x483   : > { %v3255_v13 = vrot.slane %v2990_v27, 1  ;;  %v2788_v60 = vpop.f32.mrb[106].mxu0  ;;  %v2992_v26 = vpop.f32.mrb[110].mxu1 }
 0x484   : > { %v3254_v2 = vsel %vm1235_vm2, %v3249_v29, %v3253_v43  ;;  %v3257_v32 = vrot.slane %v2992_v26, 1  ;;  %v2790_v16 = vpop.f32.mrb[107].mxu0  ;;  %v2994_v7 = vpop.f32.mrb[111].mxu1 }
 0x485   : > { %v8545_v37 = vadd.f32 %v3254_v2, %v2778_v46  ;;  %v3256_v1 = vsel %vm1235_vm2, %v3251_v21, %v3255_v13  ;;  %v3259_v58 = vrot.slane %v2994_v7, 1  ;;  %v8572_v21 = vrot.slane %v3407_v19, %v7815_v31 }
 0x486   : > { %v8548_v12 = vadd.f32 %v3256_v1, %v2780_v49  ;;  %v3258_v59 = vsel %vm1235_vm2, %v3253_v43, %v3257_v32  ;;  %v8581_v7 = vrot.slane %v3407_v19, %v7821_v42 }
 0x487   : > { %v3301_v33 = vadd.f32 %v3258_v59, %v2784_v5  ;;  %v3260_v4 = vsel %vm1235_vm2, %v3255_v13, %v3259_v58 }
 0x488   : > { %v3302_v36 = vadd.f32 %v3260_v4, %v2786_v48 }
 0x489   : > { %v2794_v8 = vpop.f32.mrb[108].mxu0  ;;  %v2998_v15 = vpop.f32.mrb[112].mxu1 }
 0x48a   : > { %v3261_v53 = vrot.slane %v2998_v15, 1  ;;  %v2796_v6 = vpop.f32.mrb[109].mxu0  ;;  %v3000_v28 = vpop.f32.mrb[113].mxu1 }
 0x48b   : > { %v3263_v61 = vrot.slane %v3000_v28, 1  ;;  %v2798_v54 = vpop.f32.mrb[110].mxu0  ;;  %v3002_v10 = vpop.f32.mrb[114].mxu1 }
 0x48c   : > { %v3262_v62 = vsel %vm1235_vm2, %v3257_v32, %v3261_v53  ;;  %v3265_v39 = vrot.slane %v3002_v10, 1  ;;  %v2800_v55 = vpop.f32.mrb[111].mxu0  ;;  %v3004_v11 = vpop.f32.mrb[115].mxu1 }
 0x48d   : > { %v3303_v47 = vadd.f32 %v3262_v62, %v2788_v60  ;;  %v3264_v24 = vsel %vm1235_vm2, %v3259_v58, %v3263_v61  ;;  %v3267_v45 = vrot.slane %v3004_v11, 1 }
 0x48e   : > { %v3304_v44 = vadd.f32 %v3264_v24, %v2790_v16  ;;  %v3266_v50 = vsel %vm1235_vm2, %v3261_v53, %v3265_v39  ;;  %v8555_v41 = vadd.f32 %v3265_v39, %v2798_v54 }
 0x48f   : > { %v8557_v30 = vadd.f32 %v3266_v50, %v2794_v8  ;;  %v3268_v18 = vsel %vm1235_vm2, %v3263_v61, %v3267_v45  ;;  %v8560_v22 = vadd.f32 %v3267_v45, %v2800_v55 }
 0x490   : > { %v8562_v46 = vadd.f32 %v3268_v18, %v2796_v6 }
 0x491   : > { %v3162_v52 = vpop.f32.mrb[112].mxu0  ;;  %v8567_v29 = vpop.f32.mrb[116].mxu1 }
 0x492   : > { %v3164_v49 = vpop.f32.mrb[113].mxu0  ;;  %v8569_v40 = vpop.f32.mrb[117].mxu1  ;;  %v3329_v34 = vrot.slane %v3162_v52, 2  ;;  %v3351_v5 = vrot.slane %v8567_v29, 2 }
 0x493   : > { %v3166_v63 = vpop.f32.mrb[114].mxu0  ;;  %v3196_v14 = vpop.f32.mrb[118].mxu1  ;;  %v3332_v13 = vrot.slane %v3164_v49, 2  ;;  %v3353_v60 = vrot.slane %v8569_v40, 2 }
 0x494   : > { %v3330_v35 = vrot.slane %v3166_v63, 2  ;;  %v3355_v43 = vrot.slane %v3196_v14, 2  ;;  %v3168_v48 = vpop.f32.mrb[115].mxu0  ;;  %v3198_v27 = vpop.f32.mrb[119].mxu1 }
 0x495   : > { %v3333_v26 = vrot.slane %v3168_v48, 2  ;;  %v3357_v2 = vrot.slane %v3198_v27, 2 }
 0x496   : > { %v3331_v32 = vsel %vm1414_vm4, %v3329_v34, %v3330_v35  ;;  %v3356_v16 = vsel %vm1414_vm4, %v3351_v5, %v3355_v43 }
 0x497   : > { %v3387_v1 = vadd.f32 %v3331_v32, %v8515_v3  ;;  %v3399_v58 = vadd.f32 %v3356_v16, %v3301_v33  ;;  %v3334_v59 = vsel %vm1414_vm4, %v3332_v13, %v3333_v26  ;;  %v3358_v4 = vsel %vm1414_vm4, %v3353_v60, %v3357_v2 }
 0x498   : > { %v3388_v8 = vadd.f32 %v3334_v59, %v8518_v9  ;;  %v3400_v15 = vadd.f32 %v3358_v4, %v3302_v36 }
 0x499   : > { %v8590_v53 = vadd.f32 %v8572_v21, %v3387_v1  ;;  %v3172_v6 = vpop.f32.mrb[116].mxu0  ;;  %v3202_v28 = vpop.f32.mrb[120].mxu1  ;;  %v8593_v61 = vadd.f32 %v8572_v21, %v3399_v58 }
 0x49a   : > { %v3335_v54 = vrot.slane %v3172_v6, 2  ;;  %v3359_v3 = vrot.slane %v3202_v28, 2  ;;  %v3174_v33 = vpop.f32.mrb[117].mxu0  ;;  %v3204_v10 = vpop.f32.mrb[121].mxu1  ;;  %v8596_v62 = vadd.f32 %v8581_v7, %v3388_v8  ;;  %v8600_v24 = vadd.f32 %v8581_v7, %v3400_v15 }
 0x49b   : > { %v3439_v39 = vmax.f32 %v8590_v53, 0.0  ;;  %v3337_v55 = vrot.slane %v3174_v33, 2  ;;  %v3361_v9 = vrot.slane %v3204_v10, 2  ;;  %v3176_v36 = vpop.f32.mrb[118].mxu0  ;;  %v3206_v11 = vpop.f32.mrb[122].mxu1 }
 0x49c   : > { %v3336_v45 = vsel %vm1414_vm4, %v3330_v35, %v3335_v54  ;;  %v3360_v50 = vsel %vm1414_vm4, %v3355_v43, %v3359_v3  ;;  %v3339_v18 = vrot.slane %v3176_v36, 2  ;;  %v3363_v19 = vrot.slane %v3206_v11, 2  ;;  %v3178_v52 = vpop.f32.mrb[119].mxu0  ;;  %v3208_v49 = vpop.f32.mrb[123].mxu1 }
 0x49d   : > { %v3389_v63 = vadd.f32 %v3336_v45, %v8521_v17  ;;  %v3401_v14 = vadd.f32 %v3360_v50, %v3303_v47  ;;  %v3338_v34 = vsel %vm1414_vm4, %v3333_v26, %v3337_v55  ;;  %v3362_v48 = vsel %vm1414_vm4, %v3357_v2, %v3361_v9 }
 0x49e   : > { %v3390_v27 = vadd.f32 %v3338_v34, %v8524_v56  ;;  %v8608_v13 = vadd.f32 %v3362_v48, %v3304_v44  ;;  %v3340_v32 = vsel %vm1414_vm4, %v3335_v54, %v3339_v18  ;;  %v3364_v35 = vsel %vm1414_vm4, %v3359_v3, %v3363_v19 }
 0x49f   : > { %v3421_v43 = vadd.f32 %v8572_v21, %v3389_v63  ;;  %v8614_v16 = vadd.f32 %v8572_v21, %v3401_v14  ;;  %v3391_v17 = vadd.f32 %v3340_v32, %v8527_v38  ;;  %v8618_v47 = vadd.f32 %v3364_v35, %v8557_v30 }
 0x4a0   : > { %v3451_v26 = vmax.f32 %v8593_v61, 0.0  ;;  %v3405_v56 = vadd.f32 %v3363_v19, %v8555_v41  ;;  %v3341_v44 = vrot.slane %v3178_v52, 2  ;;  %v3365_v2 = vrot.slane %v3208_v49, 2  ;;  %v7115_v61 = vld [vmem:[%s9391_s8 + $0x104] ss:$8 sps:$4 sm:$0xff]  }
 0x4a1   : > { %v3441_v1 = vmax.f32 %v3421_v43, 0.0  ;;  %v3453_v58 = vmax.f32 %v8614_v16, 0.0  ;;  %v3423_v59 = vadd.f32 %v8572_v21, %v3391_v17  ;;  %v3182_v4 = vpop.f32.mrb[120].mxu0  ;;  %v3422_v8 = vadd.f32 %v8581_v7, %v3390_v27 }
 0x4a2   : > { %v3342_v15 = vsel %vm1414_vm4, %v3337_v55, %v3341_v44  ;;  %v3366_v38 = vsel %vm1414_vm4, %v3361_v9, %v3365_v2  ;;  %v3406_v30 = vadd.f32 %v3365_v2, %v8560_v22  ;;  %v3184_v6 = vpop.f32.mrb[121].mxu0  ;;  %v3440_v28 = vmax.f32 %v8596_v62, 0.0 }
 0x4a3   : > { %v8630_v41 = vadd.f32 %v8572_v21, %v3405_v56  ;;  %v3392_v54 = vadd.f32 %v3342_v15, %v8530_v57  ;;  %v3404_v3 = vadd.f32 %v3366_v38, %v8562_v46  ;;  %v3343_v33 = vrot.slane %v3182_v4, 2  ;;  %v3186_v10 = vpop.f32.mrb[122].mxu0 }
 0x4a4   : > { %v3443_v36 = vmax.f32 %v3423_v59, 0.0  ;;  %v3438_v11 = vadd.f32 %v8581_v7, %v3406_v30  ;;  %v3345_v55 = vrot.slane %v3184_v6, 2  ;;  %v3347_v45 = vrot.slane %v3186_v10, 2  ;;  %v3188_v9 = vpop.f32.mrb[123].mxu0  ;;  %v7121_v10 = vld [vmem:[%s9391_s8 + $0x114] ss:$8 sps:$4 sm:$0xff]  }
 0x4a5   : > { %v3436_v22 = vadd.f32 %v8581_v7, %v3404_v3  ;;  %v3344_v50 = vsel %vm1414_vm4, %v3339_v18, %v3343_v33  ;;  %v3349_v62 = vrot.slane %v3188_v9, 2  ;;  %v3442_v19 = vmax.f32 %v3422_v8, 0.0  ;;  %v7113_v3 = vld [vmem:[%s9391_s8 + $0x100] ss:$8 sps:$4 sm:$0xff]  }
 0x4a6   : > { %v3458_v52 = vmax.f32 %v3438_v11, 0.0  ;;  %v3393_v49 = vadd.f32 %v3344_v50, %v8533_v20  ;;  %v3346_v57 = vsel %vm1414_vm4, %v3341_v44, %v3345_v55  ;;  %v3348_v46 = vsel %vm1414_vm4, %v3343_v33, %v3347_v45  ;;  %v7118_v33 = vld [vmem:[%s9391_s8 + $0x14] ss:$8 sps:$4 sm:$0xff]   ;;  %v7119_v11 = vld [vmem:[%s9391_s8 + $0x110] ss:$8 sps:$4 sm:$0xff]   ;;  %v7106_v9 = vld [vmem:[#allocation2 + $0x8] sm:$0xff]  }
 0x4a7   : > { %v3456_v63 = vmax.f32 %v3436_v22, 0.0  ;;  %v3394_v14 = vadd.f32 %v3346_v57, %v8536_v23  ;;  %v3352_v34 = vsel %vm1414_vm4, %v3347_v45, %v3351_v5  ;;  %v3395_v48 = vadd.f32 %v3348_v46, %v8539_v25  ;;  %v7127_v45 = vld [vmem:[%s9391_s8 + $0x124] ss:$8 sps:$4 sm:$0xff]   ;;  %v7122_v50 = vld [vmem:[%s9391_s8 + $0x20] ss:$8 sps:$4 sm:$0xff]  }
 0x4a8   : > { %v3425_v18 = vadd.f32 %v8572_v21, %v3393_v49  ;;  %v3397_v27 = vadd.f32 %v3352_v34, %v8545_v37  ;;  %v3350_v32 = vsel %vm1414_vm4, %v3345_v55, %v3349_v62  ;;  %v3354_v20 = vsel %vm1414_vm4, %v3349_v62, %v3353_v60  ;;  %v7124_v55 = vld [vmem:[%s9391_s8 + $0x24] ss:$8 sps:$4 sm:$0xff]   ;;  %v7125_v62 = vld [vmem:[%s9391_s8 + $0x120] ss:$8 sps:$4 sm:$0xff]   ;;  %v7128_v49 = vld [vmem:[%s9391_s8 + $0x30] ss:$8 sps:$4 sm:$0xff]  }
 0x4a9   : > { %v3468_v35 = vpack.c.bf16 %v3458_v52, %v3456_v63  ;;  %v3427_v43 = vadd.f32 %v8572_v21, %v3395_v48  ;;  %v3396_v23 = vadd.f32 %v3350_v32, %v8542_v51  ;;  %v3398_v29 = vadd.f32 %v3354_v20, %v8548_v12  ;;  %v7107_v22 = vld [vmem:[#allocation2 + $0x20] sm:$0xff]   ;;  %v7133_v52 = vld [vmem:[%s9391_s8 + $0x134] ss:$8 sps:$4 sm:$0xff]   ;;  %v7131_v57 = vld [vmem:[%s9391_s8 + $0x130] ss:$8 sps:$4 sm:$0xff]  }
 0x4aa   : > { %v3445_v5 = vmax.f32 %v3425_v18, 0.0  ;;  %v3429_v25 = vadd.f32 %v8572_v21, %v3397_v27  ;;  %v3460_v16 = vpack.c.bf16 %v3442_v19, %v3440_v28  ;;  %v3459_v37 = vpack.c.bf16 %v3441_v1, %v3439_v39  ;;  %v7130_v19 = vld [vmem:[%s9391_s8 + $0x34] ss:$8 sps:$4 sm:$0xff]   ;;  %v7136_v46 = vld [vmem:[%s9391_s8 + $0x44] ss:$8 sps:$4 sm:$0xff]  }
 0x4ab   : > { %v3447_v17 = vmax.f32 %v3427_v43, 0.0  ;;  %v3424_v56 = vadd.f32 %v8581_v7, %v3392_v54  ;;  %v3426_v40 = vadd.f32 %v8581_v7, %v3394_v14  ;;  %v3428_v60 = vadd.f32 %v8581_v7, %v3396_v23  ;;  %v7139_v63 = vld [vmem:[%s9391_s8 + $0x144] ss:$8 sps:$4 sm:$0xff]   ;;  %v7108_v14 = vld [vmem:[#allocation2 + $0x10] sm:$0xff]   ;;  %v7134_v48 = vld [vmem:[%s9391_s8 + $0x40] ss:$8 sps:$4 sm:$0xff]  }
 0x4ac   : > { %v3449_v44 = vmax.f32 %v3429_v25, 0.0  ;;  %3506 = vmatprep.subr.bf16.mxu1 %v3460_v16  ;;  %3600 = vmatprep.subr.bf16.mxu0 %v3460_v16  ;;  %v3461_v51 = vpack.c.bf16 %v3445_v5, %v3443_v36  ;;  %v3430_v12 = vadd.f32 %v8581_v7, %v3398_v29  ;;  %v3434_v2 = vadd.f32 %v8581_v7, %v8608_v13  ;;  %v7116_v36 = vld [vmem:[%s9391_s8 + $0x10] ss:$8 sps:$4 sm:$0xff]   ;;  %v7109_v34 = vld [vmem:[#allocation2 + $0x28] sm:$0xff]   ;;  %v7142_v27 = vld [vmem:[%s9391_s8 + $0x54] ss:$8 sps:$4 sm:$0xff]  }
 0x4ad   : > { %3507 = vmatpush1.bf16.msra.mxu1 %v3459_v37  ;;  %3601 = vmatpush1.bf16.msra.mxu0 %v3459_v37  ;;  %v3444_v53 = vmax.f32 %v3424_v56, 0.0  ;;  %v3446_v39 = vmax.f32 %v3426_v40, 0.0  ;;  %v3448_v1 = vmax.f32 %v3428_v60, 0.0  ;;  %v3452_v59 = vmax.f32 %v8600_v24, 0.0  ;;  %v7137_v18 = vld [vmem:[%s9391_s8 + $0x140] ss:$8 sps:$4 sm:$0xff]  }
 0x4ae   : > { %v3450_v4 = vmax.f32 %v3430_v12, 0.0  ;;  %v3463_v8 = vpack.c.bf16 %v3449_v44, %v3447_v17  ;;  %v3454_v15 = vmax.f32 %v3434_v2, 0.0  ;;  %v3465_v38 = vpack.c.bf16 %v3453_v58, %v3451_v26  ;;  %v7104_v26 = vld [vmem:[#allocation2] sm:$0xff]   ;;  %v7105_v58 = vld [vmem:[#allocation2 + $0x18] sm:$0xff]  }
 0x4af   : > { %v3457_v30 = vmax.f32 %v8630_v41, 0.0  ;;  %v3462_v6 = vpack.c.bf16 %v3446_v39, %v3444_v53  ;;  %v3435_v28 = vadd.f32 %v8572_v21, %v8618_v47  ;;  %v7112_v21 = vld [vmem:[%s9391_s8 + $0x4] ss:$8 sps:$4 sm:$0xff]   ;;  %v7110_v41 = vld [vmem:[%s9391_s8] ss:$8 sps:$4 sm:$0xff]  }
 0x4b0   : > { %v3464_v7 = vpack.c.bf16 %v3450_v4, %v3448_v1  ;;  %v3466_v13 = vpack.c.bf16 %v3454_v15, %v3452_v59  ;;  %v7145_v32 = vld [vmem:[%s9391_s8 + $0x154] ss:$8 sps:$4 sm:$0xff]   ;;  %v7140_v20 = vld [vmem:[%s9391_s8 + $0x50] ss:$8 sps:$4 sm:$0xff]   ;;  %v7148_v43 = vld [vmem:[%s9391_s8 + $0x64] ss:$8 sps:$4 sm:$0xff]  }
 0x4b1   : > { %3508 = vmatprep.subr.bf16.mxu1 %v3462_v6  ;;  %3602 = vmatprep.subr.bf16.mxu0 %v3462_v6  ;;  %v3455_v54 = vmax.f32 %v3435_v28, 0.0  ;;  %v7151_v23 = vld [vmem:[%s9391_s8 + $0x164] ss:$8 sps:$4 sm:$0xff]   ;;  %v7146_v29 = vld [vmem:[%s9391_s8 + $0x60] ss:$8 sps:$4 sm:$0xff]  }
 0x4b2   : > { %3509 = vmatpush1.bf16.msra.mxu1 %v3461_v51  ;;  %3603 = vmatpush1.bf16.msra.mxu0 %v3461_v51  ;;  %v7149_v5 = vld [vmem:[%s9391_s8 + $0x160] ss:$8 sps:$4 sm:$0xff]   ;;  %v7154_v25 = vld [vmem:[%s9391_s8 + $0x74] ss:$8 sps:$4 sm:$0xff]   ;;  %v7152_v37 = vld [vmem:[%s9391_s8 + $0x70] ss:$8 sps:$4 sm:$0xff]  }
 0x4b3   : > { %3510 = vmatprep.subr.bf16.mxu1 %v3464_v7  ;;  %3604 = vmatprep.subr.bf16.mxu0 %v3464_v7  ;;  %v3467_v24 = vpack.c.bf16 %v3457_v30, %v3455_v54  ;;  %v7157_v16 = vld [vmem:[%s9391_s8 + $0x174] ss:$8 sps:$4 sm:$0xff]   ;;  %v7155_v17 = vld [vmem:[%s9391_s8 + $0x170] ss:$8 sps:$4 sm:$0xff]   ;;  %v7160_v56 = vld [vmem:[%s9391_s8 + $0x84] ss:$8 sps:$4 sm:$0xff]  }
 0x4b4   : > { %v7163_v40 = vld [vmem:[%s9391_s8 + $0x184] ss:$8 sps:$4 sm:$0xff]   ;;  %v7158_v60 = vld [vmem:[%s9391_s8 + $0x80] ss:$8 sps:$4 sm:$0xff]   ;;  %v7166_v51 = vld [vmem:[%s9391_s8 + $0x94] ss:$8 sps:$4 sm:$0xff]  }
 0x4b5   : > { %v3501_v47 = vsel %vm1235_vm2, %v3467_v24, 0  ;;  %v7161_v44 = vld [vmem:[%s9391_s8 + $0x180] ss:$8 sps:$4 sm:$0xff]   ;;  %v7169_v12 = vld [vmem:[%s9391_s8 + $0x194] ss:$8 sps:$4 sm:$0xff]  }
 0x4b6   : > { %3511 = vmatpush1.bf16.msra.mxu1 %v3463_v8  ;;  %3605 = vmatpush1.bf16.msra.mxu0 %v3463_v8  ;;  %v7164_v2 = vld [vmem:[%s9391_s8 + $0x90] ss:$8 sps:$4 sm:$0xff]   ;;  %v7172_v39 = vld [vmem:[%s9391_s8 + $0xa4] ss:$8 sps:$4 sm:$0xff]   ;;  %v7170_v59 = vld [vmem:[%s9391_s8 + $0xa0] ss:$8 sps:$4 sm:$0xff]  }
 0x4b7   : > { %3512 = vmatprep.subr.bf16.mxu1 %v3466_v13  ;;  %3606 = vmatprep.subr.bf16.mxu0 %v3466_v13  ;;  %v7167_v53 = vld [vmem:[%s9391_s8 + $0x190] ss:$8 sps:$4 sm:$0xff]   ;;  %v7175_v1 = vld [vmem:[%s9391_s8 + $0x1a4] ss:$8 sps:$4 sm:$0xff]   ;;  %v7173_v4 = vld [vmem:[%s9391_s8 + $0x1a0] ss:$8 sps:$4 sm:$0xff]  }
 0x4b8   : > { %v7178_v8 = vld [vmem:[%s9391_s8 + $0xb4] ss:$8 sps:$4 sm:$0xff]   ;;  %v7179_v30 = vld [vmem:[%s9391_s8 + $0x1b0] ss:$8 sps:$4 sm:$0xff]   ;;  %v7184_v6 = vld [vmem:[%s9391_s8 + $0xc4] ss:$8 sps:$4 sm:$0xff]  }
 0x4b9   : > { %v7181_v15 = vld [vmem:[%s9391_s8 + $0x1b4] ss:$8 sps:$4 sm:$0xff]   ;;  %v7187_v28 = vld [vmem:[%s9391_s8 + $0x1c4] ss:$8 sps:$4 sm:$0xff]   ;;  %v7182_v7 = vld [vmem:[%s9391_s8 + $0xc0] ss:$8 sps:$4 sm:$0xff]  }
 0x4ba   : > { %3513 = vmatpush1.bf16.msra.mxu1 %v3465_v38  ;;  %3607 = vmatpush1.bf16.msra.mxu0 %v3465_v38  ;;  %v7176_v38 = vld [vmem:[%s9391_s8 + $0xb0] ss:$8 sps:$4 sm:$0xff]   ;;  %v7185_v13 = vld [vmem:[%s9391_s8 + $0x1c0] ss:$8 sps:$4 sm:$0xff]   ;;  %v7190_v54 = vld [vmem:[%s9391_s8 + $0xd4] ss:$8 sps:$4 sm:$0xff]  }
 0x4bb   : > { %6300 = vmatprep.subr.msk.bf16.mxu1 %vm1235_vm2, %v3468_v35  ;;  %6307 = vmatprep.subr.msk.bf16.mxu0 %vm1235_vm2, %v3468_v35  ;;  %v7143_v35 = vld [vmem:[%s9391_s8 + $0x150] ss:$8 sps:$4 sm:$0xff]   ;;  %v7193_v24 = vld [vmem:[%s9391_s8 + $0x1d4] ss:$8 sps:$4 sm:$0xff]  }
 0x4be   : > { %3515 = vmatpush1.bf16.msra.mxu1 %v3501_v47  ;;  %3609 = vmatpush1.bf16.msra.mxu0 %v3501_v47  ;;  %v7194_v47 = vld [vmem:[%s9391_s8 + $0xe0] ss:$8 sps:$4 sm:$0xff]  }
 0x4bf   : > { %3873 = vmatprep.subr.bf16.mxu1 %v7112_v21  ;;  %4129 = vmatprep.subr.bf16.mxu0 %v7115_v61  ;;  %v7188_v21 = vld [vmem:[%s9391_s8 + $0xd0] ss:$8 sps:$4 sm:$0xff]  }
 0x4c0   : > { %v7191_v61 = vld [vmem:[%s9391_s8 + $0x1d0] ss:$8 sps:$4 sm:$0xff]  }
 0x4c1   : > { %6301 = vmatmul.mubr.msk.bf16.vlgmr.msra.gmra.mrb[124].mxu1 %vm3490_vm6, %v7104_v26  ;;  %6308 = vmatmul.mubr.msk.bf16.vlgmr.msra.gmra.mrb[124].mxu0 %vm3490_vm6, %v7105_v58  ;;  %v7196_v26 = vld [vmem:[%s9391_s8 + $0xe4] ss:$8 sps:$4 sm:$0xff]   ;;  %v7197_v58 = vld [vmem:[%s9391_s8 + $0x1e0] ss:$8 sps:$4 sm:$0xff]  }
 0x4c2   : > { %3548 = vmatprep.mubr.bf16.mxu1 %v7419_v0  ;;  %3642 = vmatprep.mubr.bf16.mxu0 %v7419_v0 }
 0x4c3   : > { %3874 = vmatpush1.bf16.msra.mxu1 %v7110_v41  ;;  %4130 = vmatpush1.bf16.msra.mxu0 %v7113_v3  ;;  %v7199_v41 = vld [vmem:[%s9391_s8 + $0x1e4] ss:$8 sps:$4 sm:$0xff]   ;;  %v7200_v3 = vld [vmem:[%s9391_s8 + $0xf0] ss:$8 sps:$4 sm:$0xff]  }
 0x4c4   : > { %3875 = vmatprep.subr.bf16.mxu1 %v7118_v33  ;;  %4131 = vmatprep.subr.bf16.mxu0 %v7121_v10  ;;  %v7202_v33 = vld [vmem:[%s9391_s8 + $0xf4] ss:$8 sps:$4 sm:$0xff]   ;;  %v7203_v10 = vld [vmem:[%s9391_s8 + $0x1f0] ss:$8 sps:$4 sm:$0xff]  }
 0x4c7   : > { %3876 = vmatpush1.bf16.msra.mxu1 %v7116_v36  ;;  %4132 = vmatpush1.bf16.msra.mxu0 %v7119_v11  ;;  %v7205_v36 = vld [vmem:[%s9391_s8 + $0x1f4] ss:$8 sps:$4 sm:$0xff]   ;;  %v7208_v11 = vld [vmem:[%s9392_s9 + $0x4] ss:$8 sps:$4 sm:$0xff]  }
 0x4c8   : > { %3877 = vmatprep.subr.bf16.mxu1 %v7124_v55  ;;  %4133 = vmatprep.subr.bf16.mxu0 %v7127_v45  ;;  %v7211_v55 = vld [vmem:[%s9392_s9 + $0xc4] ss:$8 sps:$4 sm:$0xff]  }
 0x4c9   : > { %6302 = vmatmul.mubr.msk.bf16.gmra.mrb[128].mxu1 %vm3490_vm6, %v7106_v9  ;;  %6309 = vmatmul.mubr.msk.bf16.gmra.mrb[128].mxu0 %vm3490_vm6, %v7107_v22 }
 0x4ca   : > { %3558 = vmatprep.mubr.bf16.mxu1 %v7419_v0  ;;  %3652 = vmatprep.mubr.bf16.mxu0 %v7419_v0 }
 0x4cb   : > { %3878 = vmatpush1.bf16.msra.mxu1 %v7122_v50  ;;  %4134 = vmatpush1.bf16.msra.mxu0 %v7125_v62 }
 0x4cc   : > { %3879 = vmatprep.subr.bf16.mxu1 %v7130_v19  ;;  %4135 = vmatprep.subr.bf16.mxu0 %v7133_v52 }
 0x4cf   : > { %3880 = vmatpush1.bf16.msra.mxu1 %v7128_v49  ;;  %4136 = vmatpush1.bf16.msra.mxu0 %v7131_v57 }
 0x4d0   : > { %3881 = vmatprep.subr.bf16.mxu1 %v7136_v46  ;;  %4137 = vmatprep.subr.bf16.mxu0 %v7139_v63 }
 0x4d1   : > { %6303 = vmatmul.mubr.msk.bf16.gmra.mrb[132].mxu1 %vm3490_vm6, %v7108_v14  ;;  %6310 = vmatmul.mubr.msk.bf16.gmra.mrb[132].mxu0 %vm3490_vm6, %v7109_v34 }
 0x4d3   : > { %3882 = vmatpush1.bf16.msra.mxu1 %v7134_v48  ;;  %4138 = vmatpush1.bf16.msra.mxu0 %v7137_v18  ;;  %v7206_v18 = vld [vmem:[%s9392_s9] ss:$8 sps:$4 sm:$0xff]  }
 0x4d4   : > { %3883 = vmatprep.subr.bf16.mxu1 %v7142_v27  ;;  %4139 = vmatprep.subr.bf16.mxu0 %v7145_v32  ;;  %v7209_v27 = vld [vmem:[%s9392_s9 + $0xc0] ss:$8 sps:$4 sm:$0xff]   ;;  %v7214_v32 = vld [vmem:[%s9392_s9 + $0x14] ss:$8 sps:$4 sm:$0xff]  }
 0x4d7   : > { %3884 = vmatpush1.bf16.msra.mxu1 %v7140_v20  ;;  %4140 = vmatpush1.bf16.msra.mxu0 %v7143_v35  ;;  %v7217_v20 = vld [vmem:[%s9392_s9 + $0xd4] ss:$8 sps:$4 sm:$0xff]  }
 0x4d8   : > { %3885 = vmatprep.subr.bf16.mxu1 %v7148_v43  ;;  %4141 = vmatprep.subr.bf16.mxu0 %v7151_v23 }
 0x4db   : > { %3886 = vmatpush1.bf16.msra.mxu1 %v7146_v29  ;;  %4142 = vmatpush1.bf16.msra.mxu0 %v7149_v5 }
 0x4dc   : > { %3887 = vmatprep.subr.bf16.mxu1 %v7154_v25  ;;  %4143 = vmatprep.subr.bf16.mxu0 %v7157_v16 }
 0x4df   : > { %3888 = vmatpush1.bf16.msra.mxu1 %v7152_v37  ;;  %4144 = vmatpush1.bf16.msra.mxu0 %v7155_v17  ;;  %v7212_v17 = vld [vmem:[%s9392_s9 + $0x10] ss:$8 sps:$4 sm:$0xff]  }
 0x4e0   : > { %3889 = vmatprep.subr.bf16.mxu1 %v7160_v56  ;;  %4145 = vmatprep.subr.bf16.mxu0 %v7163_v40  ;;  %v7215_v56 = vld [vmem:[%s9392_s9 + $0xd0] ss:$8 sps:$4 sm:$0xff]  }
 0x4e3   : > { %3890 = vmatpush1.bf16.msra.mxu1 %v7158_v60  ;;  %4146 = vmatpush1.bf16.msra.mxu0 %v7161_v44 }
 0x4e4   : > { %3891 = vmatprep.subr.bf16.mxu1 %v7166_v51  ;;  %4147 = vmatprep.subr.bf16.mxu0 %v7169_v12  ;;  %v7220_v51 = vld [vmem:[%s9392_s9 + $0x24] ss:$8 sps:$4 sm:$0xff]  }
 0x4e5   : > { %v7223_v12 = vld [vmem:[%s9392_s9 + $0xe4] ss:$8 sps:$4 sm:$0xff]  }
 0x4e7   : > { %3892 = vmatpush1.bf16.msra.mxu1 %v7164_v2  ;;  %4148 = vmatpush1.bf16.msra.mxu0 %v7167_v53 }
 0x4e8   : > { %3893 = vmatprep.subr.bf16.mxu1 %v7172_v39  ;;  %4149 = vmatprep.subr.bf16.mxu0 %v7175_v1  ;;  %v7218_v1 = vld [vmem:[%s9392_s9 + $0x20] ss:$8 sps:$4 sm:$0xff]  }
 0x4eb   : > { %3894 = vmatpush1.bf16.msra.mxu1 %v7170_v59  ;;  %4150 = vmatpush1.bf16.msra.mxu0 %v7173_v4  ;;  %v7221_v59 = vld [vmem:[%s9392_s9 + $0xe0] ss:$8 sps:$4 sm:$0xff]   ;;  %v7226_v4 = vld [vmem:[%s9392_s9 + $0x34] ss:$8 sps:$4 sm:$0xff]  }
 0x4ec   : > { %3895 = vmatprep.subr.bf16.mxu1 %v7178_v8  ;;  %4151 = vmatprep.subr.bf16.mxu0 %v7181_v15  ;;  %v7229_v8 = vld [vmem:[%s9392_s9 + $0xf4] ss:$8 sps:$4 sm:$0xff]  }
 0x4ef   : > { %3896 = vmatpush1.bf16.msra.mxu1 %v7176_v38  ;;  %4152 = vmatpush1.bf16.msra.mxu0 %v7179_v30 }
 0x4f0   : > { %3897 = vmatprep.subr.bf16.mxu1 %v7184_v6  ;;  %4153 = vmatprep.subr.bf16.mxu0 %v7187_v28 }
 0x4f3   : > { %3898 = vmatpush1.bf16.msra.mxu1 %v7182_v7  ;;  %4154 = vmatpush1.bf16.msra.mxu0 %v7185_v13 }
 0x4f4   : > { %3899 = vmatprep.subr.bf16.mxu1 %v7190_v54  ;;  %4155 = vmatprep.subr.bf16.mxu0 %v7193_v24  ;;  %v7224_v24 = vld [vmem:[%s9392_s9 + $0x30] ss:$8 sps:$4 sm:$0xff]  }
 0x4f7   : > { %3900 = vmatpush1.bf16.msra.mxu1 %v7188_v21  ;;  %4156 = vmatpush1.bf16.msra.mxu0 %v7191_v61  ;;  %v7227_v21 = vld [vmem:[%s9392_s9 + $0xf0] ss:$8 sps:$4 sm:$0xff]  }
 0x4f8   : > { %3901 = vmatprep.subr.bf16.mxu1 %v7196_v26  ;;  %4157 = vmatprep.subr.bf16.mxu0 %v7199_v41  ;;  %v7235_v41 = vld [vmem:[%s9392_s9 + $0x104] ss:$8 sps:$4 sm:$0xff]  }
 0x4fb   : > { %3902 = vmatpush1.bf16.msra.mxu1 %v7194_v47  ;;  %4158 = vmatpush1.bf16.msra.mxu0 %v7197_v58  ;;  %v7232_v58 = vld [vmem:[%s9392_s9 + $0x44] ss:$8 sps:$4 sm:$0xff]  }
 0x4fc   : > { %3903 = vmatprep.subr.bf16.mxu1 %v7202_v33  ;;  %4159 = vmatprep.subr.bf16.mxu0 %v7205_v36  ;;  %v7230_v36 = vld [vmem:[%s9392_s9 + $0x40] ss:$8 sps:$4 sm:$0xff]  }
 0x4ff   : > { %3904 = vmatpush1.bf16.msra.mxu1 %v7200_v3  ;;  %4160 = vmatpush1.bf16.msra.mxu0 %v7203_v10 }
 0x500   : > { %4364 = vmatprep.subr.bf16.mxu1 %v7208_v11  ;;  %4572 = vmatprep.subr.bf16.mxu0 %v7211_v55  ;;  %v7233_v11 = vld [vmem:[%s9392_s9 + $0x100] ss:$8 sps:$4 sm:$0xff]   ;;  %v7238_v55 = vld [vmem:[%s9392_s9 + $0x54] ss:$8 sps:$4 sm:$0xff]  }
 0x594   : > { %v3540_v45 = vpop.f32.mrb[124].mxu1  ;;  %v3634_v9 = vpop.f32.mrb[124].mxu0 }
 0x595   : > { %v3663_v22 = vmax.f32 %v3540_v45, %v3634_v9  ;;  %v3542_v50 = vpop.f32.mrb[125].mxu1  ;;  %v3636_v62 = vpop.f32.mrb[125].mxu0  ;;  %v7241_v45 = vld [vmem:[%s9392_s9 + $0x114] ss:$8 sps:$4 sm:$0xff]   ;;  %v7236_v9 = vld [vmem:[%s9392_s9 + $0x50] ss:$8 sps:$4 sm:$0xff]  }
 0x596   : > { %v3664_v19 = vmax.f32 %v3542_v50, %v3636_v62  ;;  %v3544_v52 = vpop.f32.mrb[126].mxu1  ;;  %v3638_v49 = vpop.f32.mrb[126].mxu0  ;;  %v7244_v50 = vld [vmem:[%s9392_s9 + $0x64] ss:$8 sps:$4 sm:$0xff]  }
 0x597   : > { %v3665_v57 = vmax.f32 %v3544_v52, %v3638_v49  ;;  %v3546_v46 = vpop.f32.mrb[127].mxu1  ;;  %v3640_v63 = vpop.f32.mrb[127].mxu0  ;;  %v7247_v62 = vld [vmem:[%s9392_s9 + $0x124] ss:$8 sps:$4 sm:$0xff]   ;;  %v7245_v52 = vld [vmem:[%s9392_s9 + $0x120] ss:$8 sps:$4 sm:$0xff]  }
 0x598   : > { %v3666_v14 = vmax.f32 %v3546_v46, %v3640_v63  ;;  %v7250_v49 = vld [vmem:[%s9392_s9 + $0x74] ss:$8 sps:$4 sm:$0xff]   ;;  %v7248_v46 = vld [vmem:[%s9392_s9 + $0x70] ss:$8 sps:$4 sm:$0xff]  }
 0x599   : > { %v3675_v34 = vpack.c.bf16 %v3665_v57, %v3663_v22  ;;  %v7239_v22 = vld [vmem:[%s9392_s9 + $0x110] ss:$8 sps:$4 sm:$0xff]   ;;  %v7253_v57 = vld [vmem:[%s9392_s9 + $0x134] ss:$8 sps:$4 sm:$0xff]  }
 0x59a   : > { %v3676_v48 = vpack.c.bf16 %v3666_v14, %v3664_v19  ;;  %v7242_v19 = vld [vmem:[%s9392_s9 + $0x60] ss:$8 sps:$4 sm:$0xff]   ;;  %v7251_v63 = vld [vmem:[%s9392_s9 + $0x130] ss:$8 sps:$4 sm:$0xff]   ;;  %v7256_v14 = vld [vmem:[%s9392_s9 + $0x84] ss:$8 sps:$4 sm:$0xff]  }
 0x59c   : > { %v3550_v35 = vpop.f32.mrb[128].mxu1  ;;  %v3644_v43 = vpop.f32.mrb[128].mxu0  ;;  %3905 = vmatprep.mubr.bf16.mxu1 %v3676_v48  ;;  %4161 = vmatprep.mubr.bf16.mxu0 %v3676_v48  ;;  %v7254_v48 = vld [vmem:[%s9392_s9 + $0x80] ss:$8 sps:$4 sm:$0xff]  }
 0x59d   : > { %v3667_v23 = vmax.f32 %v3550_v35, %v3644_v43  ;;  %v3552_v29 = vpop.f32.mrb[129].mxu1  ;;  %v3646_v5 = vpop.f32.mrb[129].mxu0  ;;  %3906 = vmatmul.mubr.bf16.vlgmr.msra.gmra.mrb[136].mxu1 %v3675_v34  ;;  %4162 = vmatmul.mubr.bf16.vlgmr.msra.gmra.mrb[136].mxu0 %v3675_v34  ;;  %v7259_v34 = vld [vmem:[%s9392_s9 + $0x144] ss:$8 sps:$4 sm:$0xff]   ;;  %v7263_v35 = vld [vmem:[%s9392_s9 + $0x150] ss:$8 sps:$4 sm:$0xff]  }
 0x59e   : > { %v3668_v25 = vmax.f32 %v3552_v29, %v3646_v5  ;;  %v3554_v16 = vpop.f32.mrb[130].mxu1  ;;  %v3648_v37 = vpop.f32.mrb[130].mxu0  ;;  %4365 = vmatpush1.bf16.msra.mxu1 %v7206_v18  ;;  %4573 = vmatpush1.bf16.msra.mxu0 %v7209_v27  ;;  %v7257_v18 = vld [vmem:[%s9392_s9 + $0x140] ss:$8 sps:$4 sm:$0xff]   ;;  %v7262_v27 = vld [vmem:[%s9392_s9 + $0x94] ss:$8 sps:$4 sm:$0xff]  }
 0x59f   : > { %v3669_v40 = vmax.f32 %v3554_v16, %v3648_v37  ;;  %v3556_v60 = vpop.f32.mrb[131].mxu1  ;;  %v3650_v44 = vpop.f32.mrb[131].mxu0  ;;  %4366 = vmatprep.subr.bf16.mxu1 %v7214_v32  ;;  %4574 = vmatprep.subr.bf16.mxu0 %v7217_v20  ;;  %v7265_v32 = vld [vmem:[%s9392_s9 + $0x154] ss:$8 sps:$4 sm:$0xff]   ;;  %v7260_v20 = vld [vmem:[%s9392_s9 + $0x90] ss:$8 sps:$4 sm:$0xff]  }
 0x5a0   : > { %v3670_v2 = vmax.f32 %v3556_v60, %v3650_v44  ;;  %v7266_v43 = vld [vmem:[%s9392_s9 + $0xa0] ss:$8 sps:$4 sm:$0xff]   ;;  %v7271_v5 = vld [vmem:[%s9392_s9 + $0x164] ss:$8 sps:$4 sm:$0xff]   ;;  %v7274_v16 = vld [vmem:[%s9392_s9 + $0xb4] ss:$8 sps:$4 sm:$0xff]  }
 0x5a1   : > { %v3677_v53 = vpack.c.bf16 %v3669_v40, %v3667_v23  ;;  %v7268_v23 = vld [vmem:[%s9392_s9 + $0xa4] ss:$8 sps:$4 sm:$0xff]   ;;  %v7269_v29 = vld [vmem:[%s9392_s9 + $0x160] ss:$8 sps:$4 sm:$0xff]   ;;  %v7275_v37 = vld [vmem:[%s9392_s9 + $0x170] ss:$8 sps:$4 sm:$0xff]  }
 0x5a2   : > { %v3678_v39 = vpack.c.bf16 %v3670_v2, %v3668_v25  ;;  %4367 = vmatpush1.bf16.msra.mxu1 %v7212_v17  ;;  %4575 = vmatpush1.bf16.msra.mxu0 %v7215_v56  ;;  %v7272_v25 = vld [vmem:[%s9392_s9 + $0xb0] ss:$8 sps:$4 sm:$0xff]   ;;  %v7277_v17 = vld [vmem:[%s9392_s9 + $0x174] ss:$8 sps:$4 sm:$0xff]   ;;  %v7280_v56 = vld [vmem:[%s9392_s9 + $0x184] ss:$8 sps:$4 sm:$0xff]  }
 0x5a3   : > { %4368 = vmatprep.subr.bf16.mxu1 %v7220_v51  ;;  %4576 = vmatprep.subr.bf16.mxu0 %v7223_v12 }
 0x5a4   : > { %v3560_v15 = vpop.f32.mrb[132].mxu1  ;;  %v3654_v38 = vpop.f32.mrb[132].mxu0  ;;  %3915 = vmatprep.mubr.bf16.mxu1 %v3678_v39  ;;  %4171 = vmatprep.mubr.bf16.mxu0 %v3678_v39 }
 0x5a5   : > { %v3671_v30 = vmax.f32 %v3560_v15, %v3654_v38  ;;  %v3562_v6 = vpop.f32.mrb[133].mxu1  ;;  %v3656_v28 = vpop.f32.mrb[133].mxu0  ;;  %3916 = vmatmul.mubr.bf16.gmra.mrb[140].mxu1 %v3677_v53  ;;  %4172 = vmatmul.mubr.bf16.gmra.mrb[140].mxu0 %v3677_v53 }
 0x5a6   : > { %v3672_v7 = vmax.f32 %v3562_v6, %v3656_v28  ;;  %v3564_v13 = vpop.f32.mrb[134].mxu1  ;;  %v3658_v54 = vpop.f32.mrb[134].mxu0  ;;  %4369 = vmatpush1.bf16.msra.mxu1 %v7218_v1  ;;  %4577 = vmatpush1.bf16.msra.mxu0 %v7221_v59  ;;  %v7283_v6 = vld [vmem:[%s9392_s9 + $0x194] ss:$8 sps:$4 sm:$0xff]  }
 0x5a7   : > { %v3673_v61 = vmax.f32 %v3564_v13, %v3658_v54  ;;  %v3566_v47 = vpop.f32.mrb[135].mxu1  ;;  %v3660_v26 = vpop.f32.mrb[135].mxu0  ;;  %4370 = vmatprep.subr.bf16.mxu1 %v7226_v4  ;;  %4578 = vmatprep.subr.bf16.mxu0 %v7229_v8 }
 0x5a8   : > { %v3674_v3 = vmax.f32 %v3566_v47, %v3660_v26  ;;  %v7281_v26 = vld [vmem:[%s9392_s9 + $0x190] ss:$8 sps:$4 sm:$0xff]  }
 0x5a9   : > { %v3679_v33 = vpack.c.bf16 %v3673_v61, %v3671_v30  ;;  %v7278_v30 = vld [vmem:[%s9392_s9 + $0x180] ss:$8 sps:$4 sm:$0xff]  }
 0x5aa   : > { %v3680_v10 = vpack.c.bf16 %v3674_v3, %v3672_v7  ;;  %4371 = vmatpush1.bf16.msra.mxu1 %v7224_v24  ;;  %4579 = vmatpush1.bf16.msra.mxu0 %v7227_v21 }
 0x5ab   : > { %4372 = vmatprep.subr.bf16.mxu1 %v7232_v58  ;;  %4580 = vmatprep.subr.bf16.mxu0 %v7235_v41 }
 0x5ac   : > { %3925 = vmatprep.mubr.bf16.mxu1 %v3680_v10  ;;  %4181 = vmatprep.mubr.bf16.mxu0 %v3680_v10 }
 0x5ad   : > { %3926 = vmatmul.mubr.bf16.gmra.mrb[144].mxu1 %v3679_v33  ;;  %4182 = vmatmul.mubr.bf16.gmra.mrb[144].mxu0 %v3679_v33  ;;  %v7286_v33 = vld [vmem:[%s9392_s9 + $0x1a4] ss:$8 sps:$4 sm:$0xff]  }
 0x5ae   : > { %4373 = vmatpush1.bf16.msra.mxu1 %v7230_v36  ;;  %4581 = vmatpush1.bf16.msra.mxu0 %v7233_v11 }
 0x5af   : > { %4374 = vmatprep.subr.bf16.mxu1 %v7238_v55  ;;  %4582 = vmatprep.subr.bf16.mxu0 %v7241_v45  ;;  %v7284_v55 = vld [vmem:[%s9392_s9 + $0x1a0] ss:$8 sps:$4 sm:$0xff]   ;;  %v7289_v45 = vld [vmem:[%s9392_s9 + $0x1b4] ss:$8 sps:$4 sm:$0xff]  }
 0x5b2   : > { %4375 = vmatpush1.bf16.msra.mxu1 %v7236_v9  ;;  %4583 = vmatpush1.bf16.msra.mxu0 %v7239_v22 }
 0x5b3   : > { %4376 = vmatprep.subr.bf16.mxu1 %v7244_v50  ;;  %4584 = vmatprep.subr.bf16.mxu0 %v7247_v62 }
 0x5b6   : > { %4377 = vmatpush1.bf16.msra.mxu1 %v7242_v19  ;;  %4585 = vmatpush1.bf16.msra.mxu0 %v7245_v52 }
 0x5b7   : > { %4378 = vmatprep.subr.bf16.mxu1 %v7250_v49  ;;  %4586 = vmatprep.subr.bf16.mxu0 %v7253_v57 }
 0x5ba   : > { %4379 = vmatpush1.bf16.msra.mxu1 %v7248_v46  ;;  %4587 = vmatpush1.bf16.msra.mxu0 %v7251_v63  ;;  %v7287_v46 = vld [vmem:[%s9392_s9 + $0x1b0] ss:$8 sps:$4 sm:$0xff]  }
 0x5bb   : > { %4380 = vmatprep.subr.bf16.mxu1 %v7256_v14  ;;  %4588 = vmatprep.subr.bf16.mxu0 %v7259_v34 }
 0x5be   : > { %4381 = vmatpush1.bf16.msra.mxu1 %v7254_v48  ;;  %4589 = vmatpush1.bf16.msra.mxu0 %v7257_v18  ;;  %v7292_v48 = vld [vmem:[%s9392_s9 + $0x1c4] ss:$8 sps:$4 sm:$0xff]  }
 0x5bf   : > { %4382 = vmatprep.subr.bf16.mxu1 %v7262_v27  ;;  %4590 = vmatprep.subr.bf16.mxu0 %v7265_v32 }
 0x5c2   : > { %4383 = vmatpush1.bf16.msra.mxu1 %v7260_v20  ;;  %4591 = vmatpush1.bf16.msra.mxu0 %v7263_v35  ;;  %v7290_v20 = vld [vmem:[%s9392_s9 + $0x1c0] ss:$8 sps:$4 sm:$0xff]   ;;  %v7295_v35 = vld [vmem:[%s9392_s9 + $0x1d4] ss:$8 sps:$4 sm:$0xff]  }
 0x5c3   : > { %4384 = vmatprep.subr.bf16.mxu1 %v7268_v23  ;;  %4592 = vmatprep.subr.bf16.mxu0 %v7271_v5  ;;  %v7298_v23 = vld [vmem:[%s9392_s9 + $0x1e4] ss:$8 sps:$4 sm:$0xff]   ;;  %v7301_v5 = vld [vmem:[%s9392_s9 + $0x1f4] ss:$8 sps:$4 sm:$0xff]  }
 0x5c6   : > { %4385 = vmatpush1.bf16.msra.mxu1 %v7266_v43  ;;  %4593 = vmatpush1.bf16.msra.mxu0 %v7269_v29  ;;  %v7293_v43 = vld [vmem:[%s9392_s9 + $0x1d0] ss:$8 sps:$4 sm:$0xff]   ;;  %v7296_v29 = vld [vmem:[%s9392_s9 + $0x1e0] ss:$8 sps:$4 sm:$0xff]  }
 0x5c7   : > { %4386 = vmatprep.subr.bf16.mxu1 %v7274_v16  ;;  %4594 = vmatprep.subr.bf16.mxu0 %v7277_v17  ;;  %v7304_v16 = vld [vmem:[%s9392_s9 + $0x204] ss:$8 sps:$4 sm:$0xff]   ;;  %v7307_v17 = vld [vmem:[%s9392_s9 + $0x214] ss:$8 sps:$4 sm:$0xff]  }
 0x5ca   : > { %4387 = vmatpush1.bf16.msra.mxu1 %v7272_v25  ;;  %4595 = vmatpush1.bf16.msra.mxu0 %v7275_v37  ;;  %v7299_v25 = vld [vmem:[%s9392_s9 + $0x1f0] ss:$8 sps:$4 sm:$0xff]   ;;  %v7302_v37 = vld [vmem:[%s9392_s9 + $0x200] ss:$8 sps:$4 sm:$0xff]  }
 0x5cb   : > { %4780 = vmatprep.subr.bf16.mxu1 %v7280_v56  ;;  %v7305_v56 = vld [vmem:[%s9392_s9 + $0x210] ss:$8 sps:$4 sm:$0xff]  }
 0x670   : > { %v3907_v40 = vpop.f32.mrb[136].mxu1  ;;  %v4163_v60 = vpop.f32.mrb[136].mxu0 }
 0x671   : > { %v4192_v44 = vmax.f32 %v3907_v40, %v4163_v60  ;;  %v3909_v51 = vpop.f32.mrb[137].mxu1  ;;  %v4165_v12 = vpop.f32.mrb[137].mxu0  ;;  %v7310_v40 = vld [vmem:[%s9392_s9 + $0x224] ss:$8 sps:$4 sm:$0xff]   ;;  %v7308_v60 = vld [vmem:[%s9392_s9 + $0x220] ss:$8 sps:$4 sm:$0xff]  }
 0x672   : > { %v4193_v2 = vmax.f32 %v3909_v51, %v4165_v12  ;;  %v3911_v53 = vpop.f32.mrb[138].mxu1  ;;  %v4167_v39 = vpop.f32.mrb[138].mxu0  ;;  %v7311_v51 = vld [vmem:[%s9392_s9 + $0x230] ss:$8 sps:$4 sm:$0xff]   ;;  %v7317_v12 = vld [vmem:[%s9395_s12 + $0xc0] sm:$0xff]  }
 0x673   : > { %v4194_v1 = vmax.f32 %v3911_v53, %v4167_v39  ;;  %v3913_v59 = vpop.f32.mrb[139].mxu1  ;;  %v4169_v4 = vpop.f32.mrb[139].mxu0  ;;  %v7321_v53 = vld [vmem:[%s9395_s12 + $0xc8] sm:$0xff]  }
 0x674   : > { %v4195_v8 = vmax.f32 %v3913_v59, %v4169_v4  ;;  %v7323_v39 = vld [vmem:[%s9395_s12 + $0x88] sm:$0xff]   ;;  %v7327_v59 = vld [vmem:[%s9395_s12 + $0x90] sm:$0xff]   ;;  %v7329_v4 = vld [vmem:[%s9395_s12 + $0xd8] sm:$0xff]  }
 0x675   : > { %v9021_v15 = vpack.c.bf16 %v4194_v1, %v4192_v44  ;;  %v7313_v44 = vld [vmem:[%s9392_s9 + $0x234] ss:$8 sps:$4 sm:$0xff]  }
 0x676   : > { %v4205_v38 = vpack.c.bf16 %v4195_v8, %v4193_v2  ;;  %v7319_v2 = vld [vmem:[%s9395_s12 + $0x80] sm:$0xff]   ;;  %v7325_v1 = vld [vmem:[%s9395_s12 + $0xd0] sm:$0xff]  }
 0x678   : > { %v3917_v28 = vpop.f32.mrb[140].mxu1  ;;  %v4173_v7 = vpop.f32.mrb[140].mxu0  ;;  %6431 = vmatprep.mubr.msk.bf16.mxu1 %vm4354_vm7, %v4205_v38  ;;  %6482 = vmatprep.mubr.msk.bf16.mxu0 %vm4354_vm7, %v4205_v38 }
 0x679   : > { %v4196_v13 = vmax.f32 %v3917_v28, %v4173_v7  ;;  %v3919_v54 = vpop.f32.mrb[141].mxu1  ;;  %v4175_v24 = vpop.f32.mrb[141].mxu0  ;;  %4397 = vmatmul.mubr.bf16.vlgmr.msra.gmra.mrb[148].mxu1 %v9021_v15  ;;  %4605 = vmatmul.mubr.bf16.vlgmr.msra.gmra.mrb[148].mxu0 %v9021_v15 }
 0x67a   : > { %v4197_v21 = vmax.f32 %v3919_v54, %v4175_v24  ;;  %4781 = vmatpush1.bf16.msra.mxu1 %v7278_v30  ;;  %v3921_v61 = vpop.f32.mrb[142].mxu1  ;;  %v4177_v47 = vpop.f32.mrb[142].mxu0 }
 0x67b   : > { %v4198_v58 = vmax.f32 %v3921_v61, %v4177_v47  ;;  %v3923_v41 = vpop.f32.mrb[143].mxu1  ;;  %v4179_v3 = vpop.f32.mrb[143].mxu0  ;;  %4782 = vmatprep.subr.bf16.mxu1 %v7283_v6 }
 0x67c   : > { %v4199_v10 = vmax.f32 %v3923_v41, %v4179_v3 }
 0x67d   : > { %v9039_v36 = vpack.c.bf16 %v4198_v58, %v4196_v13 }
 0x67e   : > { %v9041_v11 = vpack.c.bf16 %v4199_v10, %v4197_v21  ;;  %4783 = vmatpush1.bf16.msra.mxu1 %v7281_v26 }
 0x67f   : > { %4784 = vmatprep.subr.bf16.mxu1 %v7286_v33 }
 0x680   : > { %v3927_v9 = vpop.f32.mrb[144].mxu1  ;;  %v4183_v22 = vpop.f32.mrb[144].mxu0  ;;  %6432 = vmatprep.mubr.msk.bf16.mxu1 %vm4354_vm7, %v9041_v11  ;;  %6483 = vmatprep.mubr.msk.bf16.mxu0 %vm4354_vm7, %v9041_v11 }
 0x681   : > { %v4200_v50 = vmax.f32 %v3927_v9, %v4183_v22  ;;  %v3929_v62 = vpop.f32.mrb[145].mxu1  ;;  %v4185_v19 = vpop.f32.mrb[145].mxu0  ;;  %4407 = vmatmul.mubr.bf16.gmra.mrb[152].mxu1 %v9039_v36  ;;  %4615 = vmatmul.mubr.bf16.gmra.mrb[152].mxu0 %v9039_v36 }
 0x682   : > { %v4201_v52 = vmax.f32 %v3929_v62, %v4185_v19  ;;  %4785 = vmatpush1.bf16.msra.mxu1 %v7284_v55  ;;  %v3931_v49 = vpop.f32.mrb[146].mxu1  ;;  %v4187_v57 = vpop.f32.mrb[146].mxu0 }
 0x683   : > { %v4202_v63 = vmax.f32 %v3931_v49, %v4187_v57  ;;  %v3933_v14 = vpop.f32.mrb[147].mxu1  ;;  %v4189_v34 = vpop.f32.mrb[147].mxu0  ;;  %4786 = vmatprep.subr.bf16.mxu1 %v7289_v45 }
 0x684   : > { %v4203_v18 = vmax.f32 %v3933_v14, %v4189_v34 }
 0x685   : > { %v4208_v27 = vpack.c.bf16 %v4202_v63, %v4200_v50 }
 0x686   : > { %v4209_v32 = vpack.c.bf16 %v4203_v18, %v4201_v52  ;;  %4787 = vmatpush1.bf16.msra.mxu1 %v7287_v46 }
 0x687   : > { %4788 = vmatprep.subr.bf16.mxu1 %v7292_v48 }
 0x688   : > { %6433 = vmatprep.mubr.msk.bf16.mxu1 %vm4354_vm7, %v4209_v32  ;;  %6484 = vmatprep.mubr.msk.bf16.mxu0 %vm4354_vm7, %v4209_v32 }
 0x689   : > { %4417 = vmatmul.mubr.bf16.gmra.mrb[156].mxu1 %v4208_v27  ;;  %4625 = vmatmul.mubr.bf16.gmra.mrb[156].mxu0 %v4208_v27 }
 0x68a   : > { %4789 = vmatpush1.bf16.msra.mxu1 %v7290_v20  ;;  %6533 = vmatprep.mubr.msk.bf16.mxu1 %vm4354_vm7, %v4205_v38 }
 0x68b   : > { %4790 = vmatprep.subr.bf16.mxu1 %v7295_v35  ;;  %5050 = vmatprep.mubr.bf16.mxu0 %v7419_v0 }
 0x68e   : > { %4791 = vmatpush1.bf16.msra.mxu1 %v7293_v43 }
 0x68f   : > { %4792 = vmatprep.subr.bf16.mxu1 %v7298_v23 }
 0x692   : > { %4793 = vmatpush1.bf16.msra.mxu1 %v7296_v29 }
 0x693   : > { %4794 = vmatprep.subr.bf16.mxu1 %v7301_v5 }
 0x696   : > { %4795 = vmatpush1.bf16.msra.mxu1 %v7299_v25 }
 0x697   : > { %4796 = vmatprep.subr.bf16.mxu1 %v7304_v16 }
 0x69a   : > { %4797 = vmatpush1.bf16.msra.mxu1 %v7302_v37 }
 0x69b   : > { %4798 = vmatprep.subr.bf16.mxu1 %v7307_v17 }
 0x69e   : > { %4799 = vmatpush1.bf16.msra.mxu1 %v7305_v56 }
 0x69f   : > { %4800 = vmatprep.subr.bf16.mxu1 %v7310_v40 }
 0x6a2   : > { %4801 = vmatpush1.bf16.msra.mxu1 %v7308_v60 }
 0x6a3   : > { %4802 = vmatprep.subr.bf16.mxu1 %v7313_v44 }
 0x6a6   : > { %4803 = vmatpush1.bf16.msra.mxu1 %v7311_v51 }
 0x6a7   : > { %6677 = vmatprep.subr.bf16.mxu1 %v7317_v12 }
 0x6a9   : > { %4813 = vmatmul.mubr.bf16.vlgmr.msra.gmra.mrb[160].mxu1 %v9021_v15 }
 0x6aa   : > { %6534 = vmatprep.mubr.msk.bf16.mxu1 %vm4354_vm7, %v9041_v11  ;;  %6678 = vmatpush3.bf16.msra.mxu1 %v7319_v2 }
 0x6ab   : > { %6679 = vmatprep.subr.bf16.mxu1 %v7321_v53 }
 0x6ae   : > { %6680 = vmatpush3.bf16.msra.mxu1 %v7323_v39 }
 0x6af   : > { %6681 = vmatprep.subr.bf16.mxu1 %v7325_v1 }
 0x6b1   : > { %4823 = vmatmul.mubr.bf16.gmra.mrb[164].mxu1 %v9039_v36 }
 0x6b2   : > { %6535 = vmatprep.mubr.msk.bf16.mxu1 %vm4354_vm7, %v4209_v32  ;;  %6682 = vmatpush3.bf16.msra.mxu1 %v7327_v59 }
 0x6b3   : > { %6683 = vmatprep.subr.bf16.mxu1 %v7329_v4 }
 0x6b9   : > { %4833 = vmatmul.mubr.bf16.gmra.mrb[168].mxu1 %v4208_v27 }
 0x74c   : > { %v4398_v8 = vpop.f32.mrb[148].mxu1  ;;  %v4606_v15 = vpop.f32.mrb[148].mxu0 }
 0x74d   : > { %v4400_v38 = vpop.f32.mrb[149].mxu1  ;;  %v4608_v30 = vpop.f32.mrb[149].mxu0  ;;  %v4855_v7 = vrot.slane %v4606_v15, 1 }
 0x74e   : > { %v4402_v6 = vpop.f32.mrb[150].mxu1  ;;  %v4610_v28 = vpop.f32.mrb[150].mxu0  ;;  %v4858_v21 = vrot.slane %v4608_v30, 1 }
 0x74f   : > { %v4856_v13 = vrot.slane %v4610_v28, 1  ;;  %v4404_v54 = vpop.f32.mrb[151].mxu1  ;;  %v4612_v24 = vpop.f32.mrb[151].mxu0 }
 0x750   : > { %v4859_v61 = vrot.slane %v4612_v24, 1 }
 0x751   : > { %v4857_v47 = vsel %vm1235_vm2, %v4855_v7, %v4856_v13  ;;  %v4959_v7 = vld [vmem:[%s9393_s10] sm:$0x3] }
 0x752   : > { %v4889_v26 = vadd.f32 %v4857_v47, %v4398_v8  ;;  %v4860_v58 = vsel %vm1235_vm2, %v4858_v21, %v4859_v61  ;;  %v4964_v21 = vrot.slane %v4959_v7, %v7815_v31 }
 0x753   : > { %v4890_v41 = vadd.f32 %v4860_v58, %v4400_v38 }
 0x754   : > { %v4616_v3 = vpop.f32.mrb[152].mxu0  ;;  %v4408_v33 = vpop.f32.mrb[152].mxu1 }
 0x755   : > { %v4861_v10 = vrot.slane %v4616_v3, 1  ;;  %v4618_v36 = vpop.f32.mrb[153].mxu0  ;;  %v4410_v11 = vpop.f32.mrb[153].mxu1  ;;  %v4968_v3 = vrot.slane %v4959_v7, %v7821_v42 }
 0x756   : > { %v4863_v55 = vrot.slane %v4618_v36, 1  ;;  %v4620_v45 = vpop.f32.mrb[154].mxu0  ;;  %v4412_v9 = vpop.f32.mrb[154].mxu1 }
 0x757   : > { %v4862_v22 = vsel %vm1235_vm2, %v4856_v13, %v4861_v10  ;;  %v4865_v50 = vrot.slane %v4620_v45, 1  ;;  %v4622_v62 = vpop.f32.mrb[155].mxu0  ;;  %v4414_v19 = vpop.f32.mrb[155].mxu1 }
 0x758   : > { %v4891_v52 = vadd.f32 %v4862_v22, %v4402_v6  ;;  %v4864_v49 = vsel %vm1235_vm2, %v4859_v61, %v4863_v55  ;;  %v4867_v57 = vrot.slane %v4622_v62, 1 }
 0x759   : > { %v4892_v46 = vadd.f32 %v4864_v49, %v4404_v54  ;;  %v4866_v63 = vsel %vm1235_vm2, %v4861_v10, %v4865_v50 }
 0x75a   : > { %v4893_v14 = vadd.f32 %v4866_v63, %v4408_v33  ;;  %v4868_v34 = vsel %vm1235_vm2, %v4863_v55, %v4867_v57 }
 0x75b   : > { %v4894_v48 = vadd.f32 %v4868_v34, %v4410_v11 }
 0x75c   : > { %v4626_v18 = vpop.f32.mrb[156].mxu0  ;;  %v4418_v27 = vpop.f32.mrb[156].mxu1 }
 0x75d   : > { %v4869_v32 = vrot.slane %v4626_v18, 1  ;;  %v4628_v20 = vpop.f32.mrb[157].mxu0  ;;  %v4420_v35 = vpop.f32.mrb[157].mxu1 }
 0x75e   : > { %v4871_v43 = vrot.slane %v4628_v20, 1  ;;  %v4630_v23 = vpop.f32.mrb[158].mxu0  ;;  %v4422_v29 = vpop.f32.mrb[158].mxu1 }
 0x75f   : > { %v4870_v5 = vsel %vm1235_vm2, %v4865_v50, %v4869_v32  ;;  %v4873_v25 = vrot.slane %v4630_v23, 1  ;;  %v4632_v16 = vpop.f32.mrb[159].mxu0  ;;  %v4424_v37 = vpop.f32.mrb[159].mxu1 }
 0x760   : > { %v4895_v17 = vadd.f32 %v4870_v5, %v4412_v9  ;;  %v4872_v56 = vsel %vm1235_vm2, %v4867_v57, %v4871_v43  ;;  %v4875_v40 = vrot.slane %v4632_v16, 1 }
 0x761   : > { %v4896_v60 = vadd.f32 %v4872_v56, %v4414_v19  ;;  %v4874_v44 = vsel %vm1235_vm2, %v4869_v32, %v4873_v25  ;;  %v4899_v51 = vadd.f32 %v4873_v25, %v4422_v29 }
 0x762   : > { %v9145_v12 = vadd.f32 %v4874_v44, %v4418_v27  ;;  %v4876_v2 = vsel %vm1235_vm2, %v4871_v43, %v4875_v40  ;;  %v9148_v53 = vadd.f32 %v4875_v40, %v4424_v37 }
 0x763   : > { %v9150_v39 = vadd.f32 %v4876_v2, %v4420_v35 }
 0x77c   : > { %v4814_v1 = vpop.f32.mrb[160].mxu1 }
 0x77d   : > { %v4816_v59 = vpop.f32.mrb[161].mxu1  ;;  %v4913_v8 = vrot.slane %v4814_v1, 2 }
 0x77e   : > { %v4818_v4 = vpop.f32.mrb[162].mxu1  ;;  %v4916_v30 = vrot.slane %v4816_v59, 2 }
 0x77f   : > { %v4914_v15 = vrot.slane %v4818_v4, 2  ;;  %v4820_v38 = vpop.f32.mrb[163].mxu1 }
 0x780   : > { %v4917_v6 = vrot.slane %v4820_v38, 2 }
 0x781   : > { %v4915_v28 = vsel %vm1414_vm4, %v4913_v8, %v4914_v15 }
 0x782   : > { %v4947_v13 = vadd.f32 %v4915_v28, %v4889_v26  ;;  %v4918_v54 = vsel %vm1414_vm4, %v4916_v30, %v4917_v6 }
 0x783   : > { %v4948_v24 = vadd.f32 %v4918_v54, %v4890_v41 }
 0x784   : > { %v4824_v61 = vpop.f32.mrb[164].mxu1  ;;  %v4971_v45 = vadd.f32 %v4964_v21, %v4947_v13 }
 0x785   : > { %v4919_v47 = vrot.slane %v4824_v61, 2  ;;  %v4826_v58 = vpop.f32.mrb[165].mxu1  ;;  %v4972_v31 = vadd.f32 %v4968_v3, %v4948_v24 }
 0x786   : > { %v4921_v33 = vrot.slane %v4826_v58, 2  ;;  %v4828_v10 = vpop.f32.mrb[166].mxu1  ;;  %v4983_v63 = vmax.f32 %v4971_v45, 0.0  ;;  %v7326_v45 = vld [vmem:[%s9395_s12 + $0x10] sm:$0xff]  }
 0x787   : > { %v4920_v36 = vsel %vm1414_vm4, %v4914_v15, %v4919_v47  ;;  %v4923_v11 = vrot.slane %v4828_v10, 2  ;;  %v4830_v55 = vpop.f32.mrb[167].mxu1  ;;  %v4984_v20 = vmax.f32 %v4972_v31, 0.0  ;;  %v7315_v10 = vld [vmem:[%s9394_s11 + $0x8] sm:$0xff]   ;;  %v7334_v31 = vld [vmem:[%s9395_s12 + $0x20] sm:$0xff]  }
 0x788   : > { %v4949_v9 = vadd.f32 %v4920_v36, %v4891_v52  ;;  %v4922_v26 = vsel %vm1414_vm4, %v4917_v6, %v4921_v33  ;;  %v4925_v22 = vrot.slane %v4830_v55, 2  ;;  %v7318_v36 = vld [vmem:[%s9395_s12] sm:$0xff]   ;;  %v7324_v55 = vld [vmem:[%s9395_s12 + $0x50] sm:$0xff]  }
 0x789   : > { %v4950_v50 = vadd.f32 %v4922_v26, %v4892_v46  ;;  %v4924_v41 = vsel %vm1414_vm4, %v4919_v47, %v4923_v11  ;;  %v7330_v26 = vld [vmem:[%s9395_s12 + $0x18] sm:$0xff]  }
 0x78a   : > { %v4973_v62 = vadd.f32 %v4964_v21, %v4949_v9  ;;  %v4951_v19 = vadd.f32 %v4924_v41, %v4893_v14  ;;  %v4926_v49 = vsel %vm1414_vm4, %v4921_v33, %v4925_v22  ;;  %v7328_v9 = vld [vmem:[%s9395_s12 + $0x58] sm:$0xff]   ;;  %v7333_v41 = vld [vmem:[%s9395_s12 + $0xe0] sm:$0xff]  }
 0x78b   : > { %v4952_v42 = vadd.f32 %v4926_v49, %v4894_v48  ;;  %v4974_v57 = vadd.f32 %v4968_v3, %v4950_v50  ;;  %v7332_v50 = vld [vmem:[%s9395_s12 + $0x60] sm:$0xff]   ;;  %v7337_v49 = vld [vmem:[%s9395_s12 + $0xe8] sm:$0xff]  }
 0x78c   : > { %v4985_v34 = vmax.f32 %v4973_v62, 0.0  ;;  %v4834_v18 = vpop.f32.mrb[168].mxu1  ;;  %v4975_v14 = vadd.f32 %v4964_v21, %v4951_v19  ;;  %v7335_v62 = vld [vmem:[%s9395_s12 + $0xa0] sm:$0xff]   ;;  %v7336_v19 = vld [vmem:[%s9395_s12 + $0x68] sm:$0xff]  }
 0x78d   : > { %v4927_v27 = vrot.slane %v4834_v18, 2  ;;  %v4836_v32 = vpop.f32.mrb[169].mxu1  ;;  %v4986_v52 = vmax.f32 %v4974_v57, 0.0  ;;  %v4976_v2 = vadd.f32 %v4968_v3, %v4952_v42  ;;  %v7338_v42 = vld [vmem:[%s9395_s12 + $0x28] sm:$0xff]   ;;  %v7342_v18 = vld [vmem:[%s9395_s12 + $0x30] sm:$0xff]  }
 0x78e   : > { %v4929_v35 = vrot.slane %v4836_v32, 2  ;;  %v4838_v43 = vpop.f32.mrb[170].mxu1  ;;  %v4995_v23 = vpack.c.bf16 %v4985_v34, %v4983_v63  ;;  %v4987_v30 = vmax.f32 %v4975_v14, 0.0  ;;  %v7339_v57 = vld [vmem:[%s9395_s12 + $0xa8] sm:$0xff]   ;;  %v7340_v63 = vld [vmem:[%s9395_s12 + $0x70] sm:$0xff]   ;;  %v7344_v32 = vld [vmem:[%s9395_s12 + $0x78] sm:$0xff]  }
 0x78f   : > { %v4928_v46 = vsel %vm1414_vm4, %v4923_v11, %v4927_v27  ;;  %v4931_v29 = vrot.slane %v4838_v43, 2  ;;  %v4840_v5 = vpop.f32.mrb[171].mxu1  ;;  %v4996_v25 = vpack.c.bf16 %v4986_v52, %v4984_v20  ;;  %v4988_v13 = vmax.f32 %v4976_v2, 0.0  ;;  %v7322_v11 = vld [vmem:[%s9395_s12 + $0x8] sm:$0xff]   ;;  %v7341_v34 = vld [vmem:[%s9395_s12 + $0xf0] sm:$0xff]   ;;  %v7345_v20 = vld [vmem:[%s9395_s12 + $0xf8] sm:$0xff]  }
 0x790   : > { %v4953_v16 = vadd.f32 %v4928_v46, %v4895_v17  ;;  %v4930_v48 = vsel %vm1414_vm4, %v4925_v22, %v4929_v35  ;;  %v4933_v37 = vrot.slane %v4840_v5, 2  ;;  %v7331_v22 = vld [vmem:[%s9395_s12 + $0x98] sm:$0xff]  }
 0x791   : > { %v4954_v56 = vadd.f32 %v4930_v48, %v4896_v60  ;;  %v4932_v40 = vsel %vm1414_vm4, %v4927_v27, %v4931_v29  ;;  %v4957_v44 = vadd.f32 %v4931_v29, %v4899_v51  ;;  %5018 = vmatprep.subr.bf16.mxu0 %v4996_v25  ;;  %6684 = vmatpush3.bf16.msra.mxu1 %v7331_v22  ;;  %v7343_v27 = vld [vmem:[%s9395_s12 + $0xb0] sm:$0xff]   ;;  %v7346_v52 = vld [vmem:[%s9395_s12 + $0x38] sm:$0xff]  }
 0x792   : > { %v4977_v1 = vadd.f32 %v4964_v21, %v4953_v16  ;;  %v4955_v59 = vadd.f32 %v4932_v40, %v9145_v12  ;;  %v4934_v4 = vsel %vm1414_vm4, %v4929_v35, %v4933_v37  ;;  %v4958_v8 = vadd.f32 %v4933_v37, %v9148_v53  ;;  %5019 = vmatpush1.bf16.msra.mxu0 %v4995_v23  ;;  %v7347_v35 = vld [vmem:[%s9395_s12 + $0xb8] sm:$0xff]  }
 0x793   : > { %v4981_v15 = vadd.f32 %v4964_v21, %v4957_v44  ;;  %v4956_v17 = vadd.f32 %v4934_v4, %v9150_v39  ;;  %v4978_v38 = vadd.f32 %v4968_v3, %v4954_v56  ;;  %6685 = vmatprep.subr.bf16.mxu1 %v7333_v41  ;;  %v7363_v22 = vld [vmem:[%s9397_s14 + $0x38] sm:$0xff]  }
 0x794   : > { %v4989_v6 = vmax.f32 %v4977_v1, 0.0  ;;  %v4982_v60 = vadd.f32 %v4968_v3, %v4958_v8  ;;  %v4979_v28 = vadd.f32 %v4964_v21, %v4955_v59  ;;  %v7314_v21 = vld [vmem:[%s9394_s11] sm:$0xff]   ;;  %v7420_v1 = vmov 0.0  }
 0x795   : > { %v4993_v7 = vmax.f32 %v4981_v15, 0.0  ;;  %v4980_v51 = vadd.f32 %v4968_v3, %v4956_v17  ;;  %v4990_v54 = vmax.f32 %v4978_v38, 0.0  ;;  %v7316_v3 = vld [vmem:[%s9395_s12 + $0x40] sm:$0xff]   ;;  %6686 = vmatpush3.bf16.msra.mxu1 %v7335_v62 }
 0x796   : > { %v4994_v24 = vmax.f32 %v4982_v60, 0.0  ;;  %v4997_v61 = vpack.c.bf16 %v4989_v6, %v4987_v30  ;;  %v4991_v12 = vmax.f32 %v4979_v28, 0.0  ;;  %6687 = vmatprep.subr.bf16.mxu1 %v7337_v49 }
 0x797   : > { %v4992_v47 = vmax.f32 %v4980_v51, 0.0  ;;  %v4998_v58 = vpack.c.bf16 %v4990_v54, %v4988_v13 }
 0x798   : > { %v4999_v33 = vpack.c.bf16 %v4993_v7, %v4991_v12  ;;  %v6609_v12 = vld [vmem:[%s9396_s13 + $0x4] sm:$0xf] }
 0x799   : > { %v5000_v53 = vpack.c.bf16 %v4994_v24, %v4992_v47  ;;  %5020 = vmatprep.subr.bf16.mxu0 %v4998_v58  ;;  %6688 = vmatpush3.bf16.msra.mxu1 %v7339_v57  ;;  %v7348_v47 = vld [vmem:[%s9397_s14 + $0x40] sm:$0xff]  }
 0x79a   : > { %5021 = vmatpush1.bf16.msra.mxu0 %v4997_v61  ;;  %v5013_v39 = vsel %vm1235_vm2, %v4999_v33, 0  ;;  %6689 = vmatprep.subr.bf16.mxu1 %v7341_v34  ;;  %v7350_v33 = vld [vmem:[%s9397_s14 + $0x48] sm:$0xff]  }
 0x79b   : > { %6537 = vmatprep.subr.msk.bf16.mxu0 %vm1235_vm2, %v5000_v53 }
 0x79d   : > { %6690 = vmatpush3.bf16.msra.mxu1 %v7343_v27  ;;  %v7365_v27 = vld [vmem:[%s9399_s16 + $0x8] sm:$0xff]  }
 0x79e   : > { %5023 = vmatpush1.bf16.msra.mxu0 %v5013_v39  ;;  %6691 = vmatprep.subr.bf16.mxu1 %v7345_v20  ;;  %v7367_v20 = vld [vmem:[%s9399_s16 + $0x18] sm:$0xff]  }
 0x79f   : > { %5072 = vmatprep.subr.bf16.mxu0 %v4996_v25 }
 0x7a1   : > { %6538 = vmatmul.mubr.msk.bf16.vlgmr.msra.gmra.mrb[160].mxu0 %vm5008_vm8, %v7314_v21  ;;  %6692 = vmatpush3.bf16.msra.mxu1 %v7347_v35  ;;  %v7353_v21 = vld [vmem:[%s9397_s14 + $0x10] sm:$0xff]   ;;  %v7369_v35 = vld [vmem:[%s9399_s16 + $0x28] sm:$0xff]  }
 0x7a2   : > { %5073 = vmatpush1.bf16.msra.mxu0 %v4995_v23  ;;  %5104 = vmatprep.mubr.bf16.mxu0 %v7419_v0  ;;  %v7320_v0 = vld [vmem:[%s9395_s12 + $0x48] sm:$0xff]  }
 0x7a3   : > { %5074 = vmatprep.subr.bf16.mxu0 %v4998_v58  ;;  %6736 = vmatprep.subr.bf16.mxu1 %v7420_v1  ;;  %v7349_v58 = vld [vmem:[%s9397_s14] sm:$0xff]  }
 0x7a6   : > { %5075 = vmatpush1.bf16.msra.mxu0 %v4997_v61  ;;  %v5463_v61 = vld [vmem:[%s9396_s13] sm:$0xf] }
 0x7a7   : > { %6542 = vmatprep.subr.msk.bf16.mxu0 %vm1235_vm2, %v5000_v53  ;;  %v7351_v53 = vld [vmem:[%s9397_s14 + $0x8] sm:$0xff]  }
 0x7aa   : > { %5077 = vmatpush1.bf16.msra.mxu0 %v5013_v39  ;;  %v7352_v39 = vld [vmem:[%s9397_s14 + $0x50] sm:$0xff]  }
 0x7ab   : > { %6655 = vmatprep.subr.bf16.mxu0 %v7316_v3  ;;  %v7354_v3 = vld [vmem:[%s9397_s14 + $0x58] sm:$0xff]  }
 0x7ad   : > { %6543 = vmatmul.mubr.msk.bf16.vlgmr.msra.gmra.mrb[164].mxu0 %vm5008_vm8, %v7315_v10  ;;  %v7355_v10 = vld [vmem:[%s9397_s14 + $0x18] sm:$0xff]  }
 0x7ae   : > { %6656 = vmatpush3.bf16.msra.mxu0 %v7318_v36  ;;  %v7356_v36 = vld [vmem:[%s9397_s14 + $0x60] sm:$0xff]  }
 0x7af   : > { %6657 = vmatprep.subr.bf16.mxu0 %v7320_v0  ;;  %v7357_v0 = vld [vmem:[%s9397_s14 + $0x20] sm:$0xff]  }
 0x7b2   : > { %6658 = vmatpush3.bf16.msra.mxu0 %v7322_v11  ;;  %v7358_v11 = vld [vmem:[%s9397_s14 + $0x68] sm:$0xff]  }
 0x7b3   : > { %6659 = vmatprep.subr.bf16.mxu0 %v7324_v55  ;;  %v7359_v55 = vld [vmem:[%s9397_s14 + $0x28] sm:$0xff]  }
 0x7b6   : > { %6660 = vmatpush3.bf16.msra.mxu0 %v7326_v45  ;;  %v7360_v45 = vld [vmem:[%s9397_s14 + $0x70] sm:$0xff]  }
 0x7b7   : > { %6661 = vmatprep.subr.bf16.mxu0 %v7328_v9  ;;  %v7361_v9 = vld [vmem:[%s9397_s14 + $0x30] sm:$0xff]  }
 0x7ba   : > { %6662 = vmatpush3.bf16.msra.mxu0 %v7330_v26  ;;  %v7362_v26 = vld [vmem:[%s9397_s14 + $0x78] sm:$0xff]  }
 0x7bb   : > { %6663 = vmatprep.subr.bf16.mxu0 %v7332_v50 }
 0x7be   : > { %6664 = vmatpush3.bf16.msra.mxu0 %v7334_v31  ;;  %v7364_v31 = vld [vmem:[%s9399_s16] sm:$0xff]  }
 0x7bf   : > { %6665 = vmatprep.subr.bf16.mxu0 %v7336_v19 }
 0x7c2   : > { %6666 = vmatpush3.bf16.msra.mxu0 %v7338_v42 }
 0x7c3   : > { %6667 = vmatprep.subr.bf16.mxu0 %v7340_v63 }
 0x7c6   : > { %6668 = vmatpush3.bf16.msra.mxu0 %v7342_v18 }
 0x7c7   : > { %6669 = vmatprep.subr.bf16.mxu0 %v7344_v32  ;;  %v7366_v32 = vld [vmem:[%s9399_s16 + $0x10] sm:$0xff]  }
 0x7ca   : > { %6670 = vmatpush3.bf16.msra.mxu0 %v7346_v52  ;;  %v7368_v52 = vld [vmem:[%s9399_s16 + $0x20] sm:$0xff]  }
 0x7cb   : > { %6730 = vmatprep.subr.bf16.mxu0 %v7420_v1 }
 0x874   : > { %v5052_v43 = vpop.f32.mrb[160].mxu0 }
 0x875   : > { %v5054_v23 = vpop.f32.mrb[161].mxu0 }
 0x876   : > { %v5056_v46 = vpop.f32.mrb[162].mxu0 }
 0x877   : > { %v5058_v29 = vpop.f32.mrb[163].mxu0 }
 0x880   : > { %v5106_v5 = vpop.f32.mrb[164].mxu0 }
 0x881   : > { %v5115_v25 = vmax.f32 %v5052_v43, %v5106_v5  ;;  %v5108_v14 = vpop.f32.mrb[165].mxu0  ;;  %v7370_v43 = vld [vmem:[%s9399_s16 + $0x30] sm:$0xff]   ;;  %v6643_v5 = vld [vmem:[%s9398_s15] ss:$0 sm:$0xff] }
 0x882   : > { %v5116_v16 = vmax.f32 %v5054_v23, %v5108_v14  ;;  %v5110_v48 = vpop.f32.mrb[166].mxu0  ;;  %v7371_v23 = vld [vmem:[%s9399_s16 + $0x38] sm:$0xff]  }
 0x883   : > { %v5117_v37 = vmax.f32 %v5056_v46, %v5110_v48  ;;  %v5112_v56 = vpop.f32.mrb[167].mxu0 }
 0x884   : > { %v5118_v40 = vmax.f32 %v5058_v29, %v5112_v56 }
 0x885   : > { %v5119_v44 = vpack.c.bf16 %v5117_v37, %v5115_v25 }
 0x886   : > { %v5120_v2 = vpack.c.bf16 %v5118_v40, %v5116_v16 }
 0x888   : > { %5281 = vmatprep.mubr.bf16.mxu0 %v5120_v2  ;;  %5451 = vmatprep.mubr.bf16.mxu1 %v5120_v2 }
 0x889   : > { %5282 = vmatmul.mubr.bf16.vlgmr.msra.gmra.mrb[168].mxu0 %v5119_v44  ;;  %5452 = vmatmul.mubr.bf16.vlgmr.msra.gmra.mrb[172].mxu1 %v5119_v44 }
 0x88a   : > { %6732 = vmatprep.mubr.msk.bf16.mxu0 %vm7421_vm9, %v7420_v1  ;;  %6738 = vmatprep.mubr.msk.bf16.mxu1 %vm7421_vm9, %v7420_v1 }
 0x95c   : > { %v6671_v59 = vpop.f32.mrb[168].mxu0  ;;  %v6693_v4 = vpop.f32.mrb[172].mxu1 }
 0x95d   : > { %v6672_v8 = vpop.f32.mrb[169].mxu0  ;;  %v6694_v15 = vpop.f32.mrb[173].mxu1 }
 0x95e   : > { %v6673_v17 = vadd.f32 %v6672_v8, %v6671_v59  ;;  %v6695_v38 = vadd.f32 %v6694_v15, %v6693_v4  ;;  %v6674_v30 = vpop.f32.mrb[170].mxu0  ;;  %v6696_v6 = vpop.f32.mrb[174].mxu1 }
 0x95f   : > { %v6675_v60 = vpop.f32.mrb[171].mxu0  ;;  %v6697_v28 = vpop.f32.mrb[175].mxu1 }
 0x960   : > { %v5460_v7 = vmax.f32 %v6673_v17, %v6695_v38  ;;  %v6676_v51 = vadd.f32 %v6675_v60, %v6674_v30  ;;  %v6698_v13 = vadd.f32 %v6697_v28, %v6696_v6 }
 0x962   : > { %v5461_v54 = vmax.f32 %v6676_v51, %v6698_v13 }
 0x964   : > { %v5462_v24 = vpack.c.bf16 %v5461_v54, %v5460_v7 }
 0x966   : > { %6731 = vmatpush3.bf16.msra.mxu0 %v5462_v24  ;;  %6737 = vmatpush3.bf16.msra.mxu1 %v5462_v24 }
 0x967   : > { %6742 = vmatprep.subr.bf16.mxu0 %v7420_v1  ;;  %6762 = vmatprep.subr.bf16.mxu1 %v7420_v1 }
 0x969   : > { %6733 = vmatmul.mubr.msk.bf16.vlgmr.msra.gmra.mrb[172].mxu0 %vm5464_vm10, %v5463_v61  ;;  %6739 = vmatmul.mubr.msk.bf16.vlgmr.msra.gmra.mrb[176].mxu1 %vm5464_vm10, %v6609_v12 }
 0x96a   : > { %6743 = vmatpush3.bf16.msra.mxu0 %v7348_v47  ;;  %6763 = vmatpush3.bf16.msra.mxu1 %v7349_v58 }
 0x96b   : > { %6744 = vmatprep.subr.bf16.mxu0 %v7420_v1  ;;  %6764 = vmatprep.subr.bf16.mxu1 %v7420_v1 }
 0x96c   : > { %6758 = vmatprep.mubr.msk.bf16.mxu0 %vm7421_vm9, %v7420_v1  ;;  %6778 = vmatprep.mubr.msk.bf16.mxu1 %vm7421_vm9, %v7420_v1 }
 0x96e   : > { %6745 = vmatpush3.bf16.msra.mxu0 %v7350_v33  ;;  %6765 = vmatpush3.bf16.msra.mxu1 %v7351_v53 }
 0x96f   : > { %6746 = vmatprep.subr.bf16.mxu0 %v7420_v1  ;;  %6766 = vmatprep.subr.bf16.mxu1 %v7420_v1 }
 0x972   : > { %6747 = vmatpush3.bf16.msra.mxu0 %v7352_v39  ;;  %6767 = vmatpush3.bf16.msra.mxu1 %v7353_v21 }
 0x973   : > { %6748 = vmatprep.subr.bf16.mxu0 %v7420_v1  ;;  %6768 = vmatprep.subr.bf16.mxu1 %v7420_v1 }
 0x976   : > { %6749 = vmatpush3.bf16.msra.mxu0 %v7354_v3  ;;  %6769 = vmatpush3.bf16.msra.mxu1 %v7355_v10 }
 0x977   : > { %6750 = vmatprep.subr.bf16.mxu0 %v7420_v1  ;;  %6770 = vmatprep.subr.bf16.mxu1 %v7420_v1 }
 0x97a   : > { %6751 = vmatpush3.bf16.msra.mxu0 %v7356_v36  ;;  %6771 = vmatpush3.bf16.msra.mxu1 %v7357_v0 }
 0x97b   : > { %6752 = vmatprep.subr.bf16.mxu0 %v7420_v1  ;;  %6772 = vmatprep.subr.bf16.mxu1 %v7420_v1 }
 0x97e   : > { %6753 = vmatpush3.bf16.msra.mxu0 %v7358_v11  ;;  %6773 = vmatpush3.bf16.msra.mxu1 %v7359_v55 }
 0x97f   : > { %6754 = vmatprep.subr.bf16.mxu0 %v7420_v1  ;;  %6774 = vmatprep.subr.bf16.mxu1 %v7420_v1 }
 0x982   : > { %6755 = vmatpush3.bf16.msra.mxu0 %v7360_v45  ;;  %6775 = vmatpush3.bf16.msra.mxu1 %v7361_v9 }
 0x983   : > { %6756 = vmatprep.subr.bf16.mxu0 %v7420_v1  ;;  %6776 = vmatprep.subr.bf16.mxu1 %v7420_v1 }
 0x986   : > { %6757 = vmatpush3.bf16.msra.mxu0 %v7362_v26  ;;  %6777 = vmatpush3.bf16.msra.mxu1 %v7363_v22 }
 0x987   : > { %6782 = vmatprep.subr.bf16.mxu0 %v7420_v1 }
 0xa3c   : > { %v5502_v50 = vpop.f32.mrb[172].mxu0  ;;  %v5564_v41 = vpop.f32.mrb[176].mxu1 }
 0xa3d   : > { %v5508_v62 = vpack.c.bf16 %v5502_v50, %v5502_v50  ;;  %v5570_v19 = vpack.c.bf16 %v5564_v41, %v5564_v41  ;;  %v6734_v49 = vpop.f32.mrb[173].mxu0  ;;  %v6740_v42 = vpop.f32.mrb[177].mxu1 }
 0xa3e   : > { %v5505_v57 = vpop.f32.mrb[174].mxu0  ;;  %v5567_v63 = vpop.f32.mrb[178].mxu1 }
 0xa3f   : > { %v6735_v34 = vpop.f32.mrb[175].mxu0  ;;  %v6741_v18 = vpop.f32.mrb[179].mxu1  ;;  %6759 = vmatmul.mubr.bf16.vlgmr.msra.gmra.mrb[176].mxu0 %v5570_v19  ;;  %6779 = vmatmul.mubr.bf16.vlgmr.msra.gmra.mrb[180].mxu1 %v5508_v62 }
 0xa40   : > { %6783 = vmatpush3.bf16.msra.mxu0 %v7364_v31  ;;  %6798 = vmatprep.mubr.msk.bf16.mxu0 %vm7421_vm9, %v7420_v1 }
 0xa41   : > { %6784 = vmatprep.subr.bf16.mxu0 %v7420_v1 }
 0xa44   : > { %6785 = vmatpush3.bf16.msra.mxu0 %v7365_v27 }
 0xa45   : > { %6786 = vmatprep.subr.bf16.mxu0 %v7420_v1 }
 0xa48   : > { %6787 = vmatpush3.bf16.msra.mxu0 %v7366_v32 }
 0xa49   : > { %6788 = vmatprep.subr.bf16.mxu0 %v7420_v1 }
 0xa4c   : > { %6789 = vmatpush3.bf16.msra.mxu0 %v7367_v20 }
 0xa4d   : > { %6790 = vmatprep.subr.bf16.mxu0 %v7420_v1 }
 0xa50   : > { %6791 = vmatpush3.bf16.msra.mxu0 %v7368_v52 }
 0xa51   : > { %6792 = vmatprep.subr.bf16.mxu0 %v7420_v1 }
 0xa54   : > { %6793 = vmatpush3.bf16.msra.mxu0 %v7369_v35 }
 0xa55   : > { %6794 = vmatprep.subr.bf16.mxu0 %v7420_v1 }
 0xa58   : > { %6795 = vmatpush3.bf16.msra.mxu0 %v7370_v43 }
 0xa59   : > { %6796 = vmatprep.subr.bf16.mxu0 %v7420_v1  ;;  %v6644_v1 = vld [vmem:[%s9400_s17] ss:$0 sm:$0xff] }
 0xa5c   : > { %6797 = vmatpush3.bf16.msra.mxu0 %v7371_v23 }
 0xb12   : > { %v5670_v46 = vpop.f32.mrb[176].mxu0  ;;  %v5758_v29 = vpop.f32.mrb[180].mxu1 }
 0xb13   : > { %v5759_v25 = vadd.f32 %v5758_v29, %v5670_v46  ;;  %v6760_v14 = vpop.f32.mrb[177].mxu0  ;;  %v6780_v16 = vpop.f32.mrb[181].mxu1 }
 0xb14   : > { %v5673_v48 = vpop.f32.mrb[178].mxu0  ;;  %v5761_v37 = vpop.f32.mrb[182].mxu1 }
 0xb15   : > { %v5771_v56 = vadd.f32 %v6643_v5, %v5759_v25  ;;  %v6761_v40 = vpop.f32.mrb[179].mxu0  ;;  %v6781_v44 = vpop.f32.mrb[183].mxu1 }
 0xb17   : > { %v5772_v2 = vmax.f32 %v5771_v56, 0.0 }
 0xb19   : > { %v5773_v59 = vpack.c.bf16 %v5772_v2, %v5772_v2 }
 0xb1b   : > { %6799 = vmatmul.mubr.bf16.vlgmr.msra.gmra.mrb[180].mxu0 %v5773_v59 }
 0xbee   : > { %v5879_v4 = vpop.f32.mrb[180].mxu0 }
 0xbef   : > { %v5880_v8 = vadd.f32 %v6644_v1, %v5879_v4  ;;  %v6800_v15 = vpop.f32.mrb[181].mxu0 }
 0xbf0   : > { %v5882_v17 = vpop.f32.mrb[182].mxu0 }
 0xbf1   : > { %v5885_v38 = vsub.f32 0.0, %v5880_v8  ;;  %v6801_v30 = vpop.f32.mrb[183].mxu0 }
 0xbf3   : > { %v5886_v6 = vmul.f32 1.442695, %v5885_v38 }
 0xbf5   : > { %7372 = vpow2.f32 %v5886_v6 }
 0xbff   : > { %v7373_v60 = vpop.eup %7372 }
 0xc00   : > { %v5888_v28 = vadd.f32 1.0, %v7373_v60 }
 0xc02   : > { %7374 = vrcp.f32 %v5888_v28 }
 0xc0c   : > { %v7375_v7 = vpop.eup %7374 }
 0xc0d   : > { %5892 = vst.msk [vmem:[%s590_s23] sm:$0xff] %vm5891_vm11, %v7375_v7 }
 0xc0e PF: > { %s29_s27 = sadd.s32 1, %s7414_s27  }
 0xc0f   : > { %p26_p5 = scmp.ge.s32.totalorder %s29_s27, 4  }
 0xc11   :  { %28 = sbr.rel (!%p26_p5) target bundleno = 6 (0x6), region = 141 }
 0xc18   :  { %5912 = vsyncpa [#allocation3], 1 }
 0xc19   :  { %5914 = vsyncpa [#allocation3 + $0x1], 1 }

</bundles_post_ra>
